<compile_context>
chip_gen: v7x
topology: tpu7x:2x2x1
jax: 0.10.0
libtpu: 0.0.40
codegen_flags: <defaults>
</compile_context>

<pallas_src>
import jax
import jax.numpy as jnp
from jax.experimental import pallas as pl
from jax.experimental.pallas import tpu as pltpu

EPS = 1e-5


def fused_bn_conv_pad_add_kernel(x_ref, w_ref, cb_ref, g_ref, b_ref, noise_ref,
                                 o_ref, y_ref):
    """Fused: batchnorm -> 1x1 conv -> +bias -> zero-pad -> +noise.

    x_ref:     (Cin, H*W)     activations (channels on sublanes, pixels on lanes)
    w_ref:     (Cout, Cin)    1x1 conv weight
    cb_ref:    (Cout, 1, 1)   conv bias
    g_ref:     (Cin, 1)       batchnorm gamma
    b_ref:     (Cin, 1)       batchnorm beta
    noise_ref: (Cout, Hp, Wp) the "other" tensor (Hp = H+2, Wp = W+2)
    o_ref:     (Cout, Hp, Wp) output
    y_ref:     (Cout, H*W)    VMEM scratch holding the conv interior
    """
    _, hp, wp = o_ref.shape
    h_dim, w_dim = hp - 2, wp - 2

    x = x_ref[...]
    # Training-mode batch statistics per channel (biased variance), folded into
    # a single per-channel scale/shift so normalization is one FMA over x.
    mean = jnp.mean(x, axis=1, keepdims=True)                    # (Cin, 1)
    var = jnp.mean(jnp.square(x - mean), axis=1, keepdims=True)  # (Cin, 1)
    scale = g_ref[...] * jax.lax.rsqrt(var + EPS)                # (Cin, 1)
    shift = b_ref[...] - mean * scale                            # (Cin, 1)
    xn = x * scale + shift                                       # (Cin, H*W)

    # 1x1 convolution == one MXU matmul with a lane-dense (Cout, H*W) result.
    y_ref[...] = jnp.dot(w_ref[...], xn, preferred_element_type=jnp.float32)

    # Padded output written directly: every position gets conv_bias + noise
    # (the zero-padded border of a 1x1 conv contributes nothing there)...
    o_ref[...] = noise_ref[...] + cb_ref[...]
    # ...and the interior rows additionally receive the conv result.
    for h in range(h_dim):                                       # static, small
        o_ref[:, h + 1, 1:w_dim + 1] = (
            o_ref[:, h + 1, 1:w_dim + 1]
            + y_ref[:, h * w_dim:(h + 1) * w_dim])


def model_forward(x, conv_w, conv_b, bn_gamma, bn_beta, other):
    # x: (N, Cin, H, W); conv_w: (Cout, Cin, 1, 1); conv_b: (Cout,)
    # other: (N, Cout, H+2, W+2).  N == 1 as in the original module, so every
    # reshape below is a free view (no XLA transpose / pad / extra HBM pass).
    N, Cin, H, W = x.shape
    assert N == 1, "module spec uses batch size 1"
    # TODO(synk): N > 1 would need a channel-major transpose + cross-batch stats.
    Cout = conv_w.shape[0]
    Hp, Wp = H + 2, W + 2

    x2d = x.reshape(Cin, H * W)
    w2d = conv_w.reshape(Cout, Cin)
    cb3d = conv_b.reshape(Cout, 1, 1)
    g2d = bn_gamma.reshape(Cin, 1)
    b2d = bn_beta.reshape(Cin, 1)
    noise3d = other.reshape(Cout, Hp, Wp)

    out = pl.pallas_call(
        fused_bn_conv_pad_add_kernel,
        out_shape=jax.ShapeDtypeStruct((Cout, Hp, Wp), jnp.float32),
        grid=(1,),
        in_specs=[
            pl.BlockSpec((Cin, H * W), lambda i: (0, 0)),
            pl.BlockSpec((Cout, Cin), lambda i: (0, 0)),
            pl.BlockSpec((Cout, 1, 1), lambda i: (0, 0, 0)),
            pl.BlockSpec((Cin, 1), lambda i: (0, 0)),
            pl.BlockSpec((Cin, 1), lambda i: (0, 0)),
            pl.BlockSpec((Cout, Hp, Wp), lambda i: (0, 0, 0)),
        ],
        out_specs=pl.BlockSpec((Cout, Hp, Wp), lambda i: (0, 0, 0)),
        scratch_shapes=[pltpu.VMEM((Cout, H * W), jnp.float32)],
    )(x2d, w2d, cb3d, g2d, b2d, noise3d)
    return out.reshape(N, Cout, Hp, Wp)


def reference(x, conv_w, conv_b, bn_gamma, bn_beta, other):
    """Pure-JAX reference of the same semantics."""
    mean = jnp.mean(x, axis=(0, 2, 3), keepdims=True)
    var = jnp.mean(jnp.square(x - mean), axis=(0, 2, 3), keepdims=True)
    xn = (x - mean) / jnp.sqrt(var + EPS)
    xn = xn * bn_gamma.reshape(1, -1, 1, 1) + bn_beta.reshape(1, -1, 1, 1)
    y = jax.lax.conv_general_dilated(
        xn, conv_w, window_strides=(1, 1), padding=((1, 1), (1, 1)),
        dimension_numbers=("NCHW", "OIHW", "NCHW"))
    y = y + conv_b.reshape(1, -1, 1, 1)
    return y + other


if __name__ == "__main__":
    # Small shapes consistent with the module structure:
    # (N, Cin, H, W) -> Conv2d(Cin, Cout, 1, padding=1) -> (N, Cout, H+2, W+2)
    N, Cin, H, W, Cout = 1, 8, 16, 16, 16

    key = jax.random.PRNGKey(0)
    k1, k2, k3, k4 = jax.random.split(key, 4)
    x = jax.random.normal(k1, (N, Cin, H, W), dtype=jnp.float32)
    conv_w = jax.random.normal(k2, (Cout, Cin, 1, 1), dtype=jnp.float32) * 0.1
    conv_b = jax.random.normal(k3, (Cout,), dtype=jnp.float32) * 0.1
    bn_gamma = jnp.ones((Cin,), dtype=jnp.float32)   # PyTorch BatchNorm affine init
    bn_beta = jnp.zeros((Cin,), dtype=jnp.float32)
    # `other` in the PyTorch forward is torch.randn(v2.shape); deterministic here.
    other = jax.random.normal(k4, (N, Cout, H + 2, W + 2), dtype=jnp.float32)

    out = model_forward(x, conv_w, conv_b, bn_gamma, bn_beta, other)
    out = jax.block_until_ready(out)

    ref = reference(x, conv_w, conv_b, bn_gamma, bn_beta, other)
    assert out.shape == (N, Cout, H + 2, W + 2)
    assert jnp.allclose(out, ref, atol=1e-4, rtol=1e-4), "mismatch vs reference"

    print("KERNEL_OK")
</pallas_src>

<mosaic_0001>
module attributes {stable_mosaic.version = 11 : i64} {
  func.func @fused_bn_conv_pad_add_kernel(%arg0: i32, %arg1: memref<8x256xf32, #tpu.memory_space<vmem>>, %arg2: memref<16x8xf32, #tpu.memory_space<vmem>>, %arg3: memref<16x1x1xf32, #tpu.memory_space<vmem>>, %arg4: memref<8x1xf32, #tpu.memory_space<vmem>>, %arg5: memref<8x1xf32, #tpu.memory_space<vmem>>, %arg6: memref<16x18x18xf32, #tpu.memory_space<vmem>>, %arg7: memref<16x18x18xf32, #tpu.memory_space<vmem>>, %arg8: memref<16x256xf32, #tpu.memory_space<vmem>>) attributes {dimension_semantics = [#tpu.dimension_semantics<arbitrary>], iteration_bounds = array<i64: 1>, scalar_prefetch = 0 : i64, scratch_operands = 1 : i64, tpu.core_type = #tpu.core_type<tc>, window_params = [{pipeline_mode = #tpu.pipeline_mode<synchronous>, transform_indices = @transform_0, window_bounds = array<i64: 8, 256>}, {pipeline_mode = #tpu.pipeline_mode<synchronous>, transform_indices = @transform_1, window_bounds = array<i64: 16, 8>}, {pipeline_mode = #tpu.pipeline_mode<synchronous>, transform_indices = @transform_2, window_bounds = array<i64: 16, 1, 1>}, {pipeline_mode = #tpu.pipeline_mode<synchronous>, transform_indices = @transform_3, window_bounds = array<i64: 8, 1>}, {pipeline_mode = #tpu.pipeline_mode<synchronous>, transform_indices = @transform_4, window_bounds = array<i64: 8, 1>}, {pipeline_mode = #tpu.pipeline_mode<synchronous>, transform_indices = @transform_5, window_bounds = array<i64: 16, 18, 18>}, {pipeline_mode = #tpu.pipeline_mode<synchronous>, transform_indices = @transform_6, window_bounds = array<i64: 16, 18, 18>}]} {
    %c0 = arith.constant 0 : index
    %c0_0 = arith.constant 0 : index
    %0 = vector.load %arg1[%c0, %c0_0] : memref<8x256xf32, #tpu.memory_space<vmem>>, vector<8x256xf32>
    %cst = arith.constant dense<0.000000e+00> : vector<8xf32>
    %1 = vector.multi_reduction <add>, %0, %cst [1] : vector<8x256xf32> to vector<8xf32>
    %2 = vector.shape_cast %1 : vector<8xf32> to vector<8x1xf32>
    %cst_1 = arith.constant 2.560000e+02 : f32
    %3 = vector.broadcast %cst_1 : f32 to vector<8x1xf32>
    %4 = arith.divf %2, %3 : vector<8x1xf32>
    %5 = vector.broadcast %4 : vector<8x1xf32> to vector<8x256xf32>
    %6 = arith.subf %0, %5 : vector<8x256xf32>
    %7 = arith.mulf %6, %6 : vector<8x256xf32>
    %cst_2 = arith.constant dense<0.000000e+00> : vector<8xf32>
    %8 = vector.multi_reduction <add>, %7, %cst_2 [1] : vector<8x256xf32> to vector<8xf32>
    %9 = vector.shape_cast %8 : vector<8xf32> to vector<8x1xf32>
    %cst_3 = arith.constant 2.560000e+02 : f32
    %10 = vector.broadcast %cst_3 : f32 to vector<8x1xf32>
    %11 = arith.divf %9, %10 : vector<8x1xf32>
    %c0_4 = arith.constant 0 : index
    %c0_5 = arith.constant 0 : index
    %12 = vector.load %arg4[%c0_4, %c0_5] : memref<8x1xf32, #tpu.memory_space<vmem>>, vector<8x1xf32>
    %cst_6 = arith.constant 9.99999974E-6 : f32
    %13 = vector.broadcast %cst_6 : f32 to vector<8x1xf32>
    %14 = arith.addf %11, %13 : vector<8x1xf32>
    %15 = math.rsqrt %14 : vector<8x1xf32>
    %16 = arith.mulf %12, %15 : vector<8x1xf32>
    %c0_7 = arith.constant 0 : index
    %c0_8 = arith.constant 0 : index
    %17 = vector.load %arg5[%c0_7, %c0_8] : memref<8x1xf32, #tpu.memory_space<vmem>>, vector<8x1xf32>
    %18 = arith.mulf %4, %16 : vector<8x1xf32>
    %19 = arith.subf %17, %18 : vector<8x1xf32>
    %20 = vector.broadcast %16 : vector<8x1xf32> to vector<8x256xf32>
    %21 = arith.mulf %0, %20 : vector<8x256xf32>
    %22 = vector.broadcast %19 : vector<8x1xf32> to vector<8x256xf32>
    %23 = arith.addf %21, %22 : vector<8x256xf32>
    %c0_9 = arith.constant 0 : index
    %c0_10 = arith.constant 0 : index
    %24 = vector.load %arg2[%c0_9, %c0_10] : memref<16x8xf32, #tpu.memory_space<vmem>>, vector<16x8xf32>
    %cst_11 = arith.constant dense<0.000000e+00> : vector<16x256xf32>
    %25 = tpu.matmul %24, %23, %cst_11 {dimension_numbers = #tpu.dot_dimension_numbers<[1], [0], [0], [1], [0, 0, 1, 1], [], []>} : vector<16x8xf32>, vector<8x256xf32>, vector<16x256xf32> -> vector<16x256xf32>
    %c0_12 = arith.constant 0 : index
    %c0_13 = arith.constant 0 : index
    %26 = vector.load %arg8[%c0_12, %c0_13] : memref<16x256xf32, #tpu.memory_space<vmem>>, vector<16x256xf32>
    tpu.vector_store %arg8[%c0_12, %c0_13], %25 {strides = array<i32>} : memref<16x256xf32, #tpu.memory_space<vmem>>, vector<16x256xf32>,
    %c0_14 = arith.constant 0 : index
    %c0_15 = arith.constant 0 : index
    %c0_16 = arith.constant 0 : index
    %27 = vector.load %arg6[%c0_14, %c0_15, %c0_16] : memref<16x18x18xf32, #tpu.memory_space<vmem>>, vector<16x18x18xf32>
    %c0_17 = arith.constant 0 : index
    %c0_18 = arith.constant 0 : index
    %c0_19 = arith.constant 0 : index
    %28 = vector.load %arg3[%c0_17, %c0_18, %c0_19] : memref<16x1x1xf32, #tpu.memory_space<vmem>>, vector<16x1x1xf32>
    %29 = vector.broadcast %28 : vector<16x1x1xf32> to vector<16x18x18xf32>
    %30 = arith.addf %27, %29 : vector<16x18x18xf32>
    %c0_20 = arith.constant 0 : index
    %c0_21 = arith.constant 0 : index
    %c0_22 = arith.constant 0 : index
    %31 = vector.load %arg7[%c0_20, %c0_21, %c0_22] : memref<16x18x18xf32, #tpu.memory_space<vmem>>, vector<16x18x18xf32>
    tpu.vector_store %arg7[%c0_20, %c0_21, %c0_22], %30 {strides = array<i32>} : memref<16x18x18xf32, #tpu.memory_space<vmem>>, vector<16x18x18xf32>,
    %c0_23 = arith.constant 0 : index
    %c1 = arith.constant 1 : index
    %c1_24 = arith.constant 1 : index
    %32 = vector.load %arg7[%c0_23, %c1, %c1_24] : memref<16x18x18xf32, #tpu.memory_space<vmem>>, vector<16x1x16xf32>
    %33 = vector.shape_cast %32 : vector<16x1x16xf32> to vector<16x16xf32>
    %c0_25 = arith.constant 0 : index
    %c0_26 = arith.constant 0 : index
    %34 = vector.load %arg8[%c0_25, %c0_26] : memref<16x256xf32, #tpu.memory_space<vmem>>, vector<16x16xf32>
    %35 = arith.addf %33, %34 : vector<16x16xf32>
    %c0_27 = arith.constant 0 : index
    %c1_28 = arith.constant 1 : index
    %c1_29 = arith.constant 1 : index
    %36 = vector.load %arg7[%c0_27, %c1_28, %c1_29] : memref<16x18x18xf32, #tpu.memory_space<vmem>>, vector<16x1x16xf32>
    %37 = vector.shape_cast %36 : vector<16x1x16xf32> to vector<16x16xf32>
    %38 = vector.shape_cast %35 : vector<16x16xf32> to vector<16x1x16xf32>
    tpu.vector_store %arg7[%c0_27, %c1_28, %c1_29], %38 {strides = array<i32>} : memref<16x18x18xf32, #tpu.memory_space<vmem>>, vector<16x1x16xf32>,
    %c0_30 = arith.constant 0 : index
    %c2 = arith.constant 2 : index
    %c1_31 = arith.constant 1 : index
    %39 = vector.load %arg7[%c0_30, %c2, %c1_31] : memref<16x18x18xf32, #tpu.memory_space<vmem>>, vector<16x1x16xf32>
    %40 = vector.shape_cast %39 : vector<16x1x16xf32> to vector<16x16xf32>
    %c0_32 = arith.constant 0 : index
    %c16 = arith.constant 16 : index
    %41 = vector.load %arg8[%c0_32, %c16] : memref<16x256xf32, #tpu.memory_space<vmem>>, vector<16x16xf32>
    %42 = arith.addf %40, %41 : vector<16x16xf32>
    %c0_33 = arith.constant 0 : index
    %c2_34 = arith.constant 2 : index
    %c1_35 = arith.constant 1 : index
    %43 = vector.load %arg7[%c0_33, %c2_34, %c1_35] : memref<16x18x18xf32, #tpu.memory_space<vmem>>, vector<16x1x16xf32>
    %44 = vector.shape_cast %43 : vector<16x1x16xf32> to vector<16x16xf32>
    %45 = vector.shape_cast %42 : vector<16x16xf32> to vector<16x1x16xf32>
    tpu.vector_store %arg7[%c0_33, %c2_34, %c1_35], %45 {strides = array<i32>} : memref<16x18x18xf32, #tpu.memory_space<vmem>>, vector<16x1x16xf32>,
    %c0_36 = arith.constant 0 : index
    %c3 = arith.constant 3 : index
    %c1_37 = arith.constant 1 : index
    %46 = vector.load %arg7[%c0_36, %c3, %c1_37] : memref<16x18x18xf32, #tpu.memory_space<vmem>>, vector<16x1x16xf32>
    %47 = vector.shape_cast %46 : vector<16x1x16xf32> to vector<16x16xf32>
    %c0_38 = arith.constant 0 : index
    %c32 = arith.constant 32 : index
    %48 = vector.load %arg8[%c0_38, %c32] : memref<16x256xf32, #tpu.memory_space<vmem>>, vector<16x16xf32>
    %49 = arith.addf %47, %48 : vector<16x16xf32>
    %c0_39 = arith.constant 0 : index
    %c3_40 = arith.constant 3 : index
    %c1_41 = arith.constant 1 : index
    %50 = vector.load %arg7[%c0_39, %c3_40, %c1_41] : memref<16x18x18xf32, #tpu.memory_space<vmem>>, vector<16x1x16xf32>
    %51 = vector.shape_cast %50 : vector<16x1x16xf32> to vector<16x16xf32>
    %52 = vector.shape_cast %49 : vector<16x16xf32> to vector<16x1x16xf32>
    tpu.vector_store %arg7[%c0_39, %c3_40, %c1_41], %52 {strides = array<i32>} : memref<16x18x18xf32, #tpu.memory_space<vmem>>, vector<16x1x16xf32>,
    %c0_42 = arith.constant 0 : index
    %c4 = arith.constant 4 : index
    %c1_43 = arith.constant 1 : index
    %53 = vector.load %arg7[%c0_42, %c4, %c1_43] : memref<16x18x18xf32, #tpu.memory_space<vmem>>, vector<16x1x16xf32>
    %54 = vector.shape_cast %53 : vector<16x1x16xf32> to vector<16x16xf32>
    %c0_44 = arith.constant 0 : index
    %c48 = arith.constant 48 : index
    %55 = vector.load %arg8[%c0_44, %c48] : memref<16x256xf32, #tpu.memory_space<vmem>>, vector<16x16xf32>
    %56 = arith.addf %54, %55 : vector<16x16xf32>
    %c0_45 = arith.constant 0 : index
    %c4_46 = arith.constant 4 : index
    %c1_47 = arith.constant 1 : index
    %57 = vector.load %arg7[%c0_45, %c4_46, %c1_47] : memref<16x18x18xf32, #tpu.memory_space<vmem>>, vector<16x1x16xf32>
    %58 = vector.shape_cast %57 : vector<16x1x16xf32> to vector<16x16xf32>
    %59 = vector.shape_cast %56 : vector<16x16xf32> to vector<16x1x16xf32>
    tpu.vector_store %arg7[%c0_45, %c4_46, %c1_47], %59 {strides = array<i32>} : memref<16x18x18xf32, #tpu.memory_space<vmem>>, vector<16x1x16xf32>,
    %c0_48 = arith.constant 0 : index
    %c5 = arith.constant 5 : index
    %c1_49 = arith.constant 1 : index
    %60 = vector.load %arg7[%c0_48, %c5, %c1_49] : memref<16x18x18xf32, #tpu.memory_space<vmem>>, vector<16x1x16xf32>
    %61 = vector.shape_cast %60 : vector<16x1x16xf32> to vector<16x16xf32>
    %c0_50 = arith.constant 0 : index
    %c64 = arith.constant 64 : index
    %62 = vector.load %arg8[%c0_50, %c64] : memref<16x256xf32, #tpu.memory_space<vmem>>, vector<16x16xf32>
    %63 = arith.addf %61, %62 : vector<16x16xf32>
    %c0_51 = arith.constant 0 : index
    %c5_52 = arith.constant 5 : index
    %c1_53 = arith.constant 1 : index
    %64 = vector.load %arg7[%c0_51, %c5_52, %c1_53] : memref<16x18x18xf32, #tpu.memory_space<vmem>>, vector<16x1x16xf32>
    %65 = vector.shape_cast %64 : vector<16x1x16xf32> to vector<16x16xf32>
    %66 = vector.shape_cast %63 : vector<16x16xf32> to vector<16x1x16xf32>
    tpu.vector_store %arg7[%c0_51, %c5_52, %c1_53], %66 {strides = array<i32>} : memref<16x18x18xf32, #tpu.memory_space<vmem>>, vector<16x1x16xf32>,
    %c0_54 = arith.constant 0 : index
    %c6 = arith.constant 6 : index
    %c1_55 = arith.constant 1 : index
    %67 = vector.load %arg7[%c0_54, %c6, %c1_55] : memref<16x18x18xf32, #tpu.memory_space<vmem>>, vector<16x1x16xf32>
    %68 = vector.shape_cast %67 : vector<16x1x16xf32> to vector<16x16xf32>
    %c0_56 = arith.constant 0 : index
    %c80 = arith.constant 80 : index
    %69 = vector.load %arg8[%c0_56, %c80] : memref<16x256xf32, #tpu.memory_space<vmem>>, vector<16x16xf32>
    %70 = arith.addf %68, %69 : vector<16x16xf32>
    %c0_57 = arith.constant 0 : index
    %c6_58 = arith.constant 6 : index
    %c1_59 = arith.constant 1 : index
    %71 = vector.load %arg7[%c0_57, %c6_58, %c1_59] : memref<16x18x18xf32, #tpu.memory_space<vmem>>, vector<16x1x16xf32>
    %72 = vector.shape_cast %71 : vector<16x1x16xf32> to vector<16x16xf32>
    %73 = vector.shape_cast %70 : vector<16x16xf32> to vector<16x1x16xf32>
    tpu.vector_store %arg7[%c0_57, %c6_58, %c1_59], %73 {strides = array<i32>} : memref<16x18x18xf32, #tpu.memory_space<vmem>>, vector<16x1x16xf32>,
    %c0_60 = arith.constant 0 : index
    %c7 = arith.constant 7 : index
    %c1_61 = arith.constant 1 : index
    %74 = vector.load %arg7[%c0_60, %c7, %c1_61] : memref<16x18x18xf32, #tpu.memory_space<vmem>>, vector<16x1x16xf32>
    %75 = vector.shape_cast %74 : vector<16x1x16xf32> to vector<16x16xf32>
    %c0_62 = arith.constant 0 : index
    %c96 = arith.constant 96 : index
    %76 = vector.load %arg8[%c0_62, %c96] : memref<16x256xf32, #tpu.memory_space<vmem>>, vector<16x16xf32>
    %77 = arith.addf %75, %76 : vector<16x16xf32>
    %c0_63 = arith.constant 0 : index
    %c7_64 = arith.constant 7 : index
    %c1_65 = arith.constant 1 : index
    %78 = vector.load %arg7[%c0_63, %c7_64, %c1_65] : memref<16x18x18xf32, #tpu.memory_space<vmem>>, vector<16x1x16xf32>
    %79 = vector.shape_cast %78 : vector<16x1x16xf32> to vector<16x16xf32>
    %80 = vector.shape_cast %77 : vector<16x16xf32> to vector<16x1x16xf32>
    tpu.vector_store %arg7[%c0_63, %c7_64, %c1_65], %80 {strides = array<i32>} : memref<16x18x18xf32, #tpu.memory_space<vmem>>, vector<16x1x16xf32>,
    %c0_66 = arith.constant 0 : index
    %c8 = arith.constant 8 : index
    %c1_67 = arith.constant 1 : index
    %81 = vector.load %arg7[%c0_66, %c8, %c1_67] : memref<16x18x18xf32, #tpu.memory_space<vmem>>, vector<16x1x16xf32>
    %82 = vector.shape_cast %81 : vector<16x1x16xf32> to vector<16x16xf32>
    %c0_68 = arith.constant 0 : index
    %c112 = arith.constant 112 : index
    %83 = vector.load %arg8[%c0_68, %c112] : memref<16x256xf32, #tpu.memory_space<vmem>>, vector<16x16xf32>
    %84 = arith.addf %82, %83 : vector<16x16xf32>
    %c0_69 = arith.constant 0 : index
    %c8_70 = arith.constant 8 : index
    %c1_71 = arith.constant 1 : index
    %85 = vector.load %arg7[%c0_69, %c8_70, %c1_71] : memref<16x18x18xf32, #tpu.memory_space<vmem>>, vector<16x1x16xf32>
    %86 = vector.shape_cast %85 : vector<16x1x16xf32> to vector<16x16xf32>
    %87 = vector.shape_cast %84 : vector<16x16xf32> to vector<16x1x16xf32>
    tpu.vector_store %arg7[%c0_69, %c8_70, %c1_71], %87 {strides = array<i32>} : memref<16x18x18xf32, #tpu.memory_space<vmem>>, vector<16x1x16xf32>,
    %c0_72 = arith.constant 0 : index
    %c9 = arith.constant 9 : index
    %c1_73 = arith.constant 1 : index
    %88 = vector.load %arg7[%c0_72, %c9, %c1_73] : memref<16x18x18xf32, #tpu.memory_space<vmem>>, vector<16x1x16xf32>
    %89 = vector.shape_cast %88 : vector<16x1x16xf32> to vector<16x16xf32>
    %c0_74 = arith.constant 0 : index
    %c128 = arith.constant 128 : index
    %90 = vector.load %arg8[%c0_74, %c128] : memref<16x256xf32, #tpu.memory_space<vmem>>, vector<16x16xf32>
    %91 = arith.addf %89, %90 : vector<16x16xf32>
    %c0_75 = arith.constant 0 : index
    %c9_76 = arith.constant 9 : index
    %c1_77 = arith.constant 1 : index
    %92 = vector.load %arg7[%c0_75, %c9_76, %c1_77] : memref<16x18x18xf32, #tpu.memory_space<vmem>>, vector<16x1x16xf32>
    %93 = vector.shape_cast %92 : vector<16x1x16xf32> to vector<16x16xf32>
    %94 = vector.shape_cast %91 : vector<16x16xf32> to vector<16x1x16xf32>
    tpu.vector_store %arg7[%c0_75, %c9_76, %c1_77], %94 {strides = array<i32>} : memref<16x18x18xf32, #tpu.memory_space<vmem>>, vector<16x1x16xf32>,
    %c0_78 = arith.constant 0 : index
    %c10 = arith.constant 10 : index
    %c1_79 = arith.constant 1 : index
    %95 = vector.load %arg7[%c0_78, %c10, %c1_79] : memref<16x18x18xf32, #tpu.memory_space<vmem>>, vector<16x1x16xf32>
    %96 = vector.shape_cast %95 : vector<16x1x16xf32> to vector<16x16xf32>
    %c0_80 = arith.constant 0 : index
    %c144 = arith.constant 144 : index
    %97 = vector.load %arg8[%c0_80, %c144] : memref<16x256xf32, #tpu.memory_space<vmem>>, vector<16x16xf32>
    %98 = arith.addf %96, %97 : vector<16x16xf32>
    %c0_81 = arith.constant 0 : index
    %c10_82 = arith.constant 10 : index
    %c1_83 = arith.constant 1 : index
    %99 = vector.load %arg7[%c0_81, %c10_82, %c1_83] : memref<16x18x18xf32, #tpu.memory_space<vmem>>, vector<16x1x16xf32>
    %100 = vector.shape_cast %99 : vector<16x1x16xf32> to vector<16x16xf32>
    %101 = vector.shape_cast %98 : vector<16x16xf32> to vector<16x1x16xf32>
    tpu.vector_store %arg7[%c0_81, %c10_82, %c1_83], %101 {strides = array<i32>} : memref<16x18x18xf32, #tpu.memory_space<vmem>>, vector<16x1x16xf32>,
    %c0_84 = arith.constant 0 : index
    %c11 = arith.constant 11 : index
    %c1_85 = arith.constant 1 : index
    %102 = vector.load %arg7[%c0_84, %c11, %c1_85] : memref<16x18x18xf32, #tpu.memory_space<vmem>>, vector<16x1x16xf32>
    %103 = vector.shape_cast %102 : vector<16x1x16xf32> to vector<16x16xf32>
    %c0_86 = arith.constant 0 : index
    %c160 = arith.constant 160 : index
    %104 = vector.load %arg8[%c0_86, %c160] : memref<16x256xf32, #tpu.memory_space<vmem>>, vector<16x16xf32>
    %105 = arith.addf %103, %104 : vector<16x16xf32>
    %c0_87 = arith.constant 0 : index
    %c11_88 = arith.constant 11 : index
    %c1_89 = arith.constant 1 : index
    %106 = vector.load %arg7[%c0_87, %c11_88, %c1_89] : memref<16x18x18xf32, #tpu.memory_space<vmem>>, vector<16x1x16xf32>
    %107 = vector.shape_cast %106 : vector<16x1x16xf32> to vector<16x16xf32>
    %108 = vector.shape_cast %105 : vector<16x16xf32> to vector<16x1x16xf32>
    tpu.vector_store %arg7[%c0_87, %c11_88, %c1_89], %108 {strides = array<i32>} : memref<16x18x18xf32, #tpu.memory_space<vmem>>, vector<16x1x16xf32>,
    %c0_90 = arith.constant 0 : index
    %c12 = arith.constant 12 : index
    %c1_91 = arith.constant 1 : index
    %109 = vector.load %arg7[%c0_90, %c12, %c1_91] : memref<16x18x18xf32, #tpu.memory_space<vmem>>, vector<16x1x16xf32>
    %110 = vector.shape_cast %109 : vector<16x1x16xf32> to vector<16x16xf32>
    %c0_92 = arith.constant 0 : index
    %c176 = arith.constant 176 : index
    %111 = vector.load %arg8[%c0_92, %c176] : memref<16x256xf32, #tpu.memory_space<vmem>>, vector<16x16xf32>
    %112 = arith.addf %110, %111 : vector<16x16xf32>
    %c0_93 = arith.constant 0 : index
    %c12_94 = arith.constant 12 : index
    %c1_95 = arith.constant 1 : index
    %113 = vector.load %arg7[%c0_93, %c12_94, %c1_95] : memref<16x18x18xf32, #tpu.memory_space<vmem>>, vector<16x1x16xf32>
    %114 = vector.shape_cast %113 : vector<16x1x16xf32> to vector<16x16xf32>
    %115 = vector.shape_cast %112 : vector<16x16xf32> to vector<16x1x16xf32>
    tpu.vector_store %arg7[%c0_93, %c12_94, %c1_95], %115 {strides = array<i32>} : memref<16x18x18xf32, #tpu.memory_space<vmem>>, vector<16x1x16xf32>,
    %c0_96 = arith.constant 0 : index
    %c13 = arith.constant 13 : index
    %c1_97 = arith.constant 1 : index
    %116 = vector.load %arg7[%c0_96, %c13, %c1_97] : memref<16x18x18xf32, #tpu.memory_space<vmem>>, vector<16x1x16xf32>
    %117 = vector.shape_cast %116 : vector<16x1x16xf32> to vector<16x16xf32>
    %c0_98 = arith.constant 0 : index
    %c192 = arith.constant 192 : index
    %118 = vector.load %arg8[%c0_98, %c192] : memref<16x256xf32, #tpu.memory_space<vmem>>, vector<16x16xf32>
    %119 = arith.addf %117, %118 : vector<16x16xf32>
    %c0_99 = arith.constant 0 : index
    %c13_100 = arith.constant 13 : index
    %c1_101 = arith.constant 1 : index
    %120 = vector.load %arg7[%c0_99, %c13_100, %c1_101] : memref<16x18x18xf32, #tpu.memory_space<vmem>>, vector<16x1x16xf32>
    %121 = vector.shape_cast %120 : vector<16x1x16xf32> to vector<16x16xf32>
    %122 = vector.shape_cast %119 : vector<16x16xf32> to vector<16x1x16xf32>
    tpu.vector_store %arg7[%c0_99, %c13_100, %c1_101], %122 {strides = array<i32>} : memref<16x18x18xf32, #tpu.memory_space<vmem>>, vector<16x1x16xf32>,
    %c0_102 = arith.constant 0 : index
    %c14 = arith.constant 14 : index
    %c1_103 = arith.constant 1 : index
    %123 = vector.load %arg7[%c0_102, %c14, %c1_103] : memref<16x18x18xf32, #tpu.memory_space<vmem>>, vector<16x1x16xf32>
    %124 = vector.shape_cast %123 : vector<16x1x16xf32> to vector<16x16xf32>
    %c0_104 = arith.constant 0 : index
    %c208 = arith.constant 208 : index
    %125 = vector.load %arg8[%c0_104, %c208] : memref<16x256xf32, #tpu.memory_space<vmem>>, vector<16x16xf32>
    %126 = arith.addf %124, %125 : vector<16x16xf32>
    %c0_105 = arith.constant 0 : index
    %c14_106 = arith.constant 14 : index
    %c1_107 = arith.constant 1 : index
    %127 = vector.load %arg7[%c0_105, %c14_106, %c1_107] : memref<16x18x18xf32, #tpu.memory_space<vmem>>, vector<16x1x16xf32>
    %128 = vector.shape_cast %127 : vector<16x1x16xf32> to vector<16x16xf32>
    %129 = vector.shape_cast %126 : vector<16x16xf32> to vector<16x1x16xf32>
    tpu.vector_store %arg7[%c0_105, %c14_106, %c1_107], %129 {strides = array<i32>} : memref<16x18x18xf32, #tpu.memory_space<vmem>>, vector<16x1x16xf32>,
    %c0_108 = arith.constant 0 : index
    %c15 = arith.constant 15 : index
    %c1_109 = arith.constant 1 : index
    %130 = vector.load %arg7[%c0_108, %c15, %c1_109] : memref<16x18x18xf32, #tpu.memory_space<vmem>>, vector<16x1x16xf32>
    %131 = vector.shape_cast %130 : vector<16x1x16xf32> to vector<16x16xf32>
    %c0_110 = arith.constant 0 : index
    %c224 = arith.constant 224 : index
    %132 = vector.load %arg8[%c0_110, %c224] : memref<16x256xf32, #tpu.memory_space<vmem>>, vector<16x16xf32>
    %133 = arith.addf %131, %132 : vector<16x16xf32>
    %c0_111 = arith.constant 0 : index
    %c15_112 = arith.constant 15 : index
    %c1_113 = arith.constant 1 : index
    %134 = vector.load %arg7[%c0_111, %c15_112, %c1_113] : memref<16x18x18xf32, #tpu.memory_space<vmem>>, vector<16x1x16xf32>
    %135 = vector.shape_cast %134 : vector<16x1x16xf32> to vector<16x16xf32>
    %136 = vector.shape_cast %133 : vector<16x16xf32> to vector<16x1x16xf32>
    tpu.vector_store %arg7[%c0_111, %c15_112, %c1_113], %136 {strides = array<i32>} : memref<16x18x18xf32, #tpu.memory_space<vmem>>, vector<16x1x16xf32>,
    %c0_114 = arith.constant 0 : index
    %c16_115 = arith.constant 16 : index
    %c1_116 = arith.constant 1 : index
    %137 = vector.load %arg7[%c0_114, %c16_115, %c1_116] : memref<16x18x18xf32, #tpu.memory_space<vmem>>, vector<16x1x16xf32>
    %138 = vector.shape_cast %137 : vector<16x1x16xf32> to vector<16x16xf32>
    %c0_117 = arith.constant 0 : index
    %c240 = arith.constant 240 : index
    %139 = vector.load %arg8[%c0_117, %c240] : memref<16x256xf32, #tpu.memory_space<vmem>>, vector<16x16xf32>
    %140 = arith.addf %138, %139 : vector<16x16xf32>
    %c0_118 = arith.constant 0 : index
    %c16_119 = arith.constant 16 : index
    %c1_120 = arith.constant 1 : index
    %141 = vector.load %arg7[%c0_118, %c16_119, %c1_120] : memref<16x18x18xf32, #tpu.memory_space<vmem>>, vector<16x1x16xf32>
    %142 = vector.shape_cast %141 : vector<16x1x16xf32> to vector<16x16xf32>
    %143 = vector.shape_cast %140 : vector<16x16xf32> to vector<16x1x16xf32>
    tpu.vector_store %arg7[%c0_118, %c16_119, %c1_120], %143 {strides = array<i32>} : memref<16x18x18xf32, #tpu.memory_space<vmem>>, vector<16x1x16xf32>,
    return
  }
  func.func @transform_0(%arg0: i32) -> (i32, i32) {
    %c0_i32 = arith.constant 0 : i32
    %c0_i32_0 = arith.constant 0 : i32
    %c0_i32_1 = arith.constant 0 : i32
    return %c0_i32, %c0_i32_0 : i32, i32
  }
  func.func @transform_1(%arg0: i32) -> (i32, i32) {
    %c0_i32 = arith.constant 0 : i32
    %c0_i32_0 = arith.constant 0 : i32
    %c0_i32_1 = arith.constant 0 : i32
    return %c0_i32, %c0_i32_0 : i32, i32
  }
  func.func @transform_2(%arg0: i32) -> (i32, i32, i32) {
    %c0_i32 = arith.constant 0 : i32
    %c0_i32_0 = arith.constant 0 : i32
    %c0_i32_1 = arith.constant 0 : i32
    %c0_i32_2 = arith.constant 0 : i32
    return %c0_i32, %c0_i32_0, %c0_i32_1 : i32, i32, i32
  }
  func.func @transform_3(%arg0: i32) -> (i32, i32) {
    %c0_i32 = arith.constant 0 : i32
    %c0_i32_0 = arith.constant 0 : i32
    %c0_i32_1 = arith.constant 0 : i32
    return %c0_i32, %c0_i32_0 : i32, i32
  }
  func.func @transform_4(%arg0: i32) -> (i32, i32) {
    %c0_i32 = arith.constant 0 : i32
    %c0_i32_0 = arith.constant 0 : i32
    %c0_i32_1 = arith.constant 0 : i32
    return %c0_i32, %c0_i32_0 : i32, i32
  }
  func.func @transform_5(%arg0: i32) -> (i32, i32, i32) {
    %c0_i32 = arith.constant 0 : i32
    %c0_i32_0 = arith.constant 0 : i32
    %c0_i32_1 = arith.constant 0 : i32
    %c0_i32_2 = arith.constant 0 : i32
    return %c0_i32, %c0_i32_0, %c0_i32_1 : i32, i32, i32
  }
  func.func @transform_6(%arg0: i32) -> (i32, i32, i32) {
    %c0_i32 = arith.constant 0 : i32
    %c0_i32_0 = arith.constant 0 : i32
    %c0_i32_1 = arith.constant 0 : i32
    %c0_i32_2 = arith.constant 0 : i32
    return %c0_i32, %c0_i32_0, %c0_i32_1 : i32, i32, i32
  }
}

</mosaic_0001>

<bundles_post_ra>
// kernel: tpu_custom_call.1
= control target key start
LH: loop header
LB: loop body
LE: loop exit
PB: predicated region body
PF: predicated region fallthrough
CT: control target
= control target key end

     0   :  { %v2318_v2 = vmov 0   ;;  %vm405_vm0 = vcmask 146432   ;;  %vm408_vm1 = vcmask 140288   ;;  %vm61_vm2 = vcmask 64512   ;;  %s2320_s21 = smov 1   ;;  %s2322_s22 = smov 97   ;;  %s5176_s0 = inlined_call_operand.vmem [shape: f32[8,256], index: 0, kind: input, shape index: {}]   ;;  %s5177_s2 = inlined_call_operand.vmem [shape: f32[16,1,1], index: 2, kind: input, shape index: {}]   ;;  %s5178_s5 = inlined_call_operand.vmem [shape: f32[16,18,18], index: 5, kind: input, shape index: {}]   ;;  %s5179_s6 = inlined_call_operand.vmem [shape: f32[16,18,18], index: 6, kind: output, shape index: {}]   ;;  %s5180_s3 = inlined_call_operand.vmem [shape: f32[8,1], index: 3, kind: input, shape index: {}]   ;;  %s5181_s4 = inlined_call_operand.vmem [shape: f32[8,1], index: 4, kind: input, shape index: {}]   ;;  %s5182_s1 = inlined_call_operand.vmem [shape: f32[16,8], index: 1, kind: input, shape index: {}]  }
   0x1   :  { %v2366_v0 = vld [vmem:[%s5176_s0] sm:$0xff]  ;;  %v2371_v1 = vld [vmem:[%s5176_s0 + $0x8] sm:$0xff]  ;;  %2314 = vset.pattern.permute.xlu0 %v2318_v2  ;;  %2315 = vset.pattern.permute.xlu1 %v2318_v2  ;;  %v151_v28 = vld [vmem:[%s5178_s5 + $0x10] sm:$0x3]  ;;  %s2323_s23 = smov 81   ;;  %s2324_s24 = smov 65  }
   0x2   :  { %v25_v3 = vadd.f32 %v2371_v1, %v2366_v0  ;;  %v2286_v4 = vld [vmem:[%s5177_s2] ss:$0 sm:$0xff]  ;;  %v2287_v5 = vld [vmem:[%s5177_s2 + $0x1] ss:$0 sm:$0xff]  ;;  %v2298_v6 = vld [vmem:[%s5177_s2 + $0xc] ss:$0 sm:$0xff] }
   0x3   :  { %298 = vperm.xlu1 %2315, %v2287_v5   ;;  %v2288_v7 = vld [vmem:[%s5177_s2 + $0x2] ss:$0 sm:$0xff]  ;;  %v2300_v8 = vld [vmem:[%s5177_s2 + $0xe] ss:$0 sm:$0xff]  ;;  %v2289_v9 = vld [vmem:[%s5177_s2 + $0x3] ss:$0 sm:$0xff] }
   0x4   :  { %26 = vadd.xlane.f32.xlu0 %v25_v3  ;;  %v2290_v10 = vld [vmem:[%s5177_s2 + $0x4] ss:$0 sm:$0xff]  ;;  %v2291_v11 = vld [vmem:[%s5177_s2 + $0x5] ss:$0 sm:$0xff]  ;;  %v2292_v12 = vld [vmem:[%s5177_s2 + $0x6] ss:$0 sm:$0xff] }
   0x5   :  { %v2293_v13 = vld [vmem:[%s5177_s2 + $0x7] ss:$0 sm:$0xff]  ;;  %v2294_v14 = vld [vmem:[%s5177_s2 + $0x8] ss:$0 sm:$0xff]  ;;  %v2295_v15 = vld [vmem:[%s5177_s2 + $0x9] ss:$0 sm:$0xff] }
   0x6   :  { %v2296_v16 = vld [vmem:[%s5177_s2 + $0xa] ss:$0 sm:$0xff]  ;;  %v2297_v17 = vld [vmem:[%s5177_s2 + $0xb] ss:$0 sm:$0xff]  ;;  %v2299_v18 = vld [vmem:[%s5177_s2 + $0xd] ss:$0 sm:$0xff] }
   0x7   :  { %302 = vperm.xlu1 %2315, %v2288_v7   ;;  %v2301_v19 = vld [vmem:[%s5177_s2 + $0xf] ss:$0 sm:$0xff]  ;;  %v149_v26 = vld [vmem:[%s5178_s5] sm:$0xff]  ;;  %v187_v36 = vld [vmem:[%s5178_s5 + $0x130] sm:$0x3]  ;;  %s2325_s25 = smov 49  }
   0x8   :  { %v150_v27 = vld [vmem:[%s5178_s5 + $0x8] sm:$0xff]  ;;  %v185_v34 = vld [vmem:[%s5178_s5 + $0x120] sm:$0xff]  ;;  %v191_v41 = vld [vmem:[%s5178_s5 + $0x150] sm:$0xff]  ;;  %s2326_s26 = smov 33   ;;  %s2327_s27 = smov 17   ;;  %vm553_vm3 = vcmask 131080  }
   0x9   :  { %v186_v35 = vld [vmem:[%s5178_s5 + $0x128] sm:$0xff]  ;;  %v192_v42 = vld [vmem:[%s5178_s5 + $0x158] sm:$0xff]  ;;  %v193_v43 = vld [vmem:[%s5178_s5 + $0x160] sm:$0x3] }
   0xa   :  { %v152_v48 = vld [vmem:[%s5178_s5 + $0x18] sm:$0xff]  ;;  %v153_v49 = vld [vmem:[%s5178_s5 + $0x20] sm:$0xff]  ;;  %v154_v50 = vld [vmem:[%s5178_s5 + $0x28] sm:$0x3] }
   0xb   :  { %306 = vperm.xlu1 %2315, %v2289_v9   ;;  %v155_v55 = vld [vmem:[%s5178_s5 + $0x30] sm:$0xff]  ;;  %v156_v56 = vld [vmem:[%s5178_s5 + $0x38] sm:$0xff]  ;;  %v157_v57 = vld [vmem:[%s5178_s5 + $0x40] sm:$0x3] }
   0xc   :  { %v158_v62 = vld [vmem:[%s5178_s5 + $0x48] sm:$0xff]  ;;  %v159_v63 = vld [vmem:[%s5178_s5 + $0x50] sm:$0xff]  ;;  %v160_v2 = vld [vmem:[%s5178_s5 + $0x58] sm:$0x3] }
   0xd   :  { %v161_v7 = vld [vmem:[%s5178_s5 + $0x60] sm:$0xff]  ;;  %v163_v9 = vld [vmem:[%s5178_s5 + $0x70] sm:$0x3] }
   0xf   :  { %310 = vperm.xlu1 %2315, %v2290_v10  }
  0x13   :  { %314 = vperm.xlu1 %2315, %v2291_v11  }
  0x17   :  { %318 = vperm.xlu1 %2315, %v2292_v12  }
  0x1a   :  { %294 = vperm.xlu0 %2314, %v2286_v4  }
  0x1b   :  { %322 = vperm.xlu1 %2315, %v2293_v13  }
  0x1e   :  { %342 = vperm.xlu0 %2314, %v2298_v6  }
  0x1f   :  { %326 = vperm.xlu1 %2315, %v2294_v14   ;;  %v164_v14 = vld [vmem:[%s5178_s5 + $0x78] sm:$0xff] }
  0x22   :  { %350 = vperm.xlu0 %2314, %v2300_v8   ;;  %v162_v8 = vld [vmem:[%s5178_s5 + $0x68] sm:$0xff] }
  0x23   :  { %330 = vperm.xlu1 %2315, %v2295_v15   ;;  %v165_v15 = vld [vmem:[%s5178_s5 + $0x80] sm:$0xff] }
  0x27   :  { %334 = vperm.xlu1 %2315, %v2296_v16   ;;  %v166_v16 = vld [vmem:[%s5178_s5 + $0x88] sm:$0x3] }
  0x2b   :  { %338 = vperm.xlu1 %2315, %v2297_v17  }
  0x2f   :  { %346 = vperm.xlu1 %2315, %v2299_v18  }
  0x33   :  { %354 = vperm.xlu1 %2315, %v2301_v19  }
  0x82   :  { %v299_v51 = vpop.permute.xlu1 %298 }
  0x83   :  { %v360_v52 = vadd.f32 %v299_v51, %v152_v48  ;;  %v361_v53 = vadd.f32 %v299_v51, %v153_v49  ;;  %v362_v54 = vadd.f32 %v299_v51, %v154_v50  ;;  %v179_v50 = vld [vmem:[%s5178_s5 + $0xf0] sm:$0xff]  ;;  %v180_v51 = vld [vmem:[%s5178_s5 + $0xf8] sm:$0xff] }
  0x85   :  { %410 = vst.msk [vmem:[%s5179_s6 + $0x18] sm:$0xff] %vm405_vm0, %v360_v52  ;;  %411 = vst.msk [vmem:[%s5179_s6 + $0x20] sm:$0xff] %vm405_vm0, %v361_v53  ;;  %v181_v52 = vld [vmem:[%s5178_s5 + $0x100] sm:$0x3] }
  0x86   :  { %412 = vst.msk [vmem:[%s5179_s6 + $0x28] sm:$0x3] %vm408_vm1, %v362_v54  ;;  %v303_v58 = vpop.permute.xlu1 %302 }
  0x87   :  { %v363_v59 = vadd.f32 %v303_v58, %v155_v55  ;;  %v364_v60 = vadd.f32 %v303_v58, %v156_v56  ;;  %v365_v61 = vadd.f32 %v303_v58, %v157_v57  ;;  %v182_v57 = vld [vmem:[%s5178_s5 + $0x108] sm:$0xff]  ;;  %v183_v58 = vld [vmem:[%s5178_s5 + $0x110] sm:$0xff] }
  0x89   :  { %413 = vst.msk [vmem:[%s5179_s6 + $0x30] sm:$0xff] %vm405_vm0, %v363_v59  ;;  %414 = vst.msk [vmem:[%s5179_s6 + $0x38] sm:$0xff] %vm405_vm0, %v364_v60  ;;  %v184_v59 = vld [vmem:[%s5178_s5 + $0x118] sm:$0x3] }
  0x8a   :  { %415 = vst.msk [vmem:[%s5179_s6 + $0x40] sm:$0x3] %vm408_vm1, %v365_v61  ;;  %v307_v3 = vpop.permute.xlu1 %306 }
  0x8b   :  { %v366_v4 = vadd.f32 %v307_v3, %v158_v62  ;;  %v367_v5 = vadd.f32 %v307_v3, %v159_v63  ;;  %v368_v6 = vadd.f32 %v307_v3, %v160_v2  ;;  %v188_v2 = vld [vmem:[%s5178_s5 + $0x138] sm:$0xff]  ;;  %v189_v3 = vld [vmem:[%s5178_s5 + $0x140] sm:$0xff] }
  0x8d   :  { %416 = vst.msk [vmem:[%s5179_s6 + $0x48] sm:$0xff] %vm405_vm0, %v366_v4  ;;  %417 = vst.msk [vmem:[%s5179_s6 + $0x50] sm:$0xff] %vm405_vm0, %v367_v5  ;;  %v190_v4 = vld [vmem:[%s5178_s5 + $0x148] sm:$0x3] }
  0x8e   :  { %418 = vst.msk [vmem:[%s5179_s6 + $0x58] sm:$0x3] %vm408_vm1, %v368_v6  ;;  %v311_v10 = vpop.permute.xlu1 %310 }
  0x8f   :  { %v369_v11 = vadd.f32 %v311_v10, %v161_v7  ;;  %v370_v12 = vadd.f32 %v311_v10, %v162_v8  ;;  %v371_v13 = vadd.f32 %v311_v10, %v163_v9  ;;  %v194_v9 = vld [vmem:[%s5178_s5 + $0x168] sm:$0xff]  ;;  %v195_v10 = vld [vmem:[%s5178_s5 + $0x170] sm:$0xff] }
  0x91   :  { %v27_v20 = vpop.xlane.xlu0 %26  ;;  %419 = vst.msk [vmem:[%s5179_s6 + $0x60] sm:$0xff] %vm405_vm0, %v369_v11  ;;  %420 = vst.msk [vmem:[%s5179_s6 + $0x68] sm:$0xff] %vm405_vm0, %v370_v12  ;;  %v196_v11 = vld [vmem:[%s5178_s5 + $0x178] sm:$0x3] }
  0x92   :  { %v2423_v21 = vmul.f32 0.00390625, %v27_v20  ;;  %421 = vst.msk [vmem:[%s5179_s6 + $0x70] sm:$0x3] %vm408_vm1, %v371_v13  ;;  %v315_v17 = vpop.permute.xlu1 %314 }
  0x93   :  { %v372_v18 = vadd.f32 %v315_v17, %v164_v14  ;;  %v373_v19 = vadd.f32 %v315_v17, %v165_v15  ;;  %v374_v20 = vadd.f32 %v315_v17, %v166_v16 }
  0x94   :  { %v30_v22 = vsub.f32 %v2366_v0, %v2423_v21  ;;  %v31_v23 = vsub.f32 %v2371_v1, %v2423_v21 }
  0x95   :  { %422 = vst.msk [vmem:[%s5179_s6 + $0x78] sm:$0xff] %vm405_vm0, %v372_v18  ;;  %423 = vst.msk [vmem:[%s5179_s6 + $0x80] sm:$0xff] %vm405_vm0, %v373_v19  ;;  %v38_v19 = vld [vmem:[%s5180_s3] sm:$0xff] }
  0x96   :  { %v32_v24 = vmul.f32 %v30_v22, %v30_v22  ;;  %v33_v25 = vmul.f32 %v31_v23, %v31_v23  ;;  %v167_v22 = vld [vmem:[%s5178_s5 + $0x90] sm:$0xff]  ;;  %v168_v23 = vld [vmem:[%s5178_s5 + $0x98] sm:$0xff]  ;;  %424 = vst.msk [vmem:[%s5179_s6 + $0x88] sm:$0x3] %vm408_vm1, %v374_v20 }
  0x98   :  { %v34_v29 = vadd.f32 %v33_v25, %v32_v24  ;;  %v169_v24 = vld [vmem:[%s5178_s5 + $0xa0] sm:$0x3]  ;;  %v319_v25 = vpop.permute.xlu1 %318 }
  0x99   :  { %v295_v30 = vpop.permute.xlu0 %294 }
  0x9a   :  { %35 = vadd.xlane.f32.xlu0 %v34_v29  ;;  %v357_v31 = vadd.f32 %v295_v30, %v149_v26  ;;  %v358_v32 = vadd.f32 %v295_v30, %v150_v27  ;;  %v359_v33 = vadd.f32 %v295_v30, %v151_v28  ;;  %v375_v26 = vadd.f32 %v319_v25, %v167_v22  ;;  %v170_v29 = vld [vmem:[%s5178_s5 + $0xa8] sm:$0xff]  ;;  %v171_v30 = vld [vmem:[%s5178_s5 + $0xb0] sm:$0xff] }
  0x9b   :  { %v376_v27 = vadd.f32 %v319_v25, %v168_v23  ;;  %v377_v28 = vadd.f32 %v319_v25, %v169_v24  ;;  %v42_v23 = vld [vmem:[%s5181_s4] sm:$0xff] }
  0x9c   :  { %406 = vst.msk [vmem:[%s5179_s6] sm:$0xff] %vm405_vm0, %v357_v31  ;;  %407 = vst.msk [vmem:[%s5179_s6 + $0x8] sm:$0xff] %vm405_vm0, %v358_v32  ;;  %v172_v31 = vld [vmem:[%s5178_s5 + $0xb8] sm:$0x3]  ;;  %v323_v32 = vpop.permute.xlu1 %322 }
  0x9d   :  { %409 = vst.msk [vmem:[%s5179_s6 + $0x10] sm:$0x3] %vm408_vm1, %v359_v33  ;;  %v343_v37 = vpop.permute.xlu0 %342  ;;  %427 = vst.msk [vmem:[%s5179_s6 + $0xa0] sm:$0x3] %vm408_vm1, %v377_v28  ;;  %v378_v33 = vadd.f32 %v323_v32, %v170_v29 }
  0x9e   :  { %v393_v38 = vadd.f32 %v343_v37, %v185_v34  ;;  %v394_v39 = vadd.f32 %v343_v37, %v186_v35  ;;  %v395_v40 = vadd.f32 %v343_v37, %v187_v36  ;;  %425 = vst.msk [vmem:[%s5179_s6 + $0x90] sm:$0xff] %vm405_vm0, %v375_v26  ;;  %426 = vst.msk [vmem:[%s5179_s6 + $0x98] sm:$0xff] %vm405_vm0, %v376_v27  ;;  %v173_v36 = vld [vmem:[%s5178_s5 + $0xc0] sm:$0xff]  ;;  %v174_v37 = vld [vmem:[%s5178_s5 + $0xc8] sm:$0xff]  ;;  %v2319_v26 = vmov 0.0  }
  0x9f   :  { %v379_v34 = vadd.f32 %v323_v32, %v171_v30  ;;  %v380_v35 = vadd.f32 %v323_v32, %v172_v31  ;;  %428 = vst.msk [vmem:[%s5179_s6 + $0xa8] sm:$0xff] %vm405_vm0, %v378_v33  ;;  %132 = vmatprep.mubr.f32.mxu0 %v2319_v26  ;;  %138 = vmatprep.mubr.f32.mxu1 %v2319_v26  ;;  %v59_v33 = vld [vmem:[%s5182_s1] sm:$0xff] }
  0xa0   :  { %443 = vst.msk [vmem:[%s5179_s6 + $0x120] sm:$0xff] %vm405_vm0, %v393_v38  ;;  %444 = vst.msk [vmem:[%s5179_s6 + $0x128] sm:$0xff] %vm405_vm0, %v394_v39  ;;  %v175_v38 = vld [vmem:[%s5178_s5 + $0xd0] sm:$0x3]  ;;  %v327_v39 = vpop.permute.xlu1 %326 }
  0xa1   :  { %445 = vst.msk [vmem:[%s5179_s6 + $0x130] sm:$0x3] %vm408_vm1, %v395_v40  ;;  %v351_v44 = vpop.permute.xlu0 %350  ;;  %430 = vst.msk [vmem:[%s5179_s6 + $0xb8] sm:$0x3] %vm408_vm1, %v380_v35  ;;  %v381_v40 = vadd.f32 %v327_v39, %v173_v36 }
  0xa2   :  { %v399_v45 = vadd.f32 %v351_v44, %v191_v41  ;;  %v400_v46 = vadd.f32 %v351_v44, %v192_v42  ;;  %v401_v47 = vadd.f32 %v351_v44, %v193_v43  ;;  %429 = vst.msk [vmem:[%s5179_s6 + $0xb0] sm:$0xff] %vm405_vm0, %v379_v34  ;;  %v382_v41 = vadd.f32 %v327_v39, %v174_v37  ;;  %v176_v43 = vld [vmem:[%s5178_s5 + $0xd8] sm:$0xff]  ;;  %v177_v44 = vld [vmem:[%s5178_s5 + $0xe0] sm:$0xff] }
  0xa3   :  { %v383_v42 = vadd.f32 %v327_v39, %v175_v38  ;;  %431 = vst.msk [vmem:[%s5179_s6 + $0xc0] sm:$0xff] %vm405_vm0, %v381_v40 }
  0xa4   :  { %449 = vst.msk [vmem:[%s5179_s6 + $0x150] sm:$0xff] %vm405_vm0, %v399_v45  ;;  %450 = vst.msk [vmem:[%s5179_s6 + $0x158] sm:$0xff] %vm405_vm0, %v400_v46  ;;  %v178_v45 = vld [vmem:[%s5178_s5 + $0xe8] sm:$0x3]  ;;  %v331_v46 = vpop.permute.xlu1 %330 }
  0xa5   :  { %451 = vst.msk [vmem:[%s5179_s6 + $0x160] sm:$0x3] %vm408_vm1, %v401_v47  ;;  %433 = vst.msk [vmem:[%s5179_s6 + $0xd0] sm:$0x3] %vm408_vm1, %v383_v42  ;;  %v384_v47 = vadd.f32 %v331_v46, %v176_v43  ;;  %v385_v48 = vadd.f32 %v331_v46, %v177_v44  ;;  %v386_v49 = vadd.f32 %v331_v46, %v178_v45  ;;  %v455_v44 = vld [vmem:[%s5179_s6 + $0x1] sm:$0x1] }
  0xa6   :  { %432 = vst.msk [vmem:[%s5179_s6 + $0xc8] sm:$0xff] %vm405_vm0, %v382_v41 }
  0xa7   :  { %434 = vst.msk [vmem:[%s5179_s6 + $0xd8] sm:$0xff] %vm405_vm0, %v384_v47  ;;  %435 = vst.msk [vmem:[%s5179_s6 + $0xe0] sm:$0xff] %vm405_vm0, %v385_v48  ;;  %v456_v47 = vld [vmem:[%s5179_s6 + $0x19] sm:$0x1] }
  0xa8   :  { %436 = vst.msk [vmem:[%s5179_s6 + $0xe8] sm:$0x3] %vm408_vm1, %v386_v49  ;;  %v335_v53 = vpop.permute.xlu1 %334 }
  0xa9   :  { %v387_v54 = vadd.f32 %v335_v53, %v179_v50  ;;  %v388_v55 = vadd.f32 %v335_v53, %v180_v51  ;;  %v389_v56 = vadd.f32 %v335_v53, %v181_v52  ;;  %v458_v53 = vld [vmem:[%s5179_s6 + $0x49] sm:$0x1] }
  0xaa   :  { %v463_v50 = vld [vmem:[%s5179_s6 + $0xc1] sm:$0x1] }
  0xab   :  { %437 = vst.msk [vmem:[%s5179_s6 + $0xf0] sm:$0xff] %vm405_vm0, %v387_v54  ;;  %438 = vst.msk [vmem:[%s5179_s6 + $0xf8] sm:$0xff] %vm405_vm0, %v388_v55 }
  0xac   :  { %439 = vst.msk [vmem:[%s5179_s6 + $0x100] sm:$0x3] %vm408_vm1, %v389_v56  ;;  %v339_v60 = vpop.permute.xlu1 %338  ;;  %v570_v56 = vld [vmem:[%s5179_s6 + $0x2] sm:$0x1] }
  0xad   :  { %v390_v61 = vadd.f32 %v339_v60, %v182_v57  ;;  %v391_v62 = vadd.f32 %v339_v60, %v183_v58  ;;  %v392_v63 = vadd.f32 %v339_v60, %v184_v59  ;;  %v460_v59 = vld [vmem:[%s5179_s6 + $0x79] sm:$0x1] }
  0xaf   :  { %440 = vst.msk [vmem:[%s5179_s6 + $0x108] sm:$0xff] %vm405_vm0, %v390_v61  ;;  %441 = vst.msk [vmem:[%s5179_s6 + $0x110] sm:$0xff] %vm405_vm0, %v391_v62  ;;  %v578_v62 = vld [vmem:[%s5179_s6 + $0xc2] sm:$0x1] }
  0xb0   :  { %442 = vst.msk [vmem:[%s5179_s6 + $0x118] sm:$0x3] %vm408_vm1, %v392_v63  ;;  %v347_v5 = vpop.permute.xlu1 %346 }
  0xb1   :  { %v396_v6 = vadd.f32 %v347_v5, %v188_v2  ;;  %v397_v7 = vadd.f32 %v347_v5, %v189_v3  ;;  %v398_v8 = vadd.f32 %v347_v5, %v190_v4  ;;  %v462_v4 = vld [vmem:[%s5179_s6 + $0xa9] sm:$0x1] }
  0xb3   :  { %446 = vst.msk [vmem:[%s5179_s6 + $0x138] sm:$0xff] %vm405_vm0, %v396_v6  ;;  %447 = vst.msk [vmem:[%s5179_s6 + $0x140] sm:$0xff] %vm405_vm0, %v397_v7  ;;  %v684_v7 = vld [vmem:[%s5179_s6 + $0x3] sm:$0x1] }
  0xb4   :  { %448 = vst.msk [vmem:[%s5179_s6 + $0x148] sm:$0x3] %vm408_vm1, %v398_v8  ;;  %v355_v12 = vpop.permute.xlu1 %354 }
  0xb5   :  { %v402_v13 = vadd.f32 %v355_v12, %v194_v9  ;;  %v403_v14 = vadd.f32 %v355_v12, %v195_v10  ;;  %v404_v15 = vadd.f32 %v355_v12, %v196_v11  ;;  %v464_v11 = vld [vmem:[%s5179_s6 + $0xd9] sm:$0x1] }
  0xb7   :  { %452 = vst.msk [vmem:[%s5179_s6 + $0x168] sm:$0xff] %vm405_vm0, %v402_v13  ;;  %453 = vst.msk [vmem:[%s5179_s6 + $0x170] sm:$0xff] %vm405_vm0, %v403_v14  ;;  %v692_v14 = vld [vmem:[%s5179_s6 + $0xc3] sm:$0x1] }
  0xb8   :  { %454 = vst.msk [vmem:[%s5179_s6 + $0x178] sm:$0x3] %vm408_vm1, %v404_v15 }
  0xba   :  { %v468_v26 = vld [vmem:[%s5179_s6 + $0x139] sm:$0x1] }
 0x127   :  { %v36_v16 = vpop.xlane.xlu0 %35 }
 0x128   :  { %v37_v17 = vmul.f32 0.00390625, %v36_v16 }
 0x12a   :  { %v39_v18 = vadd.f32 1e-05, %v37_v17 }
 0x12c   :  { %2316 = vrsqrt.f32 %v39_v18  ;;  %v466_v18 = vld [vmem:[%s5179_s6 + $0x109] sm:$0x1] }
 0x136   :  { %v2317_v20 = vpop.eup %2316 }
 0x137   :  { %v41_v22 = vmul.f32 %v2317_v20, %v38_v19 }
 0x139   :  { %47 = vperm.xlu1 %2315, %v41_v22   ;;  %v43_v24 = vmul.f32 %v41_v22, %v2423_v21  ;;  %v60_v21 = vld [vmem:[%s5182_s1 + $0x8] sm:$0xff]  ;;  %s2321_s1 = smov 113   ;;  %v798_v22 = vld [vmem:[%s5179_s6 + $0x4] sm:$0x1] }
 0x13b   :  { %v44_v25 = vsub.f32 %v42_v23, %v43_v24 }
 0x13d   :  { %54 = vperm.xlu1 %2315, %v44_v25  }
 0x1b8   :  { %v48_v27 = vpop.permute.xlu1 %47 }
 0x1b9   :  { %v51_v28 = vmul.f32 %v48_v27, %v2371_v1  ;;  %v50_v29 = vmul.f32 %v48_v27, %v2366_v0 }
 0x1bc   :  { %v55_v30 = vpop.permute.xlu1 %54 }
 0x1bd   :  { %v58_v31 = vadd.f32 %v55_v30, %v51_v28  ;;  %v57_v32 = vadd.f32 %v55_v30, %v50_v29  ;;  %v806_v29 = vld [vmem:[%s5179_s6 + $0xc4] sm:$0x1] }
 0x1bf   :  { %68 = vmatprep.subr.mxu0 %v58_v31  ;;  %2302 = vmatprep.subr.mxu1 %v58_v31 }
 0x1c0   :  { %69 = vmatpush1.msra.mxu0 %v57_v32  ;;  %2303 = vmatpush1.msra.mxu1 %v57_v32 }
 0x1c1   :  { %2284 = vmatmul.mubr.msk.f32.vlgmr.msra.gmra.mrb[0].mxu0 %vm61_vm2, %v59_v33  ;;  %2285 = vmatmul.mubr.msk.f32.vlgmr.msra.gmra.mrb[0].mxu1 %vm61_vm2, %v60_v21  ;;  %v470_v33 = vld [vmem:[%s5179_s6 + $0x169] sm:$0x1] }
 0x294   :  { %v2780_v1 = vpop.f32.mrb[0].mxu0  ;;  %v2782_v0 = vpop.f32.mrb[0].mxu1 }
 0x295   :  { %489 = vrot.lane.b32.xlu0 %v2780_v1, %s2320_s21  ;;  %v2786_v34 = vpop.f32.mrb[1].mxu0  ;;  %v2789_v35 = vrot.slane %v2780_v1, 1  ;;  %v2791_v36 = vpop.f32.mrb[1].mxu1  ;;  %v2798_v37 = vrot.slane %v2780_v1, 3  ;;  %v2805_v38 = vrot.slane %v2780_v1, 5  ;;  %v2812_v39 = vrot.slane %v2780_v1, 7 }
 0x296   :  { %v2819_v40 = vrot.slane %v2782_v0, 1  ;;  %v2826_v41 = vrot.slane %v2782_v0, 3  ;;  %v2833_v42 = vrot.slane %v2782_v0, 5  ;;  %v2840_v43 = vrot.slane %v2782_v0, 7 }
 0x297   :  { %491 = vrot.lane.b32.xlu1 %v2789_v35, %s2320_s21  ;;  %v2982_v2 = vrot.slane %v2780_v1, 2  ;;  %v3003_v9 = vrot.slane %v2780_v1, 4  ;;  %v3024_v16 = vrot.slane %v2780_v1, 6  ;;  %v3045_v24 = vrot.slane %v2782_v0, 2 }
 0x298   :  { %v3066_v31 = vrot.slane %v2782_v0, 4 }
 0x299   :  { %505 = vrot.lane.b32.xlu0 %v2782_v0, %s2320_s21 }
 0x29b   :  { %495 = vrot.lane.b32.xlu1 %v2798_v37, %s2320_s21 }
 0x29d   :  { %604 = vrot.lane.b32.xlu0 %v2780_v1, %s2321_s1 }
 0x29f   :  { %499 = vrot.lane.b32.xlu1 %v2805_v38, %s2320_s21 }
 0x2a1   :  { %620 = vrot.lane.b32.xlu0 %v2782_v0, %s2321_s1 }
 0x2a3   :  { %503 = vrot.lane.b32.xlu1 %v2812_v39, %s2320_s21 }
 0x2a5   :  { %718 = vrot.lane.b32.xlu0 %v2780_v1, %s2322_s22 }
 0x2a7   :  { %507 = vrot.lane.b32.xlu1 %v2819_v40, %s2320_s21 }
 0x2a9   :  { %734 = vrot.lane.b32.xlu0 %v2782_v0, %s2322_s22 }
 0x2ab   :  { %511 = vrot.lane.b32.xlu1 %v2826_v41, %s2320_s21 }
 0x2ad   :  { %832 = vrot.lane.b32.xlu0 %v2780_v1, %s2323_s23 }
 0x2af   :  { %515 = vrot.lane.b32.xlu1 %v2833_v42, %s2320_s21 }
 0x2b1   :  { %848 = vrot.lane.b32.xlu0 %v2782_v0, %s2323_s23 }
 0x2b3   :  { %519 = vrot.lane.b32.xlu1 %v2840_v43, %s2320_s21 }
 0x2b5   :  { %946 = vrot.lane.b32.xlu0 %v2780_v1, %s2324_s24 }
 0x2b7   :  { %606 = vrot.lane.b32.xlu1 %v2789_v35, %s2321_s1 }
 0x2b9   :  { %962 = vrot.lane.b32.xlu0 %v2782_v0, %s2324_s24 }
 0x2bb   :  { %610 = vrot.lane.b32.xlu1 %v2798_v37, %s2321_s1 }
 0x2bd   :  { %1060 = vrot.lane.b32.xlu0 %v2780_v1, %s2325_s25 }
 0x2bf   :  { %614 = vrot.lane.b32.xlu1 %v2805_v38, %s2321_s1 }
 0x2c1   :  { %1076 = vrot.lane.b32.xlu0 %v2782_v0, %s2325_s25 }
 0x2c3   :  { %618 = vrot.lane.b32.xlu1 %v2812_v39, %s2321_s1 }
 0x2c5   :  { %1174 = vrot.lane.b32.xlu0 %v2780_v1, %s2326_s26 }
 0x2c7   :  { %622 = vrot.lane.b32.xlu1 %v2819_v40, %s2321_s1 }
 0x2c9   :  { %1190 = vrot.lane.b32.xlu0 %v2782_v0, %s2326_s26 }
 0x2cb   :  { %626 = vrot.lane.b32.xlu1 %v2826_v41, %s2321_s1 }
 0x2cd   :  { %1288 = vrot.lane.b32.xlu0 %v2780_v1, %s2327_s27 }
 0x2cf   :  { %630 = vrot.lane.b32.xlu1 %v2833_v42, %s2321_s1 }
 0x2d1   :  { %1304 = vrot.lane.b32.xlu0 %v2782_v0, %s2327_s27 }
 0x2d3   :  { %634 = vrot.lane.b32.xlu1 %v2840_v43, %s2321_s1 }
 0x2d5   :  { %1402 = vrot.lane.b32.xlu0 %v2786_v34, %s2320_s21 }
 0x2d7   :  { %720 = vrot.lane.b32.xlu1 %v2789_v35, %s2322_s22 }
 0x2d9   :  { %1418 = vrot.lane.b32.xlu0 %v2791_v36, %s2320_s21 }
 0x2db   :  { %724 = vrot.lane.b32.xlu1 %v2798_v37, %s2322_s22 }
 0x2dd   :  { %1516 = vrot.lane.b32.xlu0 %v2786_v34, %s2321_s1 }
 0x2df   :  { %728 = vrot.lane.b32.xlu1 %v2805_v38, %s2322_s22 }
 0x2e1   :  { %1532 = vrot.lane.b32.xlu0 %v2791_v36, %s2321_s1 }
 0x2e3   :  { %732 = vrot.lane.b32.xlu1 %v2812_v39, %s2322_s22 }
 0x2e5   :  { %1630 = vrot.lane.b32.xlu0 %v2786_v34, %s2322_s22 }
 0x2e7   :  { %736 = vrot.lane.b32.xlu1 %v2819_v40, %s2322_s22 }
 0x2e9   :  { %1646 = vrot.lane.b32.xlu0 %v2791_v36, %s2322_s22 }
 0x2eb   :  { %740 = vrot.lane.b32.xlu1 %v2826_v41, %s2322_s22 }
 0x2ed   :  { %1744 = vrot.lane.b32.xlu0 %v2786_v34, %s2323_s23 }
 0x2ef   :  { %744 = vrot.lane.b32.xlu1 %v2833_v42, %s2322_s22 }
 0x2f1   :  { %1760 = vrot.lane.b32.xlu0 %v2791_v36, %s2323_s23 }
 0x2f3   :  { %748 = vrot.lane.b32.xlu1 %v2840_v43, %s2322_s22 }
 0x2f5   :  { %1858 = vrot.lane.b32.xlu0 %v2786_v34, %s2324_s24 }
 0x2f7   :  { %834 = vrot.lane.b32.xlu1 %v2789_v35, %s2323_s23 }
 0x2f9   :  { %1874 = vrot.lane.b32.xlu0 %v2791_v36, %s2324_s24 }
 0x2fb   :  { %838 = vrot.lane.b32.xlu1 %v2798_v37, %s2323_s23 }
 0x2fd   :  { %1972 = vrot.lane.b32.xlu0 %v2786_v34, %s2325_s25 }
 0x2ff   :  { %842 = vrot.lane.b32.xlu1 %v2805_v38, %s2323_s23 }
 0x301   :  { %1988 = vrot.lane.b32.xlu0 %v2791_v36, %s2325_s25 }
 0x303   :  { %846 = vrot.lane.b32.xlu1 %v2812_v39, %s2323_s23 }
 0x305   :  { %2086 = vrot.lane.b32.xlu0 %v2786_v34, %s2326_s26 }
 0x307   :  { %v490_v45 = vpop.permute.xlu0 %489  ;;  %850 = vrot.lane.b32.xlu1 %v2819_v40, %s2323_s23 }
 0x308   :  { %v537_v46 = vadd.f32 %v490_v45, %v455_v44  ;;  %v912_v44 = vld [vmem:[%s5179_s6 + $0x5] sm:$0x1] }
 0x309   :  { %v492_v48 = vpop.permute.xlu1 %491  ;;  %2102 = vrot.lane.b32.xlu0 %v2791_v36, %s2326_s26 }
 0x30a   :  { %554 = vst.msk [vmem:[%s5179_s6 + $0x1] sm:$0x1] %vm553_vm3, %v537_v46  ;;  %v538_v49 = vadd.f32 %v492_v48, %v456_v47  ;;  %v3087_v46 = vrot.slane %v2782_v0, 6  ;;  %v571_v48 = vld [vmem:[%s5179_s6 + $0x1a] sm:$0x1] }
 0x30b   :  { %v506_v51 = vpop.permute.xlu0 %505  ;;  %854 = vrot.lane.b32.xlu1 %v2826_v41, %s2323_s23 }
 0x30c   :  { %555 = vst.msk [vmem:[%s5179_s6 + $0x19] sm:$0x1] %vm553_vm3, %v538_v49  ;;  %v545_v52 = vadd.f32 %v506_v51, %v463_v50  ;;  %v920_v50 = vld [vmem:[%s5179_s6 + $0xc5] sm:$0x1] }
 0x30d   :  { %v496_v54 = vpop.permute.xlu1 %495  ;;  %2200 = vrot.lane.b32.xlu0 %v2786_v34, %s2327_s27 }
 0x30e   :  { %562 = vst.msk [vmem:[%s5179_s6 + $0xc1] sm:$0x1] %vm553_vm3, %v545_v52  ;;  %v540_v55 = vadd.f32 %v496_v54, %v458_v53  ;;  %v573_v53 = vld [vmem:[%s5179_s6 + $0x4a] sm:$0x1] }
 0x30f   :  { %v605_v57 = vpop.permute.xlu0 %604  ;;  %858 = vrot.lane.b32.xlu1 %v2833_v42, %s2323_s23 }
 0x310   :  { %557 = vst.msk [vmem:[%s5179_s6 + $0x49] sm:$0x1] %vm553_vm3, %v540_v55  ;;  %v652_v58 = vadd.f32 %v605_v57, %v570_v56  ;;  %v1026_v56 = vld [vmem:[%s5179_s6 + $0x6] sm:$0x1] }
 0x311   :  { %v500_v60 = vpop.permute.xlu1 %499  ;;  %2216 = vrot.lane.b32.xlu0 %v2791_v36, %s2327_s27 }
 0x312   :  { %668 = vst.msk [vmem:[%s5179_s6 + $0x2] sm:$0x1] %vm553_vm3, %v652_v58  ;;  %v542_v61 = vadd.f32 %v500_v60, %v460_v59  ;;  %v575_v59 = vld [vmem:[%s5179_s6 + $0x7a] sm:$0x1] }
 0x313   :  { %v621_v63 = vpop.permute.xlu0 %620  ;;  %862 = vrot.lane.b32.xlu1 %v2840_v43, %s2323_s23 }
 0x314   :  { %559 = vst.msk [vmem:[%s5179_s6 + $0x79] sm:$0x1] %vm553_vm3, %v542_v61  ;;  %v660_v3 = vadd.f32 %v621_v63, %v578_v62  ;;  %v1034_v62 = vld [vmem:[%s5179_s6 + $0xc6] sm:$0x1] }
 0x315   :  { %v504_v5 = vpop.permute.xlu1 %503  ;;  %493 = vrot.lane.b32.xlu0 %v2982_v2, %s2320_s21 }
 0x316   :  { %676 = vst.msk [vmem:[%s5179_s6 + $0xc2] sm:$0x1] %vm553_vm3, %v660_v3  ;;  %v544_v6 = vadd.f32 %v504_v5, %v462_v4  ;;  %v577_v4 = vld [vmem:[%s5179_s6 + $0xaa] sm:$0x1] }
 0x317   :  { %v719_v8 = vpop.permute.xlu0 %718  ;;  %948 = vrot.lane.b32.xlu1 %v2789_v35, %s2324_s24 }
 0x318   :  { %561 = vst.msk [vmem:[%s5179_s6 + $0xa9] sm:$0x1] %vm553_vm3, %v544_v6  ;;  %v766_v10 = vadd.f32 %v719_v8, %v684_v7  ;;  %v1140_v7 = vld [vmem:[%s5179_s6 + $0x7] sm:$0x1] }
 0x319   :  { %v508_v12 = vpop.permute.xlu1 %507  ;;  %497 = vrot.lane.b32.xlu0 %v3003_v9, %s2320_s21 }
 0x31a   :  { %782 = vst.msk [vmem:[%s5179_s6 + $0x3] sm:$0x1] %vm553_vm3, %v766_v10  ;;  %v546_v13 = vadd.f32 %v508_v12, %v464_v11  ;;  %v579_v11 = vld [vmem:[%s5179_s6 + $0xda] sm:$0x1] }
 0x31b   :  { %v735_v15 = vpop.permute.xlu0 %734  ;;  %952 = vrot.lane.b32.xlu1 %v2798_v37, %s2324_s24 }
 0x31c   :  { %563 = vst.msk [vmem:[%s5179_s6 + $0xd9] sm:$0x1] %vm553_vm3, %v546_v13  ;;  %v774_v17 = vadd.f32 %v735_v15, %v692_v14  ;;  %v1148_v14 = vld [vmem:[%s5179_s6 + $0xc7] sm:$0x1] }
 0x31d   :  { %v512_v19 = vpop.permute.xlu1 %511  ;;  %501 = vrot.lane.b32.xlu0 %v3024_v16, %s2320_s21 }
 0x31e   :  { %790 = vst.msk [vmem:[%s5179_s6 + $0xc3] sm:$0x1] %vm553_vm3, %v774_v17  ;;  %v548_v20 = vadd.f32 %v512_v19, %v466_v18  ;;  %v581_v18 = vld [vmem:[%s5179_s6 + $0x10a] sm:$0x1] }
 0x31f   :  { %v833_v23 = vpop.permute.xlu0 %832  ;;  %956 = vrot.lane.b32.xlu1 %v2805_v38, %s2324_s24 }
 0x320   :  { %565 = vst.msk [vmem:[%s5179_s6 + $0x109] sm:$0x1] %vm553_vm3, %v548_v20  ;;  %v880_v25 = vadd.f32 %v833_v23, %v798_v22  ;;  %v1254_v22 = vld [vmem:[%s5179_s6 + $0x8] sm:$0x1] }
 0x321   :  { %v516_v27 = vpop.permute.xlu1 %515  ;;  %509 = vrot.lane.b32.xlu0 %v3045_v24, %s2320_s21 }
 0x322   :  { %896 = vst.msk [vmem:[%s5179_s6 + $0x4] sm:$0x1] %vm553_vm3, %v880_v25  ;;  %v550_v28 = vadd.f32 %v516_v27, %v468_v26  ;;  %v583_v26 = vld [vmem:[%s5179_s6 + $0x13a] sm:$0x1] }
 0x323   :  { %v849_v30 = vpop.permute.xlu0 %848  ;;  %960 = vrot.lane.b32.xlu1 %v2812_v39, %s2324_s24 }
 0x324   :  { %567 = vst.msk [vmem:[%s5179_s6 + $0x139] sm:$0x1] %vm553_vm3, %v550_v28  ;;  %v888_v32 = vadd.f32 %v849_v30, %v806_v29  ;;  %v1262_v29 = vld [vmem:[%s5179_s6 + $0xc8] sm:$0x1] }
 0x325   :  { %v520_v21 = vpop.permute.xlu1 %519  ;;  %513 = vrot.lane.b32.xlu0 %v3066_v31, %s2320_s21 }
 0x326   :  { %904 = vst.msk [vmem:[%s5179_s6 + $0xc4] sm:$0x1] %vm553_vm3, %v888_v32  ;;  %v552_v1 = vadd.f32 %v520_v21, %v470_v33  ;;  %v585_v33 = vld [vmem:[%s5179_s6 + $0x16a] sm:$0x1] }
 0x327   :  { %v947_v45 = vpop.permute.xlu0 %946  ;;  %964 = vrot.lane.b32.xlu1 %v2819_v40, %s2324_s24 }
 0x328   :  { %569 = vst.msk [vmem:[%s5179_s6 + $0x169] sm:$0x1] %vm553_vm3, %v552_v1  ;;  %v994_v47 = vadd.f32 %v947_v45, %v912_v44  ;;  %v1368_v44 = vld [vmem:[%s5179_s6 + $0x9] sm:$0x1] }
 0x329   :  { %v607_v49 = vpop.permute.xlu1 %606  ;;  %517 = vrot.lane.b32.xlu0 %v3087_v46, %s2320_s21 }
 0x32a   :  { %1010 = vst.msk [vmem:[%s5179_s6 + $0x5] sm:$0x1] %vm553_vm3, %v994_v47  ;;  %v653_v0 = vadd.f32 %v607_v49, %v571_v48  ;;  %v685_v48 = vld [vmem:[%s5179_s6 + $0x1b] sm:$0x1] }
 0x32b   :  { %v963_v51 = vpop.permute.xlu0 %962  ;;  %968 = vrot.lane.b32.xlu1 %v2826_v41, %s2324_s24 }
 0x32c   :  { %669 = vst.msk [vmem:[%s5179_s6 + $0x1a] sm:$0x1] %vm553_vm3, %v653_v0  ;;  %v1002_v52 = vadd.f32 %v963_v51, %v920_v50  ;;  %v1376_v50 = vld [vmem:[%s5179_s6 + $0xc9] sm:$0x1] }
 0x32d   :  { %v611_v54 = vpop.permute.xlu1 %610  ;;  %608 = vrot.lane.b32.xlu0 %v2982_v2, %s2321_s1 }
 0x32e   :  { %1018 = vst.msk [vmem:[%s5179_s6 + $0xc5] sm:$0x1] %vm553_vm3, %v1002_v52  ;;  %v655_v55 = vadd.f32 %v611_v54, %v573_v53  ;;  %v687_v53 = vld [vmem:[%s5179_s6 + $0x4b] sm:$0x1] }
 0x32f   :  { %v1061_v57 = vpop.permute.xlu0 %1060  ;;  %972 = vrot.lane.b32.xlu1 %v2833_v42, %s2324_s24 }
 0x330   :  { %671 = vst.msk [vmem:[%s5179_s6 + $0x4a] sm:$0x1] %vm553_vm3, %v655_v55  ;;  %v1108_v58 = vadd.f32 %v1061_v57, %v1026_v56  ;;  %v1482_v56 = vld [vmem:[%s5179_s6 + $0xa] sm:$0x1] }
 0x331   :  { %v615_v60 = vpop.permute.xlu1 %614  ;;  %612 = vrot.lane.b32.xlu0 %v3003_v9, %s2321_s1 }
 0x332   :  { %1124 = vst.msk [vmem:[%s5179_s6 + $0x6] sm:$0x1] %vm553_vm3, %v1108_v58  ;;  %v657_v61 = vadd.f32 %v615_v60, %v575_v59  ;;  %v689_v59 = vld [vmem:[%s5179_s6 + $0x7b] sm:$0x1] }
 0x333   :  { %v1077_v63 = vpop.permute.xlu0 %1076  ;;  %976 = vrot.lane.b32.xlu1 %v2840_v43, %s2324_s24 }
 0x334   :  { %673 = vst.msk [vmem:[%s5179_s6 + $0x7a] sm:$0x1] %vm553_vm3, %v657_v61  ;;  %v1116_v3 = vadd.f32 %v1077_v63, %v1034_v62  ;;  %v1490_v62 = vld [vmem:[%s5179_s6 + $0xca] sm:$0x1] }
 0x335   :  { %v619_v5 = vpop.permute.xlu1 %618  ;;  %616 = vrot.lane.b32.xlu0 %v3024_v16, %s2321_s1 }
 0x336   :  { %1132 = vst.msk [vmem:[%s5179_s6 + $0xc6] sm:$0x1] %vm553_vm3, %v1116_v3  ;;  %v659_v6 = vadd.f32 %v619_v5, %v577_v4  ;;  %v691_v4 = vld [vmem:[%s5179_s6 + $0xab] sm:$0x1] }
 0x337   :  { %v1175_v8 = vpop.permute.xlu0 %1174  ;;  %1062 = vrot.lane.b32.xlu1 %v2789_v35, %s2325_s25 }
 0x338   :  { %675 = vst.msk [vmem:[%s5179_s6 + $0xaa] sm:$0x1] %vm553_vm3, %v659_v6  ;;  %v1222_v10 = vadd.f32 %v1175_v8, %v1140_v7  ;;  %v1596_v7 = vld [vmem:[%s5179_s6 + $0xb] sm:$0x1] }
 0x339   :  { %v623_v12 = vpop.permute.xlu1 %622  ;;  %624 = vrot.lane.b32.xlu0 %v3045_v24, %s2321_s1 }
 0x33a   :  { %1238 = vst.msk [vmem:[%s5179_s6 + $0x7] sm:$0x1] %vm553_vm3, %v1222_v10  ;;  %v661_v13 = vadd.f32 %v623_v12, %v579_v11  ;;  %v693_v11 = vld [vmem:[%s5179_s6 + $0xdb] sm:$0x1] }
 0x33b   :  { %v1191_v15 = vpop.permute.xlu0 %1190  ;;  %1066 = vrot.lane.b32.xlu1 %v2798_v37, %s2325_s25 }
 0x33c   :  { %677 = vst.msk [vmem:[%s5179_s6 + $0xda] sm:$0x1] %vm553_vm3, %v661_v13  ;;  %v1230_v17 = vadd.f32 %v1191_v15, %v1148_v14  ;;  %v1604_v14 = vld [vmem:[%s5179_s6 + $0xcb] sm:$0x1] }
 0x33d   :  { %v627_v19 = vpop.permute.xlu1 %626  ;;  %628 = vrot.lane.b32.xlu0 %v3066_v31, %s2321_s1 }
 0x33e   :  { %1246 = vst.msk [vmem:[%s5179_s6 + $0xc7] sm:$0x1] %vm553_vm3, %v1230_v17  ;;  %v663_v20 = vadd.f32 %v627_v19, %v581_v18  ;;  %v695_v18 = vld [vmem:[%s5179_s6 + $0x10b] sm:$0x1] }
 0x33f   :  { %v1289_v23 = vpop.permute.xlu0 %1288  ;;  %1070 = vrot.lane.b32.xlu1 %v2805_v38, %s2325_s25 }
 0x340   :  { %679 = vst.msk [vmem:[%s5179_s6 + $0x10a] sm:$0x1] %vm553_vm3, %v663_v20  ;;  %v1336_v25 = vadd.f32 %v1289_v23, %v1254_v22  ;;  %v1710_v22 = vld [vmem:[%s5179_s6 + $0xc] sm:$0x1] }
 0x341   :  { %v631_v27 = vpop.permute.xlu1 %630  ;;  %632 = vrot.lane.b32.xlu0 %v3087_v46, %s2321_s1 }
 0x342   :  { %1352 = vst.msk [vmem:[%s5179_s6 + $0x8] sm:$0x1] %vm553_vm3, %v1336_v25  ;;  %v665_v28 = vadd.f32 %v631_v27, %v583_v26  ;;  %v697_v26 = vld [vmem:[%s5179_s6 + $0x13b] sm:$0x1] }
 0x343   :  { %v1305_v30 = vpop.permute.xlu0 %1304  ;;  %1074 = vrot.lane.b32.xlu1 %v2812_v39, %s2325_s25 }
 0x344   :  { %681 = vst.msk [vmem:[%s5179_s6 + $0x13a] sm:$0x1] %vm553_vm3, %v665_v28  ;;  %v1344_v32 = vadd.f32 %v1305_v30, %v1262_v29  ;;  %v1718_v29 = vld [vmem:[%s5179_s6 + $0xcc] sm:$0x1] }
 0x345   :  { %v635_v21 = vpop.permute.xlu1 %634  ;;  %722 = vrot.lane.b32.xlu0 %v2982_v2, %s2322_s22 }
 0x346   :  { %1360 = vst.msk [vmem:[%s5179_s6 + $0xc8] sm:$0x1] %vm553_vm3, %v1344_v32  ;;  %v667_v1 = vadd.f32 %v635_v21, %v585_v33  ;;  %v699_v33 = vld [vmem:[%s5179_s6 + $0x16b] sm:$0x1] }
 0x347   :  { %1078 = vrot.lane.b32.xlu1 %v2819_v40, %s2325_s25  ;;  %v1403_v45 = vpop.permute.xlu0 %1402 }
 0x348   :  { %683 = vst.msk [vmem:[%s5179_s6 + $0x16a] sm:$0x1] %vm553_vm3, %v667_v1  ;;  %v1450_v47 = vadd.f32 %v1403_v45, %v1368_v44  ;;  %v1824_v44 = vld [vmem:[%s5179_s6 + $0xd] sm:$0x1] }
 0x349   :  { %v721_v49 = vpop.permute.xlu1 %720  ;;  %726 = vrot.lane.b32.xlu0 %v3003_v9, %s2322_s22 }
 0x34a   :  { %1466 = vst.msk [vmem:[%s5179_s6 + $0x9] sm:$0x1] %vm553_vm3, %v1450_v47  ;;  %v767_v0 = vadd.f32 %v721_v49, %v685_v48  ;;  %v799_v48 = vld [vmem:[%s5179_s6 + $0x1c] sm:$0x1] }
 0x34b   :  { %1082 = vrot.lane.b32.xlu1 %v2826_v41, %s2325_s25  ;;  %v1419_v51 = vpop.permute.xlu0 %1418 }
 0x34c   :  { %783 = vst.msk [vmem:[%s5179_s6 + $0x1b] sm:$0x1] %vm553_vm3, %v767_v0  ;;  %v1458_v52 = vadd.f32 %v1419_v51, %v1376_v50  ;;  %v1832_v50 = vld [vmem:[%s5179_s6 + $0xcd] sm:$0x1] }
 0x34d   :  { %v725_v54 = vpop.permute.xlu1 %724  ;;  %730 = vrot.lane.b32.xlu0 %v3024_v16, %s2322_s22 }
 0x34e   :  { %1474 = vst.msk [vmem:[%s5179_s6 + $0xc9] sm:$0x1] %vm553_vm3, %v1458_v52  ;;  %v769_v55 = vadd.f32 %v725_v54, %v687_v53  ;;  %v801_v53 = vld [vmem:[%s5179_s6 + $0x4c] sm:$0x1] }
 0x34f   :  { %1086 = vrot.lane.b32.xlu1 %v2833_v42, %s2325_s25  ;;  %v1517_v57 = vpop.permute.xlu0 %1516 }
 0x350   :  { %785 = vst.msk [vmem:[%s5179_s6 + $0x4b] sm:$0x1] %vm553_vm3, %v769_v55  ;;  %v1564_v58 = vadd.f32 %v1517_v57, %v1482_v56  ;;  %v1938_v56 = vld [vmem:[%s5179_s6 + $0xe] sm:$0x1] }
 0x351   :  { %v729_v60 = vpop.permute.xlu1 %728  ;;  %738 = vrot.lane.b32.xlu0 %v3045_v24, %s2322_s22 }
 0x352   :  { %1580 = vst.msk [vmem:[%s5179_s6 + $0xa] sm:$0x1] %vm553_vm3, %v1564_v58  ;;  %v771_v61 = vadd.f32 %v729_v60, %v689_v59  ;;  %v803_v59 = vld [vmem:[%s5179_s6 + $0x7c] sm:$0x1] }
 0x353   :  { %1090 = vrot.lane.b32.xlu1 %v2840_v43, %s2325_s25  ;;  %v1533_v63 = vpop.permute.xlu0 %1532 }
 0x354   :  { %787 = vst.msk [vmem:[%s5179_s6 + $0x7b] sm:$0x1] %vm553_vm3, %v771_v61  ;;  %v1572_v3 = vadd.f32 %v1533_v63, %v1490_v62  ;;  %v1946_v62 = vld [vmem:[%s5179_s6 + $0xce] sm:$0x1] }
 0x355   :  { %v733_v5 = vpop.permute.xlu1 %732  ;;  %742 = vrot.lane.b32.xlu0 %v3066_v31, %s2322_s22 }
 0x356   :  { %1588 = vst.msk [vmem:[%s5179_s6 + $0xca] sm:$0x1] %vm553_vm3, %v1572_v3  ;;  %v773_v6 = vadd.f32 %v733_v5, %v691_v4  ;;  %v805_v4 = vld [vmem:[%s5179_s6 + $0xac] sm:$0x1] }
 0x357   :  { %1176 = vrot.lane.b32.xlu1 %v2789_v35, %s2326_s26  ;;  %v1631_v8 = vpop.permute.xlu0 %1630 }
 0x358   :  { %789 = vst.msk [vmem:[%s5179_s6 + $0xab] sm:$0x1] %vm553_vm3, %v773_v6  ;;  %v1678_v10 = vadd.f32 %v1631_v8, %v1596_v7  ;;  %v2052_v7 = vld [vmem:[%s5179_s6 + $0xf] sm:$0x1] }
 0x359   :  { %v737_v12 = vpop.permute.xlu1 %736  ;;  %746 = vrot.lane.b32.xlu0 %v3087_v46, %s2322_s22 }
 0x35a   :  { %1694 = vst.msk [vmem:[%s5179_s6 + $0xb] sm:$0x1] %vm553_vm3, %v1678_v10  ;;  %v775_v13 = vadd.f32 %v737_v12, %v693_v11  ;;  %v807_v11 = vld [vmem:[%s5179_s6 + $0xdc] sm:$0x1] }
 0x35b   :  { %1180 = vrot.lane.b32.xlu1 %v2798_v37, %s2326_s26  ;;  %v1647_v15 = vpop.permute.xlu0 %1646 }
 0x35c   :  { %791 = vst.msk [vmem:[%s5179_s6 + $0xdb] sm:$0x1] %vm553_vm3, %v775_v13  ;;  %v1686_v17 = vadd.f32 %v1647_v15, %v1604_v14  ;;  %v2060_v13 = vld [vmem:[%s5179_s6 + $0xcf] sm:$0x1] }
 0x35d   :  { %v741_v19 = vpop.permute.xlu1 %740  ;;  %836 = vrot.lane.b32.xlu0 %v2982_v2, %s2323_s23 }
 0x35e   :  { %1702 = vst.msk [vmem:[%s5179_s6 + $0xcb] sm:$0x1] %vm553_vm3, %v1686_v17  ;;  %v777_v20 = vadd.f32 %v741_v19, %v695_v18  ;;  %v809_v17 = vld [vmem:[%s5179_s6 + $0x10c] sm:$0x1]  ;;  %v2166_v19 = vld [vmem:[%s5179_s6 + $0x10] sm:$0x1] }
 0x35f   :  { %1184 = vrot.lane.b32.xlu1 %v2805_v38, %s2326_s26  ;;  %v1745_v23 = vpop.permute.xlu0 %1744 }
 0x360   :  { %793 = vst.msk [vmem:[%s5179_s6 + $0x10b] sm:$0x1] %vm553_vm3, %v777_v20  ;;  %v1792_v25 = vadd.f32 %v1745_v23, %v1710_v22  ;;  %v811_v23 = vld [vmem:[%s5179_s6 + $0x13c] sm:$0x1] }
 0x361   :  { %v745_v27 = vpop.permute.xlu1 %744  ;;  %840 = vrot.lane.b32.xlu0 %v3003_v9, %s2323_s23 }
 0x362   :  { %1808 = vst.msk [vmem:[%s5179_s6 + $0xc] sm:$0x1] %vm553_vm3, %v1792_v25  ;;  %v779_v28 = vadd.f32 %v745_v27, %v697_v26  ;;  %v2174_v26 = vld [vmem:[%s5179_s6 + $0xd0] sm:$0x1] }
 0x363   :  { %1188 = vrot.lane.b32.xlu1 %v2812_v39, %s2326_s26  ;;  %v1761_v30 = vpop.permute.xlu0 %1760 }
 0x364   :  { %795 = vst.msk [vmem:[%s5179_s6 + $0x13b] sm:$0x1] %vm553_vm3, %v779_v28  ;;  %v1800_v32 = vadd.f32 %v1761_v30, %v1718_v29  ;;  %v813_v29 = vld [vmem:[%s5179_s6 + $0x16c] sm:$0x1] }
 0x365   :  { %v749_v21 = vpop.permute.xlu1 %748  ;;  %844 = vrot.lane.b32.xlu0 %v3024_v16, %s2323_s23 }
 0x366   :  { %1816 = vst.msk [vmem:[%s5179_s6 + $0xcc] sm:$0x1] %vm553_vm3, %v1800_v32  ;;  %v781_v1 = vadd.f32 %v749_v21, %v699_v33  ;;  %v457_v32 = vld [vmem:[%s5179_s6 + $0x31] sm:$0x1] }
 0x367   :  { %1192 = vrot.lane.b32.xlu1 %v2819_v40, %s2326_s26  ;;  %v1859_v45 = vpop.permute.xlu0 %1858 }
 0x368   :  { %797 = vst.msk [vmem:[%s5179_s6 + $0x16b] sm:$0x1] %vm553_vm3, %v781_v1  ;;  %v1906_v47 = vadd.f32 %v1859_v45, %v1824_v44  ;;  %v913_v1 = vld [vmem:[%s5179_s6 + $0x1d] sm:$0x1]  ;;  %v459_v45 = vld [vmem:[%s5179_s6 + $0x61] sm:$0x1] }
 0x369   :  { %v835_v49 = vpop.permute.xlu1 %834  ;;  %852 = vrot.lane.b32.xlu0 %v3045_v24, %s2323_s23 }
 0x36a   :  { %1922 = vst.msk [vmem:[%s5179_s6 + $0xd] sm:$0x1] %vm553_vm3, %v1906_v47  ;;  %v881_v0 = vadd.f32 %v835_v49, %v799_v48  ;;  %v915_v49 = vld [vmem:[%s5179_s6 + $0x4d] sm:$0x1] }
 0x36b   :  { %1196 = vrot.lane.b32.xlu1 %v2826_v41, %s2326_s26  ;;  %v1875_v51 = vpop.permute.xlu0 %1874 }
 0x36c   :  { %897 = vst.msk [vmem:[%s5179_s6 + $0x1c] sm:$0x1] %vm553_vm3, %v881_v0  ;;  %v1914_v52 = vadd.f32 %v1875_v51, %v1832_v50  ;;  %v461_v50 = vld [vmem:[%s5179_s6 + $0x91] sm:$0x1] }
 0x36d   :  { %v839_v54 = vpop.permute.xlu1 %838  ;;  %856 = vrot.lane.b32.xlu0 %v3066_v31, %s2323_s23 }
 0x36e   :  { %1930 = vst.msk [vmem:[%s5179_s6 + $0xcd] sm:$0x1] %vm553_vm3, %v1914_v52  ;;  %v883_v55 = vadd.f32 %v839_v54, %v801_v53  ;;  %v917_v53 = vld [vmem:[%s5179_s6 + $0x7d] sm:$0x1] }
 0x36f   :  { %1200 = vrot.lane.b32.xlu1 %v2833_v42, %s2326_s26  ;;  %v1973_v57 = vpop.permute.xlu0 %1972 }
 0x370   :  { %899 = vst.msk [vmem:[%s5179_s6 + $0x4c] sm:$0x1] %vm553_vm3, %v883_v55  ;;  %v2020_v58 = vadd.f32 %v1973_v57, %v1938_v56  ;;  %v465_v55 = vld [vmem:[%s5179_s6 + $0xf1] sm:$0x1] }
 0x371   :  { %v843_v60 = vpop.permute.xlu1 %842  ;;  %860 = vrot.lane.b32.xlu0 %v3087_v46, %s2323_s23 }
 0x372   :  { %2036 = vst.msk [vmem:[%s5179_s6 + $0xe] sm:$0x1] %vm553_vm3, %v2020_v58  ;;  %v885_v61 = vadd.f32 %v843_v60, %v803_v59  ;;  %v919_v58 = vld [vmem:[%s5179_s6 + $0xad] sm:$0x1] }
 0x373   :  { %1204 = vrot.lane.b32.xlu1 %v2840_v43, %s2326_s26  ;;  %v1989_v63 = vpop.permute.xlu0 %1988 }
 0x374   :  { %901 = vst.msk [vmem:[%s5179_s6 + $0x7c] sm:$0x1] %vm553_vm3, %v885_v61  ;;  %v2028_v3 = vadd.f32 %v1989_v63, %v1946_v62  ;;  %v467_v61 = vld [vmem:[%s5179_s6 + $0x121] sm:$0x1] }
 0x375   :  { %v847_v5 = vpop.permute.xlu1 %846  ;;  %950 = vrot.lane.b32.xlu0 %v2982_v2, %s2324_s24 }
 0x376   :  { %2044 = vst.msk [vmem:[%s5179_s6 + $0xce] sm:$0x1] %vm553_vm3, %v2028_v3  ;;  %v887_v6 = vadd.f32 %v847_v5, %v805_v4  ;;  %v921_v3 = vld [vmem:[%s5179_s6 + $0xdd] sm:$0x1]  ;;  %v3606_v5 = vrot.slane %v2786_v34, 3 }
 0x377   :  { %1290 = vrot.lane.b32.xlu1 %v2789_v35, %s2327_s27  ;;  %v2087_v8 = vpop.permute.xlu0 %2086 }
 0x378   :  { %903 = vst.msk [vmem:[%s5179_s6 + $0xac] sm:$0x1] %vm553_vm3, %v887_v6  ;;  %v2134_v10 = vadd.f32 %v2087_v8, %v2052_v7  ;;  %v469_v7 = vld [vmem:[%s5179_s6 + $0x151] sm:$0x1] }
 0x379   :  { %v851_v12 = vpop.permute.xlu1 %850  ;;  %954 = vrot.lane.b32.xlu0 %v3003_v9, %s2324_s24 }
 0x37a   :  { %2150 = vst.msk [vmem:[%s5179_s6 + $0xf] sm:$0x1] %vm553_vm3, %v2134_v10  ;;  %v889_v35 = vadd.f32 %v851_v12, %v807_v11  ;;  %v923_v11 = vld [vmem:[%s5179_s6 + $0x10d] sm:$0x1] }
 0x37b   :  { %1294 = vrot.lane.b32.xlu1 %v2798_v37, %s2327_s27  ;;  %v2103_v14 = vpop.permute.xlu0 %2102 }
 0x37c   :  { %905 = vst.msk [vmem:[%s5179_s6 + $0xdc] sm:$0x1] %vm553_vm3, %v889_v35  ;;  %v2142_v15 = vadd.f32 %v2103_v14, %v2060_v13  ;;  %v3627_v35 = vrot.slane %v2786_v34, 5  ;;  %v572_v14 = vld [vmem:[%s5179_s6 + $0x32] sm:$0x1] }
 0x37d   :  { %v855_v18 = vpop.permute.xlu1 %854  ;;  %958 = vrot.lane.b32.xlu0 %v3024_v16, %s2324_s24 }
 0x37e   :  { %2158 = vst.msk [vmem:[%s5179_s6 + $0xcf] sm:$0x1] %vm553_vm3, %v2142_v15  ;;  %v891_v37 = vadd.f32 %v855_v18, %v809_v17  ;;  %v925_v18 = vld [vmem:[%s5179_s6 + $0x13d] sm:$0x1] }
 0x37f   :  { %1298 = vrot.lane.b32.xlu1 %v2805_v38, %s2327_s27  ;;  %v2201_v20 = vpop.permute.xlu0 %2200 }
 0x380   :  { %907 = vst.msk [vmem:[%s5179_s6 + $0x10c] sm:$0x1] %vm553_vm3, %v891_v37  ;;  %v2248_v22 = vadd.f32 %v2201_v20, %v2166_v19  ;;  %v3648_v19 = vrot.slane %v2786_v34, 7 }
 0x381   :  { %v859_v25 = vpop.permute.xlu1 %858  ;;  %966 = vrot.lane.b32.xlu0 %v3045_v24, %s2324_s24 }
 0x382   :  { %2264 = vst.msk [vmem:[%s5179_s6 + $0x10] sm:$0x1] %vm553_vm3, %v2248_v22  ;;  %v893_v38 = vadd.f32 %v859_v25, %v811_v23  ;;  %v574_v22 = vld [vmem:[%s5179_s6 + $0x62] sm:$0x1] }
 0x383   :  { %1302 = vrot.lane.b32.xlu1 %v2812_v39, %s2327_s27  ;;  %v2217_v27 = vpop.permute.xlu0 %2216 }
 0x384   :  { %909 = vst.msk [vmem:[%s5179_s6 + $0x13c] sm:$0x1] %vm553_vm3, %v893_v38  ;;  %v2256_v28 = vadd.f32 %v2217_v27, %v2174_v26  ;;  %v927_v38 = vld [vmem:[%s5179_s6 + $0x16d] sm:$0x1]  ;;  %v3669_v27 = vrot.slane %v2791_v36, 1 }
 0x385   :  { %v863_v30 = vpop.permute.xlu1 %862  ;;  %970 = vrot.lane.b32.xlu0 %v3066_v31, %s2324_s24 }
 0x386   :  { %2272 = vst.msk [vmem:[%s5179_s6 + $0xd0] sm:$0x1] %vm553_vm3, %v2256_v28  ;;  %v895_v39 = vadd.f32 %v863_v30, %v813_v29  ;;  %v576_v29 = vld [vmem:[%s5179_s6 + $0x92] sm:$0x1] }
 0x387   :  { %1306 = vrot.lane.b32.xlu1 %v2819_v40, %s2327_s27  ;;  %v494_v33 = vpop.permute.xlu0 %493 }
 0x388   :  { %911 = vst.msk [vmem:[%s5179_s6 + $0x16c] sm:$0x1] %vm553_vm3, %v895_v39  ;;  %v539_v21 = vadd.f32 %v494_v33, %v457_v32  ;;  %v1027_v32 = vld [vmem:[%s5179_s6 + $0x1e] sm:$0x1] }
 0x389   :  { %v949_v44 = vpop.permute.xlu1 %948  ;;  %974 = vrot.lane.b32.xlu0 %v3087_v46, %s2324_s24 }
 0x38a   :  { %556 = vst.msk [vmem:[%s5179_s6 + $0x31] sm:$0x1] %vm553_vm3, %v539_v21  ;;  %v995_v40 = vadd.f32 %v949_v44, %v913_v1  ;;  %v3690_v21 = vrot.slane %v2791_v36, 3  ;;  %v580_v44 = vld [vmem:[%s5179_s6 + $0xf2] sm:$0x1] }
 0x38b   :  { %1310 = vrot.lane.b32.xlu1 %v2826_v41, %s2327_s27  ;;  %v498_v47 = vpop.permute.xlu0 %497 }
 0x38c   :  { %1011 = vst.msk [vmem:[%s5179_s6 + $0x1d] sm:$0x1] %vm553_vm3, %v995_v40  ;;  %v541_v48 = vadd.f32 %v498_v47, %v459_v45  ;;  %v1029_v47 = vld [vmem:[%s5179_s6 + $0x4e] sm:$0x1] }
 0x38d   :  { %v953_v0 = vpop.permute.xlu1 %952  ;;  %1064 = vrot.lane.b32.xlu0 %v2982_v2, %s2325_s25 }
 0x38e   :  { %558 = vst.msk [vmem:[%s5179_s6 + $0x61] sm:$0x1] %vm553_vm3, %v541_v48  ;;  %v997_v41 = vadd.f32 %v953_v0, %v915_v49  ;;  %v3711_v49 = vrot.slane %v2791_v36, 5 }
 0x38f   :  { %1314 = vrot.lane.b32.xlu1 %v2833_v42, %s2327_s27  ;;  %v502_v51 = vpop.permute.xlu0 %501 }
 0x390   :  { %1013 = vst.msk [vmem:[%s5179_s6 + $0x4d] sm:$0x1] %vm553_vm3, %v997_v41  ;;  %v543_v52 = vadd.f32 %v502_v51, %v461_v50  ;;  %v582_v41 = vld [vmem:[%s5179_s6 + $0x122] sm:$0x1] }
 0x391   :  { %v957_v54 = vpop.permute.xlu1 %956  ;;  %1068 = vrot.lane.b32.xlu0 %v3003_v9, %s2325_s25 }
 0x392   :  { %560 = vst.msk [vmem:[%s5179_s6 + $0x91] sm:$0x1] %vm553_vm3, %v543_v52  ;;  %v999_v42 = vadd.f32 %v957_v54, %v917_v53  ;;  %v1031_v52 = vld [vmem:[%s5179_s6 + $0x7e] sm:$0x1]  ;;  %v3732_v54 = vrot.slane %v2791_v36, 7 }
 0x393   :  { %1318 = vrot.lane.b32.xlu1 %v2840_v43, %s2327_s27  ;;  %v510_v56 = vpop.permute.xlu0 %509  ;;  %v3585_v43 = vrot.slane %v2786_v34, 1 }
 0x394   :  { %1015 = vst.msk [vmem:[%s5179_s6 + $0x7d] sm:$0x1] %vm553_vm3, %v999_v42  ;;  %v547_v57 = vadd.f32 %v510_v56, %v465_v55  ;;  %v584_v55 = vld [vmem:[%s5179_s6 + $0x152] sm:$0x1] }
 0x395   :  { %v961_v59 = vpop.permute.xlu1 %960  ;;  %1072 = vrot.lane.b32.xlu0 %v3024_v16, %s2325_s25 }
 0x396   :  { %564 = vst.msk [vmem:[%s5179_s6 + $0xf1] sm:$0x1] %vm553_vm3, %v547_v57  ;;  %v1001_v60 = vadd.f32 %v961_v59, %v919_v58  ;;  %v1033_v58 = vld [vmem:[%s5179_s6 + $0xae] sm:$0x1] }
 0x397   :  { %v514_v62 = vpop.permute.xlu0 %513  ;;  %1404 = vrot.lane.b32.xlu1 %v3585_v43, %s2320_s21 }
 0x398   :  { %1017 = vst.msk [vmem:[%s5179_s6 + $0xad] sm:$0x1] %vm553_vm3, %v1001_v60  ;;  %v549_v63 = vadd.f32 %v514_v62, %v467_v61  ;;  %v686_v61 = vld [vmem:[%s5179_s6 + $0x33] sm:$0x1] }
 0x399   :  { %v965_v4 = vpop.permute.xlu1 %964  ;;  %1080 = vrot.lane.b32.xlu0 %v3045_v24, %s2325_s25 }
 0x39a   :  { %566 = vst.msk [vmem:[%s5179_s6 + $0x121] sm:$0x1] %vm553_vm3, %v549_v63  ;;  %v1003_v6 = vadd.f32 %v965_v4, %v921_v3  ;;  %v1035_v3 = vld [vmem:[%s5179_s6 + $0xde] sm:$0x1] }
 0x39b   :  { %v518_v8 = vpop.permute.xlu0 %517  ;;  %1408 = vrot.lane.b32.xlu1 %v3606_v5, %s2320_s21 }
 0x39c   :  { %1019 = vst.msk [vmem:[%s5179_s6 + $0xdd] sm:$0x1] %vm553_vm3, %v1003_v6  ;;  %v551_v10 = vadd.f32 %v518_v8, %v469_v7  ;;  %v688_v7 = vld [vmem:[%s5179_s6 + $0x63] sm:$0x1] }
 0x39d   :  { %v969_v12 = vpop.permute.xlu1 %968  ;;  %1084 = vrot.lane.b32.xlu0 %v3066_v31, %s2325_s25 }
 0x39e   :  { %568 = vst.msk [vmem:[%s5179_s6 + $0x151] sm:$0x1] %vm553_vm3, %v551_v10  ;;  %v1005_v13 = vadd.f32 %v969_v12, %v923_v11  ;;  %v1037_v11 = vld [vmem:[%s5179_s6 + $0x10e] sm:$0x1] }
 0x39f   :  { %v609_v15 = vpop.permute.xlu0 %608  ;;  %1412 = vrot.lane.b32.xlu1 %v3627_v35, %s2320_s21 }
 0x3a0   :  { %1021 = vst.msk [vmem:[%s5179_s6 + $0x10d] sm:$0x1] %vm553_vm3, %v1005_v13  ;;  %v654_v17 = vadd.f32 %v609_v15, %v572_v14  ;;  %v690_v14 = vld [vmem:[%s5179_s6 + $0x93] sm:$0x1] }
 0x3a1   :  { %v973_v37 = vpop.permute.xlu1 %972  ;;  %1088 = vrot.lane.b32.xlu0 %v3087_v46, %s2325_s25 }
 0x3a2   :  { %670 = vst.msk [vmem:[%s5179_s6 + $0x32] sm:$0x1] %vm553_vm3, %v654_v17  ;;  %v1007_v20 = vadd.f32 %v973_v37, %v925_v18  ;;  %v1039_v17 = vld [vmem:[%s5179_s6 + $0x13e] sm:$0x1] }
 0x3a3   :  { %v613_v23 = vpop.permute.xlu0 %612  ;;  %1416 = vrot.lane.b32.xlu1 %v3648_v19, %s2320_s21 }
 0x3a4   :  { %1023 = vst.msk [vmem:[%s5179_s6 + $0x13d] sm:$0x1] %vm553_vm3, %v1007_v20  ;;  %v656_v25 = vadd.f32 %v613_v23, %v574_v22  ;;  %v694_v20 = vld [vmem:[%s5179_s6 + $0xf3] sm:$0x1]  ;;  %v1041_v23 = vld [vmem:[%s5179_s6 + $0x16e] sm:$0x1] }
 0x3a5   :  { %v977_v26 = vpop.permute.xlu1 %976  ;;  %1178 = vrot.lane.b32.xlu0 %v2982_v2, %s2326_s26 }
 0x3a6   :  { %672 = vst.msk [vmem:[%s5179_s6 + $0x62] sm:$0x1] %vm553_vm3, %v656_v25  ;;  %v1009_v28 = vadd.f32 %v977_v26, %v927_v38  ;;  %v696_v26 = vld [vmem:[%s5179_s6 + $0x123] sm:$0x1] }
 0x3a7   :  { %v617_v30 = vpop.permute.xlu0 %616  ;;  %1420 = vrot.lane.b32.xlu1 %v3669_v27, %s2320_s21 }
 0x3a8   :  { %1025 = vst.msk [vmem:[%s5179_s6 + $0x16d] sm:$0x1] %vm553_vm3, %v1009_v28  ;;  %v658_v39 = vadd.f32 %v617_v30, %v576_v29  ;;  %v1141_v29 = vld [vmem:[%s5179_s6 + $0x1f] sm:$0x1] }
 0x3a9   :  { %v1063_v33 = vpop.permute.xlu1 %1062  ;;  %1182 = vrot.lane.b32.xlu0 %v3003_v9, %s2326_s26 }
 0x3aa   :  { %674 = vst.msk [vmem:[%s5179_s6 + $0x92] sm:$0x1] %vm553_vm3, %v658_v39  ;;  %v1109_v1 = vadd.f32 %v1063_v33, %v1027_v32  ;;  %v698_v32 = vld [vmem:[%s5179_s6 + $0x153] sm:$0x1] }
 0x3ab   :  { %v625_v40 = vpop.permute.xlu0 %624  ;;  %1424 = vrot.lane.b32.xlu1 %v3690_v21, %s2320_s21 }
 0x3ac   :  { %1125 = vst.msk [vmem:[%s5179_s6 + $0x1e] sm:$0x1] %vm553_vm3, %v1109_v1  ;;  %v662_v45 = vadd.f32 %v625_v40, %v580_v44  ;;  %v1143_v1 = vld [vmem:[%s5179_s6 + $0x4f] sm:$0x1] }
 0x3ad   :  { %v1067_v48 = vpop.permute.xlu1 %1066  ;;  %1186 = vrot.lane.b32.xlu0 %v3024_v16, %s2326_s26 }
 0x3ae   :  { %678 = vst.msk [vmem:[%s5179_s6 + $0xf2] sm:$0x1] %vm553_vm3, %v662_v45  ;;  %v1111_v0 = vadd.f32 %v1067_v48, %v1029_v47  ;;  %v800_v45 = vld [vmem:[%s5179_s6 + $0x34] sm:$0x1]  ;;  %v1145_v48 = vld [vmem:[%s5179_s6 + $0x7f] sm:$0x1] }
 0x3af   :  { %v629_v50 = vpop.permute.xlu0 %628  ;;  %1428 = vrot.lane.b32.xlu1 %v3711_v49, %s2320_s21 }
 0x3b0   :  { %1127 = vst.msk [vmem:[%s5179_s6 + $0x4e] sm:$0x1] %vm553_vm3, %v1111_v0  ;;  %v664_v51 = vadd.f32 %v629_v50, %v582_v41  ;;  %v802_v50 = vld [vmem:[%s5179_s6 + $0x64] sm:$0x1] }
 0x3b1   :  { %v1071_v53 = vpop.permute.xlu1 %1070  ;;  %1194 = vrot.lane.b32.xlu0 %v3045_v24, %s2326_s26 }
 0x3b2   :  { %680 = vst.msk [vmem:[%s5179_s6 + $0x122] sm:$0x1] %vm553_vm3, %v664_v51  ;;  %v1113_v42 = vadd.f32 %v1071_v53, %v1031_v52  ;;  %v3888_v52 = vrot.slane %v2786_v34, 2  ;;  %v1147_v53 = vld [vmem:[%s5179_s6 + $0xaf] sm:$0x1] }
 0x3b3   :  { %v633_v56 = vpop.permute.xlu0 %632  ;;  %1432 = vrot.lane.b32.xlu1 %v3732_v54, %s2320_s21 }
 0x3b4   :  { %1129 = vst.msk [vmem:[%s5179_s6 + $0x7e] sm:$0x1] %vm553_vm3, %v1113_v42  ;;  %v666_v57 = vadd.f32 %v633_v56, %v584_v55  ;;  %v804_v56 = vld [vmem:[%s5179_s6 + $0x94] sm:$0x1] }
 0x3b5   :  { %v1075_v59 = vpop.permute.xlu1 %1074  ;;  %1198 = vrot.lane.b32.xlu0 %v3066_v31, %s2326_s26 }
 0x3b6   :  { %682 = vst.msk [vmem:[%s5179_s6 + $0x152] sm:$0x1] %vm553_vm3, %v666_v57  ;;  %v1115_v60 = vadd.f32 %v1075_v59, %v1033_v58  ;;  %v3909_v58 = vrot.slane %v2786_v34, 4 }
 0x3b7   :  { %v723_v62 = vpop.permute.xlu0 %722  ;;  %1518 = vrot.lane.b32.xlu1 %v3585_v43, %s2321_s1 }
 0x3b8   :  { %1131 = vst.msk [vmem:[%s5179_s6 + $0xae] sm:$0x1] %vm553_vm3, %v1115_v60  ;;  %v768_v63 = vadd.f32 %v723_v62, %v686_v61  ;;  %v1149_v60 = vld [vmem:[%s5179_s6 + $0xdf] sm:$0x1] }
 0x3b9   :  { %v1079_v4 = vpop.permute.xlu1 %1078  ;;  %1202 = vrot.lane.b32.xlu0 %v3087_v46, %s2326_s26 }
 0x3ba   :  { %784 = vst.msk [vmem:[%s5179_s6 + $0x33] sm:$0x1] %vm553_vm3, %v768_v63  ;;  %v1117_v6 = vadd.f32 %v1079_v4, %v1035_v3  ;;  %v808_v63 = vld [vmem:[%s5179_s6 + $0xf4] sm:$0x1]  ;;  %v3930_v4 = vrot.slane %v2786_v34, 6 }
 0x3bb   :  { %v727_v8 = vpop.permute.xlu0 %726  ;;  %1522 = vrot.lane.b32.xlu1 %v3606_v5, %s2321_s1 }
 0x3bc   :  { %1133 = vst.msk [vmem:[%s5179_s6 + $0xde] sm:$0x1] %vm553_vm3, %v1117_v6  ;;  %v770_v10 = vadd.f32 %v727_v8, %v688_v7  ;;  %v1151_v7 = vld [vmem:[%s5179_s6 + $0x10f] sm:$0x1] }
 0x3bd   :  { %v1083_v12 = vpop.permute.xlu1 %1082  ;;  %1292 = vrot.lane.b32.xlu0 %v2982_v2, %s2327_s27 }
 0x3be   :  { %786 = vst.msk [vmem:[%s5179_s6 + $0x63] sm:$0x1] %vm553_vm3, %v770_v10  ;;  %v1119_v13 = vadd.f32 %v1083_v12, %v1037_v11  ;;  %v810_v10 = vld [vmem:[%s5179_s6 + $0x124] sm:$0x1]  ;;  %v3951_v12 = vrot.slane %v2791_v36, 2 }
 0x3bf   :  { %v731_v15 = vpop.permute.xlu0 %730  ;;  %1526 = vrot.lane.b32.xlu1 %v3627_v35, %s2321_s1 }
 0x3c0   :  { %1135 = vst.msk [vmem:[%s5179_s6 + $0x10e] sm:$0x1] %vm553_vm3, %v1119_v13  ;;  %v772_v2 = vadd.f32 %v731_v15, %v690_v14  ;;  %v1153_v14 = vld [vmem:[%s5179_s6 + $0x13f] sm:$0x1] }
 0x3c1   :  { %v1087_v18 = vpop.permute.xlu1 %1086  ;;  %1296 = vrot.lane.b32.xlu0 %v3003_v9, %s2327_s27 }
 0x3c2   :  { %788 = vst.msk [vmem:[%s5179_s6 + $0x93] sm:$0x1] %vm553_vm3, %v772_v2  ;;  %v1121_v37 = vadd.f32 %v1087_v18, %v1039_v17  ;;  %v812_v17 = vld [vmem:[%s5179_s6 + $0x154] sm:$0x1] }
 0x3c3   :  { %v739_v22 = vpop.permute.xlu0 %738  ;;  %1530 = vrot.lane.b32.xlu1 %v3648_v19, %s2321_s1 }
 0x3c4   :  { %1137 = vst.msk [vmem:[%s5179_s6 + $0x13e] sm:$0x1] %vm553_vm3, %v1121_v37  ;;  %v776_v9 = vadd.f32 %v739_v22, %v694_v20  ;;  %v3972_v37 = vrot.slane %v2791_v36, 4  ;;  %v1155_v22 = vld [vmem:[%s5179_s6 + $0x16f] sm:$0x1] }
 0x3c5   :  { %v1091_v25 = vpop.permute.xlu1 %1090  ;;  %1300 = vrot.lane.b32.xlu0 %v3024_v16, %s2327_s27 }
 0x3c6   :  { %792 = vst.msk [vmem:[%s5179_s6 + $0xf3] sm:$0x1] %vm553_vm3, %v776_v9  ;;  %v1123_v38 = vadd.f32 %v1091_v25, %v1041_v23  ;;  %v914_v25 = vld [vmem:[%s5179_s6 + $0x35] sm:$0x1] }
 0x3c7   :  { %v743_v28 = vpop.permute.xlu0 %742  ;;  %1534 = vrot.lane.b32.xlu1 %v3669_v27, %s2321_s1 }
 0x3c8   :  { %1139 = vst.msk [vmem:[%s5179_s6 + $0x16e] sm:$0x1] %vm553_vm3, %v1123_v38  ;;  %v778_v16 = vadd.f32 %v743_v28, %v696_v26  ;;  %v3993_v26 = vrot.slane %v2791_v36, 6 }
 0x3c9   :  { %v1177_v30 = vpop.permute.xlu1 %1176  ;;  %1308 = vrot.lane.b32.xlu0 %v3045_v24, %s2327_s27 }
 0x3ca   :  { %794 = vst.msk [vmem:[%s5179_s6 + $0x123] sm:$0x1] %vm553_vm3, %v778_v16  ;;  %v1223_v39 = vadd.f32 %v1177_v30, %v1141_v29  ;;  %v1255_v16 = vld [vmem:[%s5179_s6 + $0x20] sm:$0x1]  ;;  %v916_v30 = vld [vmem:[%s5179_s6 + $0x65] sm:$0x1] }
 0x3cb   :  { %v747_v33 = vpop.permute.xlu0 %746  ;;  %1538 = vrot.lane.b32.xlu1 %v3690_v21, %s2321_s1 }
 0x3cc   :  { %1239 = vst.msk [vmem:[%s5179_s6 + $0x1f] sm:$0x1] %vm553_vm3, %v1223_v39  ;;  %v780_v24 = vadd.f32 %v747_v33, %v698_v32  ;;  %v1257_v33 = vld [vmem:[%s5179_s6 + $0x50] sm:$0x1] }
 0x3cd   :  { %v1181_v44 = vpop.permute.xlu1 %1180  ;;  %1312 = vrot.lane.b32.xlu0 %v3066_v31, %s2327_s27 }
 0x3ce   :  { %796 = vst.msk [vmem:[%s5179_s6 + $0x153] sm:$0x1] %vm553_vm3, %v780_v24  ;;  %v1225_v40 = vadd.f32 %v1181_v44, %v1143_v1  ;;  %v918_v44 = vld [vmem:[%s5179_s6 + $0x95] sm:$0x1] }
 0x3cf   :  { %v837_v47 = vpop.permute.xlu0 %836  ;;  %1542 = vrot.lane.b32.xlu1 %v3711_v49, %s2321_s1 }
 0x3d0   :  { %1241 = vst.msk [vmem:[%s5179_s6 + $0x4f] sm:$0x1] %vm553_vm3, %v1225_v40  ;;  %v882_v31 = vadd.f32 %v837_v47, %v800_v45  ;;  %v1259_v47 = vld [vmem:[%s5179_s6 + $0x80] sm:$0x1] }
 0x3d1   :  { %v1185_v0 = vpop.permute.xlu1 %1184  ;;  %1316 = vrot.lane.b32.xlu0 %v3087_v46, %s2327_s27 }
 0x3d2   :  { %898 = vst.msk [vmem:[%s5179_s6 + $0x34] sm:$0x1] %vm553_vm3, %v882_v31  ;;  %v1227_v41 = vadd.f32 %v1185_v0, %v1145_v48  ;;  %v922_v0 = vld [vmem:[%s5179_s6 + $0xf5] sm:$0x1] }
 0x3d3   :  { %v841_v51 = vpop.permute.xlu0 %840  ;;  %1546 = vrot.lane.b32.xlu1 %v3732_v54, %s2321_s1 }
 0x3d4   :  { %1243 = vst.msk [vmem:[%s5179_s6 + $0x7f] sm:$0x1] %vm553_vm3, %v1227_v41  ;;  %v884_v46 = vadd.f32 %v841_v51, %v802_v50  ;;  %v1261_v51 = vld [vmem:[%s5179_s6 + $0xb0] sm:$0x1] }
 0x3d5   :  { %v1189_v42 = vpop.permute.xlu1 %1188  ;;  %1406 = vrot.lane.b32.xlu0 %v3888_v52, %s2320_s21 }
 0x3d6   :  { %900 = vst.msk [vmem:[%s5179_s6 + $0x64] sm:$0x1] %vm553_vm3, %v884_v46  ;;  %v1229_v55 = vadd.f32 %v1189_v42, %v1147_v53  ;;  %v924_v42 = vld [vmem:[%s5179_s6 + $0x125] sm:$0x1] }
 0x3d7   :  { %v845_v57 = vpop.permute.xlu0 %844  ;;  %1632 = vrot.lane.b32.xlu1 %v3585_v43, %s2322_s22 }
 0x3d8   :  { %1245 = vst.msk [vmem:[%s5179_s6 + $0xaf] sm:$0x1] %vm553_vm3, %v1229_v55  ;;  %v886_v59 = vadd.f32 %v845_v57, %v804_v56  ;;  %v1263_v57 = vld [vmem:[%s5179_s6 + $0xe0] sm:$0x1] }
 0x3d9   :  { %v1193_v61 = vpop.permute.xlu1 %1192  ;;  %1410 = vrot.lane.b32.xlu0 %v3909_v58, %s2320_s21 }
 0x3da   :  { %902 = vst.msk [vmem:[%s5179_s6 + $0x94] sm:$0x1] %vm553_vm3, %v886_v59  ;;  %v1231_v62 = vadd.f32 %v1193_v61, %v1149_v60  ;;  %v926_v61 = vld [vmem:[%s5179_s6 + $0x155] sm:$0x1] }
 0x3db   :  { %v853_v3 = vpop.permute.xlu0 %852  ;;  %1636 = vrot.lane.b32.xlu1 %v3606_v5, %s2322_s22 }
 0x3dc   :  { %1247 = vst.msk [vmem:[%s5179_s6 + $0xdf] sm:$0x1] %vm553_vm3, %v1231_v62  ;;  %v890_v6 = vadd.f32 %v853_v3, %v808_v63  ;;  %v1265_v3 = vld [vmem:[%s5179_s6 + $0x110] sm:$0x1] }
 0x3dd   :  { %v1197_v8 = vpop.permute.xlu1 %1196  ;;  %1414 = vrot.lane.b32.xlu0 %v3930_v4, %s2320_s21 }
 0x3de   :  { %906 = vst.msk [vmem:[%s5179_s6 + $0xf4] sm:$0x1] %vm553_vm3, %v890_v6  ;;  %v1233_v34 = vadd.f32 %v1197_v8, %v1151_v7  ;;  %v1028_v8 = vld [vmem:[%s5179_s6 + $0x36] sm:$0x1] }
 0x3df   :  { %v857_v11 = vpop.permute.xlu0 %856  ;;  %1640 = vrot.lane.b32.xlu1 %v3627_v35, %s2322_s22 }
 0x3e0   :  { %1249 = vst.msk [vmem:[%s5179_s6 + $0x10f] sm:$0x1] %vm553_vm3, %v1233_v34  ;;  %v892_v13 = vadd.f32 %v857_v11, %v810_v10  ;;  %v1267_v11 = vld [vmem:[%s5179_s6 + $0x140] sm:$0x1] }
 0x3e1   :  { %v1201_v15 = vpop.permute.xlu1 %1200  ;;  %1422 = vrot.lane.b32.xlu0 %v3951_v12, %s2320_s21 }
 0x3e2   :  { %908 = vst.msk [vmem:[%s5179_s6 + $0x124] sm:$0x1] %vm553_vm3, %v892_v13  ;;  %v1235_v2 = vadd.f32 %v1201_v15, %v1153_v14  ;;  %v1030_v15 = vld [vmem:[%s5179_s6 + $0x66] sm:$0x1] }
 0x3e3   :  { %v861_v18 = vpop.permute.xlu0 %860  ;;  %1644 = vrot.lane.b32.xlu1 %v3648_v19, %s2322_s22 }
 0x3e4   :  { %1251 = vst.msk [vmem:[%s5179_s6 + $0x13f] sm:$0x1] %vm553_vm3, %v1235_v2  ;;  %v894_v20 = vadd.f32 %v861_v18, %v812_v17  ;;  %v1269_v18 = vld [vmem:[%s5179_s6 + $0x170] sm:$0x1] }
 0x3e5   :  { %v1205_v9 = vpop.permute.xlu1 %1204  ;;  %1426 = vrot.lane.b32.xlu0 %v3972_v37, %s2320_s21 }
 0x3e6   :  { %910 = vst.msk [vmem:[%s5179_s6 + $0x154] sm:$0x1] %vm553_vm3, %v894_v20  ;;  %v1237_v23 = vadd.f32 %v1205_v9, %v1155_v22  ;;  %v1032_v9 = vld [vmem:[%s5179_s6 + $0x96] sm:$0x1] }
 0x3e7   :  { %v951_v38 = vpop.permute.xlu0 %950  ;;  %1648 = vrot.lane.b32.xlu1 %v3669_v27, %s2322_s22 }
 0x3e8   :  { %1253 = vst.msk [vmem:[%s5179_s6 + $0x16f] sm:$0x1] %vm553_vm3, %v1237_v23  ;;  %v996_v28 = vadd.f32 %v951_v38, %v914_v25  ;;  %v1369_v38 = vld [vmem:[%s5179_s6 + $0x21] sm:$0x1] }
 0x3e9   :  { %v1291_v29 = vpop.permute.xlu1 %1290  ;;  %1430 = vrot.lane.b32.xlu0 %v3993_v26, %s2320_s21 }
 0x3ea   :  { %1012 = vst.msk [vmem:[%s5179_s6 + $0x35] sm:$0x1] %vm553_vm3, %v996_v28  ;;  %v1337_v36 = vadd.f32 %v1291_v29, %v1255_v16  ;;  %v1036_v29 = vld [vmem:[%s5179_s6 + $0xf6] sm:$0x1] }
 0x3eb   :  { %v955_v39 = vpop.permute.xlu0 %954  ;;  %1652 = vrot.lane.b32.xlu1 %v3690_v21, %s2322_s22 }
 0x3ec   :  { %1353 = vst.msk [vmem:[%s5179_s6 + $0x20] sm:$0x1] %vm553_vm3, %v1337_v36  ;;  %v998_v32 = vadd.f32 %v955_v39, %v916_v30  ;;  %v1371_v39 = vld [vmem:[%s5179_s6 + $0x51] sm:$0x1] }
 0x3ed   :  { %v1295_v24 = vpop.permute.xlu1 %1294  ;;  %1520 = vrot.lane.b32.xlu0 %v3888_v52, %s2321_s1 }
 0x3ee   :  { %1014 = vst.msk [vmem:[%s5179_s6 + $0x65] sm:$0x1] %vm553_vm3, %v998_v32  ;;  %v1339_v1 = vadd.f32 %v1295_v24, %v1257_v33  ;;  %v1038_v24 = vld [vmem:[%s5179_s6 + $0x126] sm:$0x1] }
 0x3ef   :  { %v959_v40 = vpop.permute.xlu0 %958  ;;  %1656 = vrot.lane.b32.xlu1 %v3711_v49, %s2322_s22 }
 0x3f0   :  { %1355 = vst.msk [vmem:[%s5179_s6 + $0x50] sm:$0x1] %vm553_vm3, %v1339_v1  ;;  %v1000_v45 = vadd.f32 %v959_v40, %v918_v44  ;;  %v1373_v40 = vld [vmem:[%s5179_s6 + $0x81] sm:$0x1] }
 0x3f1   :  { %v1299_v31 = vpop.permute.xlu1 %1298  ;;  %1524 = vrot.lane.b32.xlu0 %v3909_v58, %s2321_s1 }
 0x3f2   :  { %1016 = vst.msk [vmem:[%s5179_s6 + $0x95] sm:$0x1] %vm553_vm3, %v1000_v45  ;;  %v1341_v48 = vadd.f32 %v1299_v31, %v1259_v47  ;;  %v1040_v31 = vld [vmem:[%s5179_s6 + $0x156] sm:$0x1] }
 0x3f3   :  { %v967_v41 = vpop.permute.xlu0 %966  ;;  %1660 = vrot.lane.b32.xlu1 %v3732_v54, %s2322_s22 }
 0x3f4   :  { %1357 = vst.msk [vmem:[%s5179_s6 + $0x80] sm:$0x1] %vm553_vm3, %v1341_v48  ;;  %v1004_v50 = vadd.f32 %v967_v41, %v922_v0  ;;  %v1375_v41 = vld [vmem:[%s5179_s6 + $0xb1] sm:$0x1] }
 0x3f5   :  { %v1303_v46 = vpop.permute.xlu1 %1302  ;;  %1528 = vrot.lane.b32.xlu0 %v3930_v4, %s2321_s1 }
 0x3f6   :  { %1020 = vst.msk [vmem:[%s5179_s6 + $0xf5] sm:$0x1] %vm553_vm3, %v1004_v50  ;;  %v1343_v53 = vadd.f32 %v1303_v46, %v1261_v51  ;;  %v1142_v46 = vld [vmem:[%s5179_s6 + $0x37] sm:$0x1] }
 0x3f7   :  { %v971_v55 = vpop.permute.xlu0 %970  ;;  %1746 = vrot.lane.b32.xlu1 %v3585_v43, %s2323_s23 }
 0x3f8   :  { %1359 = vst.msk [vmem:[%s5179_s6 + $0xb0] sm:$0x1] %vm553_vm3, %v1343_v53  ;;  %v1006_v56 = vadd.f32 %v971_v55, %v924_v42  ;;  %v1377_v55 = vld [vmem:[%s5179_s6 + $0xe1] sm:$0x1] }
 0x3f9   :  { %v1307_v59 = vpop.permute.xlu1 %1306  ;;  %1536 = vrot.lane.b32.xlu0 %v3951_v12, %s2321_s1 }
 0x3fa   :  { %1022 = vst.msk [vmem:[%s5179_s6 + $0x125] sm:$0x1] %vm553_vm3, %v1006_v56  ;;  %v1345_v60 = vadd.f32 %v1307_v59, %v1263_v57  ;;  %v1144_v59 = vld [vmem:[%s5179_s6 + $0x67] sm:$0x1] }
 0x3fb   :  { %v975_v62 = vpop.permute.xlu0 %974  ;;  %1750 = vrot.lane.b32.xlu1 %v3606_v5, %s2323_s23 }
 0x3fc   :  { %1361 = vst.msk [vmem:[%s5179_s6 + $0xe0] sm:$0x1] %vm553_vm3, %v1345_v60  ;;  %v1008_v63 = vadd.f32 %v975_v62, %v926_v61  ;;  %v1379_v62 = vld [vmem:[%s5179_s6 + $0x111] sm:$0x1] }
 0x3fd   :  { %v1311_v6 = vpop.permute.xlu1 %1310  ;;  %1540 = vrot.lane.b32.xlu0 %v3972_v37, %s2321_s1 }
 0x3fe   :  { %1024 = vst.msk [vmem:[%s5179_s6 + $0x155] sm:$0x1] %vm553_vm3, %v1008_v63  ;;  %v1347_v7 = vadd.f32 %v1311_v6, %v1265_v3  ;;  %v1146_v6 = vld [vmem:[%s5179_s6 + $0x97] sm:$0x1] }
 0x3ff   :  { %v1065_v34 = vpop.permute.xlu0 %1064  ;;  %1754 = vrot.lane.b32.xlu1 %v3627_v35, %s2323_s23 }
 0x400   :  { %1363 = vst.msk [vmem:[%s5179_s6 + $0x110] sm:$0x1] %vm553_vm3, %v1347_v7  ;;  %v1110_v10 = vadd.f32 %v1065_v34, %v1028_v8  ;;  %v1381_v34 = vld [vmem:[%s5179_s6 + $0x141] sm:$0x1] }
 0x401   :  { %v1315_v13 = vpop.permute.xlu1 %1314  ;;  %1544 = vrot.lane.b32.xlu0 %v3993_v26, %s2321_s1 }
 0x402   :  { %1126 = vst.msk [vmem:[%s5179_s6 + $0x36] sm:$0x1] %vm553_vm3, %v1110_v10  ;;  %v1349_v14 = vadd.f32 %v1315_v13, %v1267_v11  ;;  %v1150_v13 = vld [vmem:[%s5179_s6 + $0xf7] sm:$0x1] }
 0x403   :  { %v1069_v2 = vpop.permute.xlu0 %1068  ;;  %1758 = vrot.lane.b32.xlu1 %v3648_v19, %s2323_s23 }
 0x404   :  { %1365 = vst.msk [vmem:[%s5179_s6 + $0x140] sm:$0x1] %vm553_vm3, %v1349_v14  ;;  %v1112_v17 = vadd.f32 %v1069_v2, %v1030_v15  ;;  %v1383_v2 = vld [vmem:[%s5179_s6 + $0x171] sm:$0x1] }
 0x405   :  { %v1319_v20 = vpop.permute.xlu1 %1318  ;;  %1634 = vrot.lane.b32.xlu0 %v3888_v52, %s2322_s22 }
 0x406   :  { %1128 = vst.msk [vmem:[%s5179_s6 + $0x66] sm:$0x1] %vm553_vm3, %v1112_v17  ;;  %v1351_v22 = vadd.f32 %v1319_v20, %v1269_v18  ;;  %v1152_v20 = vld [vmem:[%s5179_s6 + $0x127] sm:$0x1] }
 0x407   :  { %v1073_v23 = vpop.permute.xlu0 %1072  ;;  %1762 = vrot.lane.b32.xlu1 %v3669_v27, %s2323_s23 }
 0x408   :  { %1367 = vst.msk [vmem:[%s5179_s6 + $0x170] sm:$0x1] %vm553_vm3, %v1351_v22  ;;  %v1114_v25 = vadd.f32 %v1073_v23, %v1032_v9  ;;  %v1483_v23 = vld [vmem:[%s5179_s6 + $0x22] sm:$0x1] }
 0x409   :  { %1638 = vrot.lane.b32.xlu0 %v3909_v58, %s2322_s22  ;;  %v1405_v28 = vpop.permute.xlu1 %1404 }
 0x40a   :  { %1130 = vst.msk [vmem:[%s5179_s6 + $0x96] sm:$0x1] %vm553_vm3, %v1114_v25  ;;  %v1451_v16 = vadd.f32 %v1405_v28, %v1369_v38  ;;  %v1154_v28 = vld [vmem:[%s5179_s6 + $0x157] sm:$0x1] }
 0x40b   :  { %v1081_v36 = vpop.permute.xlu0 %1080  ;;  %1766 = vrot.lane.b32.xlu1 %v3690_v21, %s2323_s23 }
 0x40c   :  { %1467 = vst.msk [vmem:[%s5179_s6 + $0x21] sm:$0x1] %vm553_vm3, %v1451_v16  ;;  %v1118_v30 = vadd.f32 %v1081_v36, %v1036_v29  ;;  %v1485_v36 = vld [vmem:[%s5179_s6 + $0x52] sm:$0x1] }
 0x40d   :  { %1642 = vrot.lane.b32.xlu0 %v3930_v4, %s2322_s22  ;;  %v1409_v32 = vpop.permute.xlu1 %1408 }
 0x40e   :  { %1134 = vst.msk [vmem:[%s5179_s6 + $0xf6] sm:$0x1] %vm553_vm3, %v1118_v30  ;;  %v1453_v33 = vadd.f32 %v1409_v32, %v1371_v39  ;;  %v1256_v32 = vld [vmem:[%s5179_s6 + $0x38] sm:$0x1] }
 0x40f   :  { %v1085_v1 = vpop.permute.xlu0 %1084  ;;  %1770 = vrot.lane.b32.xlu1 %v3711_v49, %s2323_s23 }
 0x410   :  { %1469 = vst.msk [vmem:[%s5179_s6 + $0x51] sm:$0x1] %vm553_vm3, %v1453_v33  ;;  %v1120_v44 = vadd.f32 %v1085_v1, %v1038_v24  ;;  %v1487_v1 = vld [vmem:[%s5179_s6 + $0x82] sm:$0x1] }
 0x411   :  { %1650 = vrot.lane.b32.xlu0 %v3951_v12, %s2322_s22  ;;  %v1413_v45 = vpop.permute.xlu1 %1412 }
 0x412   :  { %1136 = vst.msk [vmem:[%s5179_s6 + $0x126] sm:$0x1] %vm553_vm3, %v1120_v44  ;;  %v1455_v47 = vadd.f32 %v1413_v45, %v1373_v40  ;;  %v1258_v45 = vld [vmem:[%s5179_s6 + $0x68] sm:$0x1] }
 0x413   :  { %v1089_v48 = vpop.permute.xlu0 %1088  ;;  %1774 = vrot.lane.b32.xlu1 %v3732_v54, %s2323_s23 }
 0x414   :  { %1471 = vst.msk [vmem:[%s5179_s6 + $0x81] sm:$0x1] %vm553_vm3, %v1455_v47  ;;  %v1122_v0 = vadd.f32 %v1089_v48, %v1040_v31  ;;  %v1489_v48 = vld [vmem:[%s5179_s6 + $0xb2] sm:$0x1] }
 0x415   :  { %1654 = vrot.lane.b32.xlu0 %v3972_v37, %s2322_s22  ;;  %v1417_v50 = vpop.permute.xlu1 %1416 }
 0x416   :  { %1138 = vst.msk [vmem:[%s5179_s6 + $0x156] sm:$0x1] %vm553_vm3, %v1122_v0  ;;  %v1457_v51 = vadd.f32 %v1417_v50, %v1375_v41  ;;  %v1260_v50 = vld [vmem:[%s5179_s6 + $0x98] sm:$0x1] }
 0x417   :  { %v1179_v53 = vpop.permute.xlu0 %1178  ;;  %1860 = vrot.lane.b32.xlu1 %v3585_v43, %s2324_s24 }
 0x418   :  { %1473 = vst.msk [vmem:[%s5179_s6 + $0xb1] sm:$0x1] %vm553_vm3, %v1457_v51  ;;  %v1224_v42 = vadd.f32 %v1179_v53, %v1142_v46  ;;  %v1491_v53 = vld [vmem:[%s5179_s6 + $0xe2] sm:$0x1] }
 0x419   :  { %1658 = vrot.lane.b32.xlu0 %v3993_v26, %s2322_s22  ;;  %v1421_v56 = vpop.permute.xlu1 %1420 }
 0x41a   :  { %1240 = vst.msk [vmem:[%s5179_s6 + $0x37] sm:$0x1] %vm553_vm3, %v1224_v42  ;;  %v1459_v57 = vadd.f32 %v1421_v56, %v1377_v55  ;;  %v1264_v56 = vld [vmem:[%s5179_s6 + $0xf8] sm:$0x1] }
 0x41b   :  { %v1183_v60 = vpop.permute.xlu0 %1182  ;;  %1864 = vrot.lane.b32.xlu1 %v3606_v5, %s2324_s24 }
 0x41c   :  { %1475 = vst.msk [vmem:[%s5179_s6 + $0xe1] sm:$0x1] %vm553_vm3, %v1459_v57  ;;  %v1226_v61 = vadd.f32 %v1183_v60, %v1144_v59  ;;  %v1493_v60 = vld [vmem:[%s5179_s6 + $0x112] sm:$0x1] }
 0x41d   :  { %1748 = vrot.lane.b32.xlu0 %v3888_v52, %s2323_s23  ;;  %v1425_v63 = vpop.permute.xlu1 %1424 }
 0x41e   :  { %1242 = vst.msk [vmem:[%s5179_s6 + $0x67] sm:$0x1] %vm553_vm3, %v1226_v61  ;;  %v1461_v3 = vadd.f32 %v1425_v63, %v1379_v62  ;;  %v1266_v63 = vld [vmem:[%s5179_s6 + $0x128] sm:$0x1] }
 0x41f   :  { %v1187_v7 = vpop.permute.xlu0 %1186  ;;  %1868 = vrot.lane.b32.xlu1 %v3627_v35, %s2324_s24 }
 0x420   :  { %1477 = vst.msk [vmem:[%s5179_s6 + $0x111] sm:$0x1] %vm553_vm3, %v1461_v3  ;;  %v1228_v8 = vadd.f32 %v1187_v7, %v1146_v6  ;;  %v1495_v7 = vld [vmem:[%s5179_s6 + $0x142] sm:$0x1] }
 0x421   :  { %1752 = vrot.lane.b32.xlu0 %v3909_v58, %s2323_s23  ;;  %v1429_v10 = vpop.permute.xlu1 %1428 }
 0x422   :  { %1244 = vst.msk [vmem:[%s5179_s6 + $0x97] sm:$0x1] %vm553_vm3, %v1228_v8  ;;  %v1463_v11 = vadd.f32 %v1429_v10, %v1381_v34  ;;  %v1268_v10 = vld [vmem:[%s5179_s6 + $0x158] sm:$0x1] }
 0x423   :  { %v1195_v14 = vpop.permute.xlu0 %1194  ;;  %1872 = vrot.lane.b32.xlu1 %v3648_v19, %s2324_s24 }
 0x424   :  { %1479 = vst.msk [vmem:[%s5179_s6 + $0x141] sm:$0x1] %vm553_vm3, %v1463_v11  ;;  %v1232_v15 = vadd.f32 %v1195_v14, %v1150_v13  ;;  %v1497_v14 = vld [vmem:[%s5179_s6 + $0x172] sm:$0x1] }
 0x425   :  { %1756 = vrot.lane.b32.xlu0 %v3930_v4, %s2323_s23  ;;  %v1433_v17 = vpop.permute.xlu1 %1432 }
 0x426   :  { %1248 = vst.msk [vmem:[%s5179_s6 + $0xf7] sm:$0x1] %vm553_vm3, %v1232_v15  ;;  %v1465_v18 = vadd.f32 %v1433_v17, %v1383_v2  ;;  %v1370_v17 = vld [vmem:[%s5179_s6 + $0x39] sm:$0x1] }
 0x427   :  { %v1199_v22 = vpop.permute.xlu0 %1198  ;;  %1876 = vrot.lane.b32.xlu1 %v3669_v27, %s2324_s24 }
 0x428   :  { %1481 = vst.msk [vmem:[%s5179_s6 + $0x171] sm:$0x1] %vm553_vm3, %v1465_v18  ;;  %v1234_v9 = vadd.f32 %v1199_v22, %v1152_v20  ;;  %v1597_v22 = vld [vmem:[%s5179_s6 + $0x23] sm:$0x1] }
 0x429   :  { %1764 = vrot.lane.b32.xlu0 %v3951_v12, %s2323_s23  ;;  %v1519_v25 = vpop.permute.xlu1 %1518 }
 0x42a   :  { %1250 = vst.msk [vmem:[%s5179_s6 + $0x127] sm:$0x1] %vm553_vm3, %v1234_v9  ;;  %v1565_v38 = vadd.f32 %v1519_v25, %v1483_v23  ;;  %v1372_v25 = vld [vmem:[%s5179_s6 + $0x69] sm:$0x1] }
 0x42b   :  { %v1203_v16 = vpop.permute.xlu0 %1202  ;;  %1880 = vrot.lane.b32.xlu1 %v3690_v21, %s2324_s24 }
 0x42c   :  { %1581 = vst.msk [vmem:[%s5179_s6 + $0x22] sm:$0x1] %vm553_vm3, %v1565_v38  ;;  %v1236_v29 = vadd.f32 %v1203_v16, %v1154_v28  ;;  %v1599_v16 = vld [vmem:[%s5179_s6 + $0x53] sm:$0x1] }
 0x42d   :  { %1768 = vrot.lane.b32.xlu0 %v3972_v37, %s2323_s23  ;;  %v1523_v30 = vpop.permute.xlu1 %1522 }
 0x42e   :  { %1252 = vst.msk [vmem:[%s5179_s6 + $0x157] sm:$0x1] %vm553_vm3, %v1236_v29  ;;  %v1567_v39 = vadd.f32 %v1523_v30, %v1485_v36  ;;  %v1374_v30 = vld [vmem:[%s5179_s6 + $0x99] sm:$0x1] }
 0x42f   :  { %v1293_v33 = vpop.permute.xlu0 %1292  ;;  %1884 = vrot.lane.b32.xlu1 %v3711_v49, %s2324_s24 }
 0x430   :  { %1583 = vst.msk [vmem:[%s5179_s6 + $0x52] sm:$0x1] %vm553_vm3, %v1567_v39  ;;  %v1338_v24 = vadd.f32 %v1293_v33, %v1256_v32  ;;  %v1601_v33 = vld [vmem:[%s5179_s6 + $0x83] sm:$0x1] }
 0x431   :  { %1772 = vrot.lane.b32.xlu0 %v3993_v26, %s2323_s23  ;;  %v1527_v44 = vpop.permute.xlu1 %1526 }
 0x432   :  { %1354 = vst.msk [vmem:[%s5179_s6 + $0x38] sm:$0x1] %vm553_vm3, %v1338_v24  ;;  %v1569_v40 = vadd.f32 %v1527_v44, %v1487_v1  ;;  %v1378_v44 = vld [vmem:[%s5179_s6 + $0xf9] sm:$0x1] }
 0x433   :  { %v1297_v47 = vpop.permute.xlu0 %1296  ;;  %1888 = vrot.lane.b32.xlu1 %v3732_v54, %s2324_s24 }
 0x434   :  { %1585 = vst.msk [vmem:[%s5179_s6 + $0x82] sm:$0x1] %vm553_vm3, %v1569_v40  ;;  %v1340_v31 = vadd.f32 %v1297_v47, %v1258_v45  ;;  %v1603_v47 = vld [vmem:[%s5179_s6 + $0xb3] sm:$0x1] }
 0x435   :  { %1862 = vrot.lane.b32.xlu0 %v3888_v52, %s2324_s24  ;;  %v1531_v0 = vpop.permute.xlu1 %1530 }
 0x436   :  { %1356 = vst.msk [vmem:[%s5179_s6 + $0x68] sm:$0x1] %vm553_vm3, %v1340_v31  ;;  %v1571_v41 = vadd.f32 %v1531_v0, %v1489_v48  ;;  %v1380_v0 = vld [vmem:[%s5179_s6 + $0x129] sm:$0x1] }
 0x437   :  { %v1301_v51 = vpop.permute.xlu0 %1300  ;;  %1974 = vrot.lane.b32.xlu1 %v3585_v43, %s2325_s25 }
 0x438   :  { %1587 = vst.msk [vmem:[%s5179_s6 + $0xb2] sm:$0x1] %vm553_vm3, %v1571_v41  ;;  %v1342_v46 = vadd.f32 %v1301_v51, %v1260_v50  ;;  %v1605_v51 = vld [vmem:[%s5179_s6 + $0xe3] sm:$0x1] }
 0x439   :  { %1866 = vrot.lane.b32.xlu0 %v3909_v58, %s2324_s24  ;;  %v1535_v42 = vpop.permute.xlu1 %1534 }
 0x43a   :  { %1358 = vst.msk [vmem:[%s5179_s6 + $0x98] sm:$0x1] %vm553_vm3, %v1342_v46  ;;  %v1573_v55 = vadd.f32 %v1535_v42, %v1491_v53  ;;  %v1382_v42 = vld [vmem:[%s5179_s6 + $0x159] sm:$0x1] }
 0x43b   :  { %v1309_v57 = vpop.permute.xlu0 %1308  ;;  %1978 = vrot.lane.b32.xlu1 %v3606_v5, %s2325_s25 }
 0x43c   :  { %1589 = vst.msk [vmem:[%s5179_s6 + $0xe2] sm:$0x1] %vm553_vm3, %v1573_v55  ;;  %v1346_v59 = vadd.f32 %v1309_v57, %v1264_v56  ;;  %v1607_v57 = vld [vmem:[%s5179_s6 + $0x113] sm:$0x1] }
 0x43d   :  { %1870 = vrot.lane.b32.xlu0 %v3930_v4, %s2324_s24  ;;  %v1539_v61 = vpop.permute.xlu1 %1538 }
 0x43e   :  { %1362 = vst.msk [vmem:[%s5179_s6 + $0xf8] sm:$0x1] %vm553_vm3, %v1346_v59  ;;  %v1575_v62 = vadd.f32 %v1539_v61, %v1493_v60  ;;  %v1484_v61 = vld [vmem:[%s5179_s6 + $0x3a] sm:$0x1] }
 0x43f   :  { %v1313_v3 = vpop.permute.xlu0 %1312  ;;  %1982 = vrot.lane.b32.xlu1 %v3627_v35, %s2325_s25 }
 0x440   :  { %1591 = vst.msk [vmem:[%s5179_s6 + $0x112] sm:$0x1] %vm553_vm3, %v1575_v62  ;;  %v1348_v6 = vadd.f32 %v1313_v3, %v1266_v63  ;;  %v1609_v3 = vld [vmem:[%s5179_s6 + $0x143] sm:$0x1] }
 0x441   :  { %1878 = vrot.lane.b32.xlu0 %v3951_v12, %s2324_s24  ;;  %v1543_v8 = vpop.permute.xlu1 %1542 }
 0x442   :  { %1364 = vst.msk [vmem:[%s5179_s6 + $0x128] sm:$0x1] %vm553_vm3, %v1348_v6  ;;  %v1577_v34 = vadd.f32 %v1543_v8, %v1495_v7  ;;  %v1486_v8 = vld [vmem:[%s5179_s6 + $0x6a] sm:$0x1] }
 0x443   :  { %v1317_v11 = vpop.permute.xlu0 %1316  ;;  %1986 = vrot.lane.b32.xlu1 %v3648_v19, %s2325_s25 }
 0x444   :  { %1593 = vst.msk [vmem:[%s5179_s6 + $0x142] sm:$0x1] %vm553_vm3, %v1577_v34  ;;  %v1350_v13 = vadd.f32 %v1317_v11, %v1268_v10  ;;  %v1611_v11 = vld [vmem:[%s5179_s6 + $0x173] sm:$0x1] }
 0x445   :  { %1882 = vrot.lane.b32.xlu0 %v3972_v37, %s2324_s24  ;;  %v1547_v15 = vpop.permute.xlu1 %1546 }
 0x446   :  { %1366 = vst.msk [vmem:[%s5179_s6 + $0x158] sm:$0x1] %vm553_vm3, %v1350_v13  ;;  %v1579_v2 = vadd.f32 %v1547_v15, %v1497_v14  ;;  %v1488_v15 = vld [vmem:[%s5179_s6 + $0x9a] sm:$0x1] }
 0x447   :  { %v1407_v18 = vpop.permute.xlu0 %1406  ;;  %1990 = vrot.lane.b32.xlu1 %v3669_v27, %s2325_s25 }
 0x448   :  { %1595 = vst.msk [vmem:[%s5179_s6 + $0x172] sm:$0x1] %vm553_vm3, %v1579_v2  ;;  %v1452_v20 = vadd.f32 %v1407_v18, %v1370_v17  ;;  %v1711_v18 = vld [vmem:[%s5179_s6 + $0x24] sm:$0x1] }
 0x449   :  { %1886 = vrot.lane.b32.xlu0 %v3993_v26, %s2324_s24  ;;  %v1633_v9 = vpop.permute.xlu1 %1632 }
 0x44a   :  { %1468 = vst.msk [vmem:[%s5179_s6 + $0x39] sm:$0x1] %vm553_vm3, %v1452_v20  ;;  %v1679_v23 = vadd.f32 %v1633_v9, %v1597_v22  ;;  %v1492_v9 = vld [vmem:[%s5179_s6 + $0xfa] sm:$0x1] }
 0x44b   :  { %v1411_v38 = vpop.permute.xlu0 %1410  ;;  %1994 = vrot.lane.b32.xlu1 %v3690_v21, %s2325_s25 }
 0x44c   :  { %1695 = vst.msk [vmem:[%s5179_s6 + $0x23] sm:$0x1] %vm553_vm3, %v1679_v23  ;;  %v1454_v28 = vadd.f32 %v1411_v38, %v1372_v25  ;;  %v1713_v38 = vld [vmem:[%s5179_s6 + $0x54] sm:$0x1] }
 0x44d   :  { %1976 = vrot.lane.b32.xlu0 %v3888_v52, %s2325_s25  ;;  %v1637_v29 = vpop.permute.xlu1 %1636 }
 0x44e   :  { %1470 = vst.msk [vmem:[%s5179_s6 + $0x69] sm:$0x1] %vm553_vm3, %v1454_v28  ;;  %v1681_v36 = vadd.f32 %v1637_v29, %v1599_v16  ;;  %v1494_v29 = vld [vmem:[%s5179_s6 + $0x12a] sm:$0x1] }
 0x44f   :  { %v1415_v39 = vpop.permute.xlu0 %1414  ;;  %1998 = vrot.lane.b32.xlu1 %v3711_v49, %s2325_s25 }
 0x450   :  { %1697 = vst.msk [vmem:[%s5179_s6 + $0x53] sm:$0x1] %vm553_vm3, %v1681_v36  ;;  %v1456_v32 = vadd.f32 %v1415_v39, %v1374_v30  ;;  %v1715_v39 = vld [vmem:[%s5179_s6 + $0x84] sm:$0x1] }
 0x451   :  { %1980 = vrot.lane.b32.xlu0 %v3909_v58, %s2325_s25  ;;  %v1641_v24 = vpop.permute.xlu1 %1640 }
 0x452   :  { %1472 = vst.msk [vmem:[%s5179_s6 + $0x99] sm:$0x1] %vm553_vm3, %v1456_v32  ;;  %v1683_v1 = vadd.f32 %v1641_v24, %v1601_v33  ;;  %v1496_v24 = vld [vmem:[%s5179_s6 + $0x15a] sm:$0x1] }
 0x453   :  { %v1423_v40 = vpop.permute.xlu0 %1422  ;;  %2002 = vrot.lane.b32.xlu1 %v3732_v54, %s2325_s25 }
 0x454   :  { %1699 = vst.msk [vmem:[%s5179_s6 + $0x83] sm:$0x1] %vm553_vm3, %v1683_v1  ;;  %v1460_v45 = vadd.f32 %v1423_v40, %v1378_v44  ;;  %v1717_v40 = vld [vmem:[%s5179_s6 + $0xb4] sm:$0x1] }
 0x455   :  { %1984 = vrot.lane.b32.xlu0 %v3930_v4, %s2325_s25  ;;  %v1645_v31 = vpop.permute.xlu1 %1644 }
 0x456   :  { %1476 = vst.msk [vmem:[%s5179_s6 + $0xf9] sm:$0x1] %vm553_vm3, %v1460_v45  ;;  %v1685_v48 = vadd.f32 %v1645_v31, %v1603_v47  ;;  %v1598_v31 = vld [vmem:[%s5179_s6 + $0x3b] sm:$0x1] }
 0x457   :  { %v1427_v41 = vpop.permute.xlu0 %1426  ;;  %2088 = vrot.lane.b32.xlu1 %v3585_v43, %s2326_s26 }
 0x458   :  { %1701 = vst.msk [vmem:[%s5179_s6 + $0xb3] sm:$0x1] %vm553_vm3, %v1685_v48  ;;  %v1462_v50 = vadd.f32 %v1427_v41, %v1380_v0  ;;  %v1719_v41 = vld [vmem:[%s5179_s6 + $0xe4] sm:$0x1] }
 0x459   :  { %1992 = vrot.lane.b32.xlu0 %v3951_v12, %s2325_s25  ;;  %v1649_v46 = vpop.permute.xlu1 %1648 }
 0x45a   :  { %1478 = vst.msk [vmem:[%s5179_s6 + $0x129] sm:$0x1] %vm553_vm3, %v1462_v50  ;;  %v1687_v53 = vadd.f32 %v1649_v46, %v1605_v51  ;;  %v1600_v51 = vld [vmem:[%s5179_s6 + $0x6b] sm:$0x1] }
 0x45b   :  { %v1431_v55 = vpop.permute.xlu0 %1430  ;;  %2092 = vrot.lane.b32.xlu1 %v3606_v5, %s2326_s26 }
 0x45c   :  { %1703 = vst.msk [vmem:[%s5179_s6 + $0xe3] sm:$0x1] %vm553_vm3, %v1687_v53  ;;  %v1464_v56 = vadd.f32 %v1431_v55, %v1382_v42  ;;  %v1721_v42 = vld [vmem:[%s5179_s6 + $0x114] sm:$0x1] }
 0x45d   :  { %1996 = vrot.lane.b32.xlu0 %v3972_v37, %s2325_s25  ;;  %v1653_v59 = vpop.permute.xlu1 %1652 }
 0x45e   :  { %1480 = vst.msk [vmem:[%s5179_s6 + $0x159] sm:$0x1] %vm553_vm3, %v1464_v56  ;;  %v1689_v60 = vadd.f32 %v1653_v59, %v1607_v57  ;;  %v1602_v56 = vld [vmem:[%s5179_s6 + $0x9b] sm:$0x1]  ;;  %v1723_v59 = vld [vmem:[%s5179_s6 + $0x144] sm:$0x1] }
 0x45f   :  { %v1521_v62 = vpop.permute.xlu0 %1520  ;;  %2096 = vrot.lane.b32.xlu1 %v3627_v35, %s2326_s26 }
 0x460   :  { %1705 = vst.msk [vmem:[%s5179_s6 + $0x113] sm:$0x1] %vm553_vm3, %v1689_v60  ;;  %v1566_v63 = vadd.f32 %v1521_v62, %v1484_v61  ;;  %v1606_v61 = vld [vmem:[%s5179_s6 + $0xfb] sm:$0x1] }
 0x461   :  { %2000 = vrot.lane.b32.xlu0 %v3993_v26, %s2325_s25  ;;  %v1657_v6 = vpop.permute.xlu1 %1656 }
 0x462   :  { %1582 = vst.msk [vmem:[%s5179_s6 + $0x3a] sm:$0x1] %vm553_vm3, %v1566_v63  ;;  %v1691_v7 = vadd.f32 %v1657_v6, %v1609_v3  ;;  %v1725_v63 = vld [vmem:[%s5179_s6 + $0x174] sm:$0x1]  ;;  %v1608_v6 = vld [vmem:[%s5179_s6 + $0x12b] sm:$0x1] }
 0x463   :  { %v1525_v34 = vpop.permute.xlu0 %1524  ;;  %2100 = vrot.lane.b32.xlu1 %v3648_v19, %s2326_s26 }
 0x464   :  { %1707 = vst.msk [vmem:[%s5179_s6 + $0x143] sm:$0x1] %vm553_vm3, %v1691_v7  ;;  %v1568_v10 = vadd.f32 %v1525_v34, %v1486_v8  ;;  %v1825_v8 = vld [vmem:[%s5179_s6 + $0x25] sm:$0x1] }
 0x465   :  { %2090 = vrot.lane.b32.xlu0 %v3888_v52, %s2326_s26  ;;  %v1661_v13 = vpop.permute.xlu1 %1660 }
 0x466   :  { %1584 = vst.msk [vmem:[%s5179_s6 + $0x6a] sm:$0x1] %vm553_vm3, %v1568_v10  ;;  %v1693_v14 = vadd.f32 %v1661_v13, %v1611_v11  ;;  %v1610_v10 = vld [vmem:[%s5179_s6 + $0x15b] sm:$0x1]  ;;  %v1827_v13 = vld [vmem:[%s5179_s6 + $0x55] sm:$0x1] }
 0x467   :  { %v1529_v2 = vpop.permute.xlu0 %1528  ;;  %2104 = vrot.lane.b32.xlu1 %v3669_v27, %s2326_s26 }
 0x468   :  { %1709 = vst.msk [vmem:[%s5179_s6 + $0x173] sm:$0x1] %vm553_vm3, %v1693_v14  ;;  %v1570_v17 = vadd.f32 %v1529_v2, %v1488_v15  ;;  %v1712_v15 = vld [vmem:[%s5179_s6 + $0x3c] sm:$0x1] }
 0x469   :  { %2094 = vrot.lane.b32.xlu0 %v3909_v58, %s2326_s26  ;;  %v1747_v20 = vpop.permute.xlu1 %1746 }
 0x46a   :  { %1586 = vst.msk [vmem:[%s5179_s6 + $0x9a] sm:$0x1] %vm553_vm3, %v1570_v17  ;;  %v1793_v22 = vadd.f32 %v1747_v20, %v1711_v18  ;;  %v1829_v17 = vld [vmem:[%s5179_s6 + $0x85] sm:$0x1]  ;;  %v1714_v20 = vld [vmem:[%s5179_s6 + $0x6c] sm:$0x1] }
 0x46b   :  { %v1537_v23 = vpop.permute.xlu0 %1536  ;;  %2108 = vrot.lane.b32.xlu1 %v3690_v21, %s2326_s26 }
 0x46c   :  { %1809 = vst.msk [vmem:[%s5179_s6 + $0x24] sm:$0x1] %vm553_vm3, %v1793_v22  ;;  %v1574_v25 = vadd.f32 %v1537_v23, %v1492_v9  ;;  %v1831_v9 = vld [vmem:[%s5179_s6 + $0xb5] sm:$0x1] }
 0x46d   :  { %2098 = vrot.lane.b32.xlu0 %v3930_v4, %s2326_s26  ;;  %v1751_v28 = vpop.permute.xlu1 %1750 }
 0x46e   :  { %1590 = vst.msk [vmem:[%s5179_s6 + $0xfa] sm:$0x1] %vm553_vm3, %v1574_v25  ;;  %v1795_v16 = vadd.f32 %v1751_v28, %v1713_v38 }
 0x46f   :  { %v1541_v36 = vpop.permute.xlu0 %1540  ;;  %2112 = vrot.lane.b32.xlu1 %v3711_v49, %s2326_s26 }
 0x470   :  { %1811 = vst.msk [vmem:[%s5179_s6 + $0x54] sm:$0x1] %vm553_vm3, %v1795_v16  ;;  %v1576_v30 = vadd.f32 %v1541_v36, %v1494_v29  ;;  %v1833_v16 = vld [vmem:[%s5179_s6 + $0xe5] sm:$0x1] }
 0x471   :  { %2106 = vrot.lane.b32.xlu0 %v3951_v12, %s2326_s26  ;;  %v1755_v32 = vpop.permute.xlu1 %1754 }
 0x472   :  { %1592 = vst.msk [vmem:[%s5179_s6 + $0x12a] sm:$0x1] %vm553_vm3, %v1576_v30  ;;  %v1797_v33 = vadd.f32 %v1755_v32, %v1715_v39  ;;  %v1720_v30 = vld [vmem:[%s5179_s6 + $0xfc] sm:$0x1] }
 0x473   :  { %v1545_v1 = vpop.permute.xlu0 %1544  ;;  %2116 = vrot.lane.b32.xlu1 %v3732_v54, %s2326_s26 }
 0x474   :  { %1813 = vst.msk [vmem:[%s5179_s6 + $0x84] sm:$0x1] %vm553_vm3, %v1797_v33  ;;  %v1578_v44 = vadd.f32 %v1545_v1, %v1496_v24  ;;  %v1835_v33 = vld [vmem:[%s5179_s6 + $0x115] sm:$0x1] }
 0x475   :  { %2110 = vrot.lane.b32.xlu0 %v3972_v37, %s2326_s26  ;;  %v1759_v45 = vpop.permute.xlu1 %1758 }
 0x476   :  { %1594 = vst.msk [vmem:[%s5179_s6 + $0x15a] sm:$0x1] %vm553_vm3, %v1578_v44  ;;  %v1799_v47 = vadd.f32 %v1759_v45, %v1717_v40  ;;  %v1722_v44 = vld [vmem:[%s5179_s6 + $0x12c] sm:$0x1] }
 0x477   :  { %v1635_v48 = vpop.permute.xlu0 %1634  ;;  %2202 = vrot.lane.b32.xlu1 %v3585_v43, %s2327_s27 }
 0x478   :  { %1815 = vst.msk [vmem:[%s5179_s6 + $0xb4] sm:$0x1] %vm553_vm3, %v1799_v47  ;;  %v1680_v0 = vadd.f32 %v1635_v48, %v1598_v31  ;;  %v1837_v47 = vld [vmem:[%s5179_s6 + $0x145] sm:$0x1] }
 0x479   :  { %2114 = vrot.lane.b32.xlu0 %v3993_v26, %s2326_s26  ;;  %v1763_v50 = vpop.permute.xlu1 %1762 }
 0x47a   :  { %1696 = vst.msk [vmem:[%s5179_s6 + $0x3b] sm:$0x1] %vm553_vm3, %v1680_v0  ;;  %v1801_v43 = vadd.f32 %v1763_v50, %v1719_v41  ;;  %v1724_v0 = vld [vmem:[%s5179_s6 + $0x15c] sm:$0x1] }
 0x47b   :  { %v1639_v46 = vpop.permute.xlu0 %1638  ;;  %2206 = vrot.lane.b32.xlu1 %v3606_v5, %s2327_s27 }
 0x47c   :  { %1817 = vst.msk [vmem:[%s5179_s6 + $0xe4] sm:$0x1] %vm553_vm3, %v1801_v43  ;;  %v1682_v53 = vadd.f32 %v1639_v46, %v1600_v51  ;;  %v1839_v43 = vld [vmem:[%s5179_s6 + $0x175] sm:$0x1] }
 0x47d   :  { %2204 = vrot.lane.b32.xlu0 %v3888_v52, %s2327_s27  ;;  %v1767_v55 = vpop.permute.xlu1 %1766 }
 0x47e   :  { %1698 = vst.msk [vmem:[%s5179_s6 + $0x6b] sm:$0x1] %vm553_vm3, %v1682_v53  ;;  %v1803_v5 = vadd.f32 %v1767_v55, %v1721_v42  ;;  %v1826_v53 = vld [vmem:[%s5179_s6 + $0x3d] sm:$0x1] }
 0x47f   :  { %v1643_v57 = vpop.permute.xlu0 %1642  ;;  %2210 = vrot.lane.b32.xlu1 %v3627_v35, %s2327_s27 }
 0x480   :  { %1819 = vst.msk [vmem:[%s5179_s6 + $0x114] sm:$0x1] %vm553_vm3, %v1803_v5  ;;  %v1684_v52 = vadd.f32 %v1643_v57, %v1602_v56  ;;  %v1939_v5 = vld [vmem:[%s5179_s6 + $0x26] sm:$0x1] }
 0x481   :  { %2208 = vrot.lane.b32.xlu0 %v3909_v58, %s2327_s27  ;;  %v1771_v60 = vpop.permute.xlu1 %1770 }
 0x482   :  { %1700 = vst.msk [vmem:[%s5179_s6 + $0x9b] sm:$0x1] %vm553_vm3, %v1684_v52  ;;  %v1805_v35 = vadd.f32 %v1771_v60, %v1723_v59  ;;  %v1828_v52 = vld [vmem:[%s5179_s6 + $0x6d] sm:$0x1] }
 0x483   :  { %v1651_v62 = vpop.permute.xlu0 %1650  ;;  %2214 = vrot.lane.b32.xlu1 %v3648_v19, %s2327_s27 }
 0x484   :  { %1821 = vst.msk [vmem:[%s5179_s6 + $0x144] sm:$0x1] %vm553_vm3, %v1805_v35  ;;  %v1688_v58 = vadd.f32 %v1651_v62, %v1606_v61  ;;  %v1941_v35 = vld [vmem:[%s5179_s6 + $0x56] sm:$0x1] }
 0x485   :  { %2212 = vrot.lane.b32.xlu0 %v3930_v4, %s2327_s27  ;;  %v1775_v3 = vpop.permute.xlu1 %1774 }
 0x486   :  { %1704 = vst.msk [vmem:[%s5179_s6 + $0xfb] sm:$0x1] %vm553_vm3, %v1688_v58  ;;  %v1807_v19 = vadd.f32 %v1775_v3, %v1725_v63  ;;  %v1830_v58 = vld [vmem:[%s5179_s6 + $0x9d] sm:$0x1] }
 0x487   :  { %v1655_v7 = vpop.permute.xlu0 %1654  ;;  %2218 = vrot.lane.b32.xlu1 %v3669_v27, %s2327_s27 }
 0x488   :  { %1823 = vst.msk [vmem:[%s5179_s6 + $0x174] sm:$0x1] %vm553_vm3, %v1807_v19  ;;  %v1690_v4 = vadd.f32 %v1655_v7, %v1608_v6  ;;  %v1943_v19 = vld [vmem:[%s5179_s6 + $0x86] sm:$0x1] }
 0x489   :  { %2220 = vrot.lane.b32.xlu0 %v3951_v12, %s2327_s27  ;;  %v1861_v34 = vpop.permute.xlu1 %1860 }
 0x48a   :  { %1706 = vst.msk [vmem:[%s5179_s6 + $0x12b] sm:$0x1] %vm553_vm3, %v1690_v4  ;;  %v1907_v27 = vadd.f32 %v1861_v34, %v1825_v8  ;;  %v1834_v4 = vld [vmem:[%s5179_s6 + $0xfd] sm:$0x1] }
 0x48b   :  { %v1659_v11 = vpop.permute.xlu0 %1658  ;;  %2222 = vrot.lane.b32.xlu1 %v3690_v21, %s2327_s27 }
 0x48c   :  { %1923 = vst.msk [vmem:[%s5179_s6 + $0x25] sm:$0x1] %vm553_vm3, %v1907_v27  ;;  %v1692_v12 = vadd.f32 %v1659_v11, %v1610_v10  ;;  %v1945_v27 = vld [vmem:[%s5179_s6 + $0xb6] sm:$0x1] }
 0x48d   :  { %2224 = vrot.lane.b32.xlu0 %v3972_v37, %s2327_s27  ;;  %v1865_v14 = vpop.permute.xlu1 %1864 }
 0x48e   :  { %1708 = vst.msk [vmem:[%s5179_s6 + $0x15b] sm:$0x1] %vm553_vm3, %v1692_v12  ;;  %v1909_v21 = vadd.f32 %v1865_v14, %v1827_v13  ;;  %v1836_v12 = vld [vmem:[%s5179_s6 + $0x12d] sm:$0x1] }
 0x48f   :  { %v1749_v2 = vpop.permute.xlu0 %1748  ;;  %2226 = vrot.lane.b32.xlu1 %v3711_v49, %s2327_s27 }
 0x490   :  { %1925 = vst.msk [vmem:[%s5179_s6 + $0x55] sm:$0x1] %vm553_vm3, %v1909_v21  ;;  %v1794_v37 = vadd.f32 %v1749_v2, %v1712_v15  ;;  %v1947_v21 = vld [vmem:[%s5179_s6 + $0xe6] sm:$0x1] }
 0x491   :  { %2228 = vrot.lane.b32.xlu0 %v3993_v26, %s2327_s27  ;;  %v1869_v18 = vpop.permute.xlu1 %1868 }
 0x492   :  { %1810 = vst.msk [vmem:[%s5179_s6 + $0x3c] sm:$0x1] %vm553_vm3, %v1794_v37  ;;  %v1911_v49 = vadd.f32 %v1869_v18, %v1829_v17  ;;  %v1838_v37 = vld [vmem:[%s5179_s6 + $0x15d] sm:$0x1] }
 0x493   :  { %v1753_v22 = vpop.permute.xlu0 %1752  ;;  %2230 = vrot.lane.b32.xlu1 %v3732_v54, %s2327_s27  ;;  %v1716_v54 = vld [vmem:[%s5179_s6 + $0x9c] sm:$0x1] }
 0x494   :  { %1927 = vst.msk [vmem:[%s5179_s6 + $0x85] sm:$0x1] %vm553_vm3, %v1911_v49  ;;  %v1796_v26 = vadd.f32 %v1753_v22, %v1714_v20  ;;  %v1949_v49 = vld [vmem:[%s5179_s6 + $0x116] sm:$0x1] }
 0x495   :  { %v1873_v23 = vpop.permute.xlu1 %1872 }
 0x496   :  { %1812 = vst.msk [vmem:[%s5179_s6 + $0x6c] sm:$0x1] %vm553_vm3, %v1796_v26  ;;  %v1913_v25 = vadd.f32 %v1873_v23, %v1831_v9  ;;  %v1940_v26 = vld [vmem:[%s5179_s6 + $0x3e] sm:$0x1] }
 0x497   :  { %v1757_v38 = vpop.permute.xlu0 %1756 }
 0x498   :  { %1929 = vst.msk [vmem:[%s5179_s6 + $0xb5] sm:$0x1] %vm553_vm3, %v1913_v25  ;;  %v1798_v28 = vadd.f32 %v1757_v38, %v1716_v54  ;;  %v1951_v25 = vld [vmem:[%s5179_s6 + $0x146] sm:$0x1] }
 0x499   :  { %v1877_v29 = vpop.permute.xlu1 %1876 }
 0x49a   :  { %1814 = vst.msk [vmem:[%s5179_s6 + $0x9c] sm:$0x1] %vm553_vm3, %v1798_v28  ;;  %v1915_v36 = vadd.f32 %v1877_v29, %v1833_v16  ;;  %v1942_v28 = vld [vmem:[%s5179_s6 + $0x6e] sm:$0x1] }
 0x49b   :  { %v1765_v39 = vpop.permute.xlu0 %1764 }
 0x49c   :  { %1931 = vst.msk [vmem:[%s5179_s6 + $0xe5] sm:$0x1] %vm553_vm3, %v1915_v36  ;;  %v1802_v32 = vadd.f32 %v1765_v39, %v1720_v30  ;;  %v1953_v36 = vld [vmem:[%s5179_s6 + $0x176] sm:$0x1] }
 0x49d   :  { %v1881_v24 = vpop.permute.xlu1 %1880 }
 0x49e   :  { %1818 = vst.msk [vmem:[%s5179_s6 + $0xfc] sm:$0x1] %vm553_vm3, %v1802_v32  ;;  %v1917_v1 = vadd.f32 %v1881_v24, %v1835_v33  ;;  %v1944_v32 = vld [vmem:[%s5179_s6 + $0x9e] sm:$0x1] }
 0x49f   :  { %v1769_v40 = vpop.permute.xlu0 %1768 }
 0x4a0   :  { %1933 = vst.msk [vmem:[%s5179_s6 + $0x115] sm:$0x1] %vm553_vm3, %v1917_v1  ;;  %v1804_v45 = vadd.f32 %v1769_v40, %v1722_v44  ;;  %v2053_v1 = vld [vmem:[%s5179_s6 + $0x27] sm:$0x1] }
 0x4a1   :  { %v1885_v31 = vpop.permute.xlu1 %1884 }
 0x4a2   :  { %1820 = vst.msk [vmem:[%s5179_s6 + $0x12c] sm:$0x1] %vm553_vm3, %v1804_v45  ;;  %v1919_v48 = vadd.f32 %v1885_v31, %v1837_v47  ;;  %v1948_v45 = vld [vmem:[%s5179_s6 + $0xfe] sm:$0x1] }
 0x4a3   :  { %v1773_v41 = vpop.permute.xlu0 %1772 }
 0x4a4   :  { %1935 = vst.msk [vmem:[%s5179_s6 + $0x145] sm:$0x1] %vm553_vm3, %v1919_v48  ;;  %v1806_v50 = vadd.f32 %v1773_v41, %v1724_v0  ;;  %v2055_v48 = vld [vmem:[%s5179_s6 + $0x57] sm:$0x1] }
 0x4a5   :  { %v1889_v51 = vpop.permute.xlu1 %1888 }
 0x4a6   :  { %1822 = vst.msk [vmem:[%s5179_s6 + $0x15c] sm:$0x1] %vm553_vm3, %v1806_v50  ;;  %v1921_v46 = vadd.f32 %v1889_v51, %v1839_v43  ;;  %v1950_v50 = vld [vmem:[%s5179_s6 + $0x12e] sm:$0x1] }
 0x4a7   :  { %v1863_v42 = vpop.permute.xlu0 %1862 }
 0x4a8   :  { %1937 = vst.msk [vmem:[%s5179_s6 + $0x175] sm:$0x1] %vm553_vm3, %v1921_v46  ;;  %v1908_v55 = vadd.f32 %v1863_v42, %v1826_v53  ;;  %v2057_v46 = vld [vmem:[%s5179_s6 + $0x87] sm:$0x1] }
 0x4a9   :  { %v1975_v56 = vpop.permute.xlu1 %1974 }
 0x4aa   :  { %1924 = vst.msk [vmem:[%s5179_s6 + $0x3d] sm:$0x1] %vm553_vm3, %v1908_v55  ;;  %v2021_v57 = vadd.f32 %v1975_v56, %v1939_v5  ;;  %v1952_v55 = vld [vmem:[%s5179_s6 + $0x15e] sm:$0x1] }
 0x4ab   :  { %v1867_v59 = vpop.permute.xlu0 %1866 }
 0x4ac   :  { %2037 = vst.msk [vmem:[%s5179_s6 + $0x26] sm:$0x1] %vm553_vm3, %v2021_v57  ;;  %v1910_v60 = vadd.f32 %v1867_v59, %v1828_v52  ;;  %v2059_v57 = vld [vmem:[%s5179_s6 + $0xb7] sm:$0x1] }
 0x4ad   :  { %v1979_v61 = vpop.permute.xlu1 %1978 }
 0x4ae   :  { %1926 = vst.msk [vmem:[%s5179_s6 + $0x6d] sm:$0x1] %vm553_vm3, %v1910_v60  ;;  %v2023_v62 = vadd.f32 %v1979_v61, %v1941_v35  ;;  %v2054_v60 = vld [vmem:[%s5179_s6 + $0x3f] sm:$0x1] }
 0x4af   :  { %v1871_v63 = vpop.permute.xlu0 %1870 }
 0x4b0   :  { %2039 = vst.msk [vmem:[%s5179_s6 + $0x56] sm:$0x1] %vm553_vm3, %v2023_v62  ;;  %v1912_v3 = vadd.f32 %v1871_v63, %v1830_v58  ;;  %v2061_v62 = vld [vmem:[%s5179_s6 + $0xe7] sm:$0x1] }
 0x4b1   :  { %v1983_v6 = vpop.permute.xlu1 %1982 }
 0x4b2   :  { %1928 = vst.msk [vmem:[%s5179_s6 + $0x9d] sm:$0x1] %vm553_vm3, %v1912_v3  ;;  %v2025_v7 = vadd.f32 %v1983_v6, %v1943_v19  ;;  %v2056_v3 = vld [vmem:[%s5179_s6 + $0x6f] sm:$0x1] }
 0x4b3   :  { %v1879_v8 = vpop.permute.xlu0 %1878 }
 0x4b4   :  { %2041 = vst.msk [vmem:[%s5179_s6 + $0x86] sm:$0x1] %vm553_vm3, %v2025_v7  ;;  %v1916_v34 = vadd.f32 %v1879_v8, %v1834_v4  ;;  %v2063_v7 = vld [vmem:[%s5179_s6 + $0x117] sm:$0x1] }
 0x4b5   :  { %v1987_v10 = vpop.permute.xlu1 %1986 }
 0x4b6   :  { %1932 = vst.msk [vmem:[%s5179_s6 + $0xfd] sm:$0x1] %vm553_vm3, %v1916_v34  ;;  %v2027_v11 = vadd.f32 %v1987_v10, %v1945_v27  ;;  %v2058_v34 = vld [vmem:[%s5179_s6 + $0x9f] sm:$0x1] }
 0x4b7   :  { %v1883_v13 = vpop.permute.xlu0 %1882 }
 0x4b8   :  { %2043 = vst.msk [vmem:[%s5179_s6 + $0xb6] sm:$0x1] %vm553_vm3, %v2027_v11  ;;  %v1918_v14 = vadd.f32 %v1883_v13, %v1836_v12  ;;  %v2065_v11 = vld [vmem:[%s5179_s6 + $0x147] sm:$0x1] }
 0x4b9   :  { %v1991_v15 = vpop.permute.xlu1 %1990 }
 0x4ba   :  { %1934 = vst.msk [vmem:[%s5179_s6 + $0x12d] sm:$0x1] %vm553_vm3, %v1918_v14  ;;  %v2029_v2 = vadd.f32 %v1991_v15, %v1947_v21  ;;  %v2062_v14 = vld [vmem:[%s5179_s6 + $0xff] sm:$0x1] }
 0x4bb   :  { %v1887_v17 = vpop.permute.xlu0 %1886 }
 0x4bc   :  { %2045 = vst.msk [vmem:[%s5179_s6 + $0xe6] sm:$0x1] %vm553_vm3, %v2029_v2  ;;  %v1920_v18 = vadd.f32 %v1887_v17, %v1838_v37  ;;  %v2067_v2 = vld [vmem:[%s5179_s6 + $0x177] sm:$0x1] }
 0x4bd   :  { %v1995_v20 = vpop.permute.xlu1 %1994 }
 0x4be   :  { %1936 = vst.msk [vmem:[%s5179_s6 + $0x15d] sm:$0x1] %vm553_vm3, %v1920_v18  ;;  %v2031_v22 = vadd.f32 %v1995_v20, %v1949_v49  ;;  %v2064_v18 = vld [vmem:[%s5179_s6 + $0x12f] sm:$0x1] }
 0x4bf   :  { %v1977_v9 = vpop.permute.xlu0 %1976 }
 0x4c0   :  { %2047 = vst.msk [vmem:[%s5179_s6 + $0x116] sm:$0x1] %vm553_vm3, %v2031_v22  ;;  %v2022_v23 = vadd.f32 %v1977_v9, %v1940_v26  ;;  %v2167_v22 = vld [vmem:[%s5179_s6 + $0x28] sm:$0x1] }
 0x4c1   :  { %v1999_v54 = vpop.permute.xlu1 %1998 }
 0x4c2   :  { %2038 = vst.msk [vmem:[%s5179_s6 + $0x3e] sm:$0x1] %vm553_vm3, %v2022_v23  ;;  %v2033_v38 = vadd.f32 %v1999_v54, %v1951_v25  ;;  %v2066_v23 = vld [vmem:[%s5179_s6 + $0x15f] sm:$0x1] }
 0x4c3   :  { %v1981_v16 = vpop.permute.xlu0 %1980 }
 0x4c4   :  { %2049 = vst.msk [vmem:[%s5179_s6 + $0x146] sm:$0x1] %vm553_vm3, %v2033_v38  ;;  %v2024_v29 = vadd.f32 %v1981_v16, %v1942_v28  ;;  %v2169_v38 = vld [vmem:[%s5179_s6 + $0x58] sm:$0x1] }
 0x4c5   :  { %v2003_v30 = vpop.permute.xlu1 %2002 }
 0x4c6   :  { %2040 = vst.msk [vmem:[%s5179_s6 + $0x6e] sm:$0x1] %vm553_vm3, %v2024_v29  ;;  %v2035_v39 = vadd.f32 %v2003_v30, %v1953_v36  ;;  %v2168_v29 = vld [vmem:[%s5179_s6 + $0x40] sm:$0x1] }
 0x4c7   :  { %v1985_v33 = vpop.permute.xlu0 %1984 }
 0x4c8   :  { %2051 = vst.msk [vmem:[%s5179_s6 + $0x176] sm:$0x1] %vm553_vm3, %v2035_v39  ;;  %v2026_v24 = vadd.f32 %v1985_v33, %v1944_v32  ;;  %v2171_v39 = vld [vmem:[%s5179_s6 + $0x88] sm:$0x1] }
 0x4c9   :  { %v2089_v44 = vpop.permute.xlu1 %2088 }
 0x4ca   :  { %2042 = vst.msk [vmem:[%s5179_s6 + $0x9e] sm:$0x1] %vm553_vm3, %v2026_v24  ;;  %v2135_v40 = vadd.f32 %v2089_v44, %v2053_v1  ;;  %v2170_v24 = vld [vmem:[%s5179_s6 + $0x70] sm:$0x1] }
 0x4cb   :  { %v1993_v47 = vpop.permute.xlu0 %1992 }
 0x4cc   :  { %2151 = vst.msk [vmem:[%s5179_s6 + $0x27] sm:$0x1] %vm553_vm3, %v2135_v40  ;;  %v2030_v31 = vadd.f32 %v1993_v47, %v1948_v45  ;;  %v2173_v40 = vld [vmem:[%s5179_s6 + $0xb8] sm:$0x1] }
 0x4cd   :  { %v2093_v0 = vpop.permute.xlu1 %2092 }
 0x4ce   :  { %2046 = vst.msk [vmem:[%s5179_s6 + $0xfe] sm:$0x1] %vm553_vm3, %v2030_v31  ;;  %v2137_v41 = vadd.f32 %v2093_v0, %v2055_v48  ;;  %v2172_v31 = vld [vmem:[%s5179_s6 + $0xa0] sm:$0x1] }
 0x4cf   :  { %v1997_v43 = vpop.permute.xlu0 %1996 }
 0x4d0   :  { %2153 = vst.msk [vmem:[%s5179_s6 + $0x57] sm:$0x1] %vm553_vm3, %v2137_v41  ;;  %v2032_v51 = vadd.f32 %v1997_v43, %v1950_v50  ;;  %v2175_v41 = vld [vmem:[%s5179_s6 + $0xe8] sm:$0x1] }
 0x4d1   :  { %v2097_v53 = vpop.permute.xlu1 %2096 }
 0x4d2   :  { %2048 = vst.msk [vmem:[%s5179_s6 + $0x12e] sm:$0x1] %vm553_vm3, %v2032_v51  ;;  %v2139_v42 = vadd.f32 %v2097_v53, %v2057_v46  ;;  %v2176_v51 = vld [vmem:[%s5179_s6 + $0x100] sm:$0x1] }
 0x4d3   :  { %v2001_v5 = vpop.permute.xlu0 %2000 }
 0x4d4   :  { %2155 = vst.msk [vmem:[%s5179_s6 + $0x87] sm:$0x1] %vm553_vm3, %v2139_v42  ;;  %v2034_v56 = vadd.f32 %v2001_v5, %v1952_v55  ;;  %v2177_v42 = vld [vmem:[%s5179_s6 + $0x118] sm:$0x1] }
 0x4d5   :  { %v2101_v52 = vpop.permute.xlu1 %2100 }
 0x4d6   :  { %2050 = vst.msk [vmem:[%s5179_s6 + $0x15e] sm:$0x1] %vm553_vm3, %v2034_v56  ;;  %v2141_v59 = vadd.f32 %v2101_v52, %v2059_v57  ;;  %v2178_v56 = vld [vmem:[%s5179_s6 + $0x130] sm:$0x1] }
 0x4d7   :  { %v2091_v35 = vpop.permute.xlu0 %2090 }
 0x4d8   :  { %2157 = vst.msk [vmem:[%s5179_s6 + $0xb7] sm:$0x1] %vm553_vm3, %v2141_v59  ;;  %v2136_v61 = vadd.f32 %v2091_v35, %v2054_v60  ;;  %v2179_v59 = vld [vmem:[%s5179_s6 + $0x148] sm:$0x1] }
 0x4d9   :  { %v2105_v58 = vpop.permute.xlu1 %2104 }
 0x4da   :  { %2152 = vst.msk [vmem:[%s5179_s6 + $0x3f] sm:$0x1] %vm553_vm3, %v2136_v61  ;;  %v2143_v63 = vadd.f32 %v2105_v58, %v2061_v62  ;;  %v2180_v61 = vld [vmem:[%s5179_s6 + $0x160] sm:$0x1] }
 0x4db   :  { %v2095_v19 = vpop.permute.xlu0 %2094 }
 0x4dc   :  { %2159 = vst.msk [vmem:[%s5179_s6 + $0xe7] sm:$0x1] %vm553_vm3, %v2143_v63  ;;  %v2138_v6 = vadd.f32 %v2095_v19, %v2056_v3  ;;  %v2181_v63 = vld [vmem:[%s5179_s6 + $0x178] sm:$0x1] }
 0x4dd   :  { %v2109_v4 = vpop.permute.xlu1 %2108 }
 0x4de   :  { %2154 = vst.msk [vmem:[%s5179_s6 + $0x6f] sm:$0x1] %vm553_vm3, %v2138_v6  ;;  %v2145_v8 = vadd.f32 %v2109_v4, %v2063_v7 }
 0x4df   :  { %v2099_v27 = vpop.permute.xlu0 %2098 }
 0x4e0   :  { %2161 = vst.msk [vmem:[%s5179_s6 + $0x117] sm:$0x1] %vm553_vm3, %v2145_v8  ;;  %v2140_v10 = vadd.f32 %v2099_v27, %v2058_v34 }
 0x4e1   :  { %v2113_v12 = vpop.permute.xlu1 %2112 }
 0x4e2   :  { %2156 = vst.msk [vmem:[%s5179_s6 + $0x9f] sm:$0x1] %vm553_vm3, %v2140_v10  ;;  %v2147_v13 = vadd.f32 %v2113_v12, %v2065_v11 }
 0x4e3   :  { %v2107_v21 = vpop.permute.xlu0 %2106 }
 0x4e4   :  { %2163 = vst.msk [vmem:[%s5179_s6 + $0x147] sm:$0x1] %vm553_vm3, %v2147_v13  ;;  %v2144_v15 = vadd.f32 %v2107_v21, %v2062_v14 }
 0x4e5   :  { %v2117_v37 = vpop.permute.xlu1 %2116 }
 0x4e6   :  { %2160 = vst.msk [vmem:[%s5179_s6 + $0xff] sm:$0x1] %vm553_vm3, %v2144_v15  ;;  %v2149_v17 = vadd.f32 %v2117_v37, %v2067_v2 }
 0x4e7   :  { %v2111_v49 = vpop.permute.xlu0 %2110 }
 0x4e8   :  { %2165 = vst.msk [vmem:[%s5179_s6 + $0x177] sm:$0x1] %vm553_vm3, %v2149_v17  ;;  %v2146_v20 = vadd.f32 %v2111_v49, %v2064_v18 }
 0x4e9   :  { %v2203_v26 = vpop.permute.xlu1 %2202 }
 0x4ea   :  { %2162 = vst.msk [vmem:[%s5179_s6 + $0x12f] sm:$0x1] %vm553_vm3, %v2146_v20  ;;  %v2249_v9 = vadd.f32 %v2203_v26, %v2167_v22 }
 0x4eb   :  { %v2115_v25 = vpop.permute.xlu0 %2114 }
 0x4ec   :  { %2265 = vst.msk [vmem:[%s5179_s6 + $0x28] sm:$0x1] %vm553_vm3, %v2249_v9  ;;  %v2148_v54 = vadd.f32 %v2115_v25, %v2066_v23 }
 0x4ed   :  { %v2207_v28 = vpop.permute.xlu1 %2206 }
 0x4ee   :  { %2164 = vst.msk [vmem:[%s5179_s6 + $0x15f] sm:$0x1] %vm553_vm3, %v2148_v54  ;;  %v2251_v16 = vadd.f32 %v2207_v28, %v2169_v38 }
 0x4ef   :  { %v2205_v36 = vpop.permute.xlu0 %2204 }
 0x4f0   :  { %2267 = vst.msk [vmem:[%s5179_s6 + $0x58] sm:$0x1] %vm553_vm3, %v2251_v16  ;;  %v2250_v30 = vadd.f32 %v2205_v36, %v2168_v29 }
 0x4f1   :  { %v2211_v32 = vpop.permute.xlu1 %2210 }
 0x4f2   :  { %2266 = vst.msk [vmem:[%s5179_s6 + $0x40] sm:$0x1] %vm553_vm3, %v2250_v30  ;;  %v2253_v33 = vadd.f32 %v2211_v32, %v2171_v39 }
 0x4f3   :  { %v2209_v1 = vpop.permute.xlu0 %2208 }
 0x4f4   :  { %2269 = vst.msk [vmem:[%s5179_s6 + $0x88] sm:$0x1] %vm553_vm3, %v2253_v33  ;;  %v2252_v44 = vadd.f32 %v2209_v1, %v2170_v24 }
 0x4f5   :  { %v2215_v45 = vpop.permute.xlu1 %2214 }
 0x4f6   :  { %2268 = vst.msk [vmem:[%s5179_s6 + $0x70] sm:$0x1] %vm553_vm3, %v2252_v44  ;;  %v2255_v47 = vadd.f32 %v2215_v45, %v2173_v40 }
 0x4f7   :  { %v2213_v48 = vpop.permute.xlu0 %2212 }
 0x4f8   :  { %2271 = vst.msk [vmem:[%s5179_s6 + $0xb8] sm:$0x1] %vm553_vm3, %v2255_v47  ;;  %v2254_v0 = vadd.f32 %v2213_v48, %v2172_v31 }
 0x4f9   :  { %v2219_v50 = vpop.permute.xlu1 %2218 }
 0x4fa   :  { %2270 = vst.msk [vmem:[%s5179_s6 + $0xa0] sm:$0x1] %vm553_vm3, %v2254_v0  ;;  %v2257_v43 = vadd.f32 %v2219_v50, %v2175_v41 }
 0x4fb   :  { %v2221_v46 = vpop.permute.xlu0 %2220 }
 0x4fc   :  { %2273 = vst.msk [vmem:[%s5179_s6 + $0xe8] sm:$0x1] %vm553_vm3, %v2257_v43  ;;  %v2258_v53 = vadd.f32 %v2221_v46, %v2176_v51 }
 0x4fd   :  { %v2223_v55 = vpop.permute.xlu1 %2222 }
 0x4fe   :  { %2274 = vst.msk [vmem:[%s5179_s6 + $0x100] sm:$0x1] %vm553_vm3, %v2258_v53  ;;  %v2259_v5 = vadd.f32 %v2223_v55, %v2177_v42 }
 0x4ff   :  { %v2225_v57 = vpop.permute.xlu0 %2224 }
 0x500   :  { %2275 = vst.msk [vmem:[%s5179_s6 + $0x118] sm:$0x1] %vm553_vm3, %v2259_v5  ;;  %v2260_v52 = vadd.f32 %v2225_v57, %v2178_v56 }
 0x501   :  { %v2227_v60 = vpop.permute.xlu1 %2226 }
 0x502   :  { %2276 = vst.msk [vmem:[%s5179_s6 + $0x130] sm:$0x1] %vm553_vm3, %v2260_v52  ;;  %v2261_v35 = vadd.f32 %v2227_v60, %v2179_v59 }
 0x503   :  { %v2229_v62 = vpop.permute.xlu0 %2228 }
 0x504   :  { %2277 = vst.msk [vmem:[%s5179_s6 + $0x148] sm:$0x1] %vm553_vm3, %v2261_v35  ;;  %v2262_v58 = vadd.f32 %v2229_v62, %v2180_v61 }
 0x505   :  { %v2231_v3 = vpop.permute.xlu1 %2230 }
 0x506   :  { %2278 = vst.msk [vmem:[%s5179_s6 + $0x160] sm:$0x1] %vm553_vm3, %v2262_v58  ;;  %v2263_v19 = vadd.f32 %v2231_v3, %v2181_v63 }
 0x508   :  { %2279 = vst.msk [vmem:[%s5179_s6 + $0x178] sm:$0x1] %vm553_vm3, %v2263_v19 }

</bundles_post_ra>
